<compile_context>
chip_gen: v5e
topology: v5e:2x2
jax: 0.10.0
libtpu: 0.0.40
codegen_flags: <defaults>
</compile_context>

<pallas_src>
import functools

import jax
import jax.numpy as jnp
from jax.experimental import pallas as pl
from jax.experimental.pallas import tpu as pltpu


# ----------------------------- model dims (small, consistent with module) ----
B, T = 2, 8
INPUT_DIM = 16
FC1_DIM = 32
LSTM_DIM = 32
FC2_DIM = 32
OUTPUT_DIM = 8
NUM_LSTM = 2
NEG_SLOPE = 0.01


def _leaky_relu(v):
    return jnp.where(v > 0, v, NEG_SLOPE * v)


# ------------------------------------------------------------ Pallas kernel --
def _make_kernel(b, t, h, num_lstm):
    h4 = 4 * h

    def kernel(x_ref, w1_ref, b1_ref, *refs):
        n = 3 * num_lstm
        lstm_refs = refs[:n]
        w2b_refs = refs[n:n + num_lstm]
        (b2_ref, wo_ref, bo_ref, out_ref,
         gx_ref, hseq_ref, hfin_ref) = refs[n + num_lstm:]

        # lane mask selecting the "g" gate block [2H, 3H) of the 4H gate lanes
        lane = jax.lax.broadcasted_iota(jnp.int32, (b, h4), 1)
        g_mask = (lane >= 2 * h) & (lane < 3 * h)

        for l in range(num_lstm):
            w_ih_ref = lstm_refs[3 * l]
            w_hh_ref = lstm_refs[3 * l + 1]
            b_ref = lstm_refs[3 * l + 2]

            # ---- hoisted input->gates projection (off the serial chain) ----
            # Per-step matmuls keep every scratch access tile aligned
            # (leading-index (B, 4H) slabs) and need no in-kernel relayouts;
            # they carry no dependence on hh so they pipeline freely.
            for step in range(t):
                if l == 0:
                    inp_t = _leaky_relu(
                        jnp.dot(x_ref[step], w1_ref[...],
                                preferred_element_type=jnp.float32) + b1_ref[...])
                else:
                    inp_t = hseq_ref[step]          # wide hidden from prev layer
                gx_ref[step] = (jnp.dot(inp_t, w_ih_ref[...],
                                        preferred_element_type=jnp.float32)
                                + b_ref[...])

            # ---- serial recurrence (only hh @ W_hh_big on the chain) ----
            hh = jnp.zeros((b, h4), jnp.float32)    # valid lanes: [H, 2H)
            cc = jnp.zeros((b, h4), jnp.float32)    # valid lanes: [H, 2H)
            for step in range(t):
                gates = gx_ref[step] + jnp.dot(hh, w_hh_ref[...],
                                               preferred_element_type=jnp.float32)
                # full-width activations: tanh on the g block, sigmoid elsewhere
                act = jnp.where(g_mask, jnp.tanh(gates), jax.nn.sigmoid(gates))
                # block 1 of roll(act, H) / roll(act, 3H) is {i, g} (in either
                # roll-direction convention), so the product puts i*g there.
                ig = pltpu.roll(act, h, 1) * pltpu.roll(act, 3 * h, 1)
                cc = act * cc + ig                  # block 1: f*c_{t-1} + i*g
                # 2H shift swaps blocks 1<->3, so block 1 of the roll is o.
                hh = pltpu.roll(act, 2 * h, 1) * jnp.tanh(cc)   # block 1: o*tanh(c)
                hseq_ref[step] = hh                 # layer output sequence (wide)
            hfin_ref[l] = hh                        # final hidden of layer l (wide)

        # ---- epilogue: emb2 = LeakyReLU(h_n.reshape(B,-1)) @ W2 + b2 --------
        # Sum of per-block matmuls against zero-padded w2 blocks; no
        # lane-offset concats. Index mapping reproduces PyTorch's row-major
        # reshape of h_n (L, B, H) -> (B, L*H).
        h_fin = [hfin_ref[l] for l in range(num_lstm)]          # each (B, 4H)
        emb2 = None
        for k in range(num_lstm):
            rows = []
            for r in range(b):
                idx = r * num_lstm + k
                l_i, b_i = idx // b, idx % b
                rows.append(h_fin[l_i][b_i:b_i + 1, :])         # (1, 4H)
            f_k = rows[0] if b == 1 else jnp.concatenate(rows, axis=0)
            contrib = jnp.dot(_leaky_relu(f_k), w2b_refs[k][...],
                              preferred_element_type=jnp.float32)
            emb2 = contrib if emb2 is None else emb2 + contrib
        emb2 = emb2 + b2_ref[...]

        out = jnp.dot(emb2, wo_ref[...], preferred_element_type=jnp.float32) + bo_ref[...]
        out_ref[...] = _leaky_relu(out).astype(out_ref.dtype)

    return kernel


# ------------------------------------------------------------------ wrapper --
def _block1_rows(w, h):
    """Embed w (H, C) into rows [H, 2H) of a zero (4H, C) matrix."""
    c = w.shape[1]
    z = jnp.zeros((h, c), w.dtype)
    return jnp.concatenate([z, w, z, z], axis=0)


@functools.partial(jax.jit, static_argnames=("num_lstm",))
def bonds_lstm_forward(x, params, num_lstm=NUM_LSTM):
    b, t, d_in = x.shape
    h = params["w_hh_0"].shape[0]
    h4 = 4 * h
    f1 = params["w1"].shape[1]
    fc2_dim = params["w2"].shape[1]
    out_dim = params["wo"].shape[1]

    # time-major so each timestep is a tile-aligned leading-index slice
    x_tbd = jnp.transpose(x, (1, 0, 2))                          # (T, B, Din)

    inputs = [x_tbd, params["w1"], params["b1"]]
    for l in range(num_lstm):
        w_ih = params[f"w_ih_{l}"]
        if l > 0:
            # layers >= 1 consume the wide hidden (valid lanes [H, 2H))
            w_ih = _block1_rows(w_ih, h)                         # (4H, 4H)
        w_hh = _block1_rows(params[f"w_hh_{l}"], h)              # (4H, 4H)
        inputs += [w_ih, w_hh, params[f"b_{l}"]]
    w2 = params["w2"]
    for k in range(num_lstm):                                    # per-block fc2 weights
        inputs.append(_block1_rows(w2[k * h:(k + 1) * h, :], h))  # (4H, FC2)
    inputs += [params["b2"], params["wo"], params["bo"]]

    # advisory cost estimate: latency-bound single-invocation kernel
    mm_flops = 2 * t * b * (d_in * f1 + f1 * h4)                 # fc1 + layer-0 x-proj
    mm_flops += 2 * t * b * h4 * h4 * (num_lstm - 1)             # x-proj, layers >= 1
    mm_flops += 2 * t * b * h4 * h4 * num_lstm                   # recurrent h-proj
    mm_flops += 2 * b * h4 * fc2_dim * num_lstm + 2 * b * fc2_dim * out_dim
    transcendentals = 3 * t * b * h4 * num_lstm
    bytes_accessed = sum(a.size * a.dtype.itemsize for a in inputs) + b * out_dim * 4

    vmem = pl.BlockSpec(memory_space=pltpu.MemorySpace.VMEM)
    return pl.pallas_call(
        _make_kernel(b, t, h, num_lstm),
        out_shape=jax.ShapeDtypeStruct((b, out_dim), jnp.float32),
        in_specs=[vmem] * len(inputs),
        out_specs=vmem,
        scratch_shapes=[
            pltpu.VMEM((t, b, h4), jnp.float32),          # gx: hoisted gate inputs
            pltpu.VMEM((t, b, h4), jnp.float32),          # hseq: layer output sequence
            pltpu.VMEM((num_lstm, b, h4), jnp.float32),   # hfin: final hidden per layer
        ],
        cost_estimate=pl.CostEstimate(flops=mm_flops,
                                      transcendentals=transcendentals,
                                      bytes_accessed=bytes_accessed),
    )(*inputs)


# --------------------------------------------------------- pure-JAX reference
def reference_forward(x, params, num_lstm=NUM_LSTM):
    b, t, _ = x.shape
    h = params["w_hh_0"].shape[0]
    emb = _leaky_relu(x @ params["w1"] + params["b1"])            # (B, T, F1)
    inp = emb
    h_list = []
    for l in range(num_lstm):
        w_ih, w_hh, bias = params[f"w_ih_{l}"], params[f"w_hh_{l}"], params[f"b_{l}"]
        hh = jnp.zeros((b, h), jnp.float32)
        cc = jnp.zeros((b, h), jnp.float32)
        outs = []
        for step in range(t):
            g = inp[:, step, :] @ w_ih + hh @ w_hh + bias
            i_g = jax.nn.sigmoid(g[:, :h])
            f_g = jax.nn.sigmoid(g[:, h:2 * h])
            g_g = jnp.tanh(g[:, 2 * h:3 * h])
            o_g = jax.nn.sigmoid(g[:, 3 * h:])
            cc = f_g * cc + i_g * g_g
            hh = o_g * jnp.tanh(cc)
            outs.append(hh)
        inp = jnp.stack(outs, axis=1)
        h_list.append(hh)
    h_n = jnp.stack(h_list, axis=0)                               # (L, B, H)
    flat = _leaky_relu(h_n.reshape(b, -1))
    emb2 = flat @ params["w2"] + params["b2"]
    return _leaky_relu(emb2 @ params["wo"] + params["bo"])


# ------------------------------------------------------------------- params --
def init_params(key):
    def uniform(k, shape, bound):
        return jax.random.uniform(k, shape, jnp.float32, -bound, bound)

    keys = iter(jax.random.split(key, 64))
    p = {}
    b1 = 1.0 / jnp.sqrt(INPUT_DIM)
    p["w1"] = uniform(next(keys), (INPUT_DIM, FC1_DIM), b1)       # fc1 (in, out)
    p["b1"] = uniform(next(keys), (1, FC1_DIM), b1)
    bh = 1.0 / jnp.sqrt(LSTM_DIM)
    for l in range(NUM_LSTM):
        in_l = FC1_DIM if l == 0 else LSTM_DIM
        p[f"w_ih_{l}"] = uniform(next(keys), (in_l, 4 * LSTM_DIM), bh)
        p[f"w_hh_{l}"] = uniform(next(keys), (LSTM_DIM, 4 * LSTM_DIM), bh)
        # b_ih + b_hh folded into one bias (matches PyTorch LSTM math)
        p[f"b_{l}"] = (uniform(next(keys), (1, 4 * LSTM_DIM), bh)
                       + uniform(next(keys), (1, 4 * LSTM_DIM), bh))
    b2 = 1.0 / jnp.sqrt(LSTM_DIM * NUM_LSTM)
    p["w2"] = uniform(next(keys), (LSTM_DIM * NUM_LSTM, FC2_DIM), b2)
    p["b2"] = uniform(next(keys), (1, FC2_DIM), b2)
    bo = 1.0 / jnp.sqrt(FC2_DIM)
    p["wo"] = uniform(next(keys), (FC2_DIM, OUTPUT_DIM), bo)
    p["bo"] = uniform(next(keys), (1, OUTPUT_DIM), bo)
    return p


if __name__ == "__main__":
    key = jax.random.PRNGKey(0)
    k_x, k_p = jax.random.split(key)
    x = jax.random.normal(k_x, (B, T, INPUT_DIM), jnp.float32)
    params = init_params(k_p)

    out = bonds_lstm_forward(x, params)
    out = jax.block_until_ready(out)

    ref = reference_forward(x, params)
    assert out.shape == (B, OUTPUT_DIM), out.shape
    assert jnp.allclose(out, ref, rtol=1e-2, atol=1e-2), (out, ref)

    print("KERNEL_OK")
</pallas_src>

<mosaic_0001>
module attributes {stable_mosaic.version = 11 : i64} {
  func.func @kernel(%arg0: memref<8x2x16xf32, #tpu.memory_space<vmem>>, %arg1: memref<16x32xf32, #tpu.memory_space<vmem>>, %arg2: memref<1x32xf32, #tpu.memory_space<vmem>>, %arg3: memref<32x128xf32, #tpu.memory_space<vmem>>, %arg4: memref<128x128xf32, #tpu.memory_space<vmem>>, %arg5: memref<1x128xf32, #tpu.memory_space<vmem>>, %arg6: memref<128x128xf32, #tpu.memory_space<vmem>>, %arg7: memref<128x128xf32, #tpu.memory_space<vmem>>, %arg8: memref<1x128xf32, #tpu.memory_space<vmem>>, %arg9: memref<128x32xf32, #tpu.memory_space<vmem>>, %arg10: memref<128x32xf32, #tpu.memory_space<vmem>>, %arg11: memref<1x32xf32, #tpu.memory_space<vmem>>, %arg12: memref<32x8xf32, #tpu.memory_space<vmem>>, %arg13: memref<1x8xf32, #tpu.memory_space<vmem>>, %arg14: memref<2x8xf32, #tpu.memory_space<vmem>>, %arg15: memref<8x2x128xf32, #tpu.memory_space<vmem>>, %arg16: memref<8x2x128xf32, #tpu.memory_space<vmem>>, %arg17: memref<2x2x128xf32, #tpu.memory_space<vmem>>) attributes {dimension_semantics = [], scalar_prefetch = 0 : i64, scratch_operands = 3 : i64, tpu.core_type = #tpu.core_type<tc>} {
    %0 = tpu.iota {dimensions = array<i32: 1>} : vector<2x128xi32>
    %c64_i32 = arith.constant 64 : i32
    %1 = vector.broadcast %c64_i32 : i32 to vector<2x128xi32>
    %2 = arith.cmpi sge, %0, %1 : vector<2x128xi32>
    %c96_i32 = arith.constant 96 : i32
    %3 = vector.broadcast %c96_i32 : i32 to vector<2x128xi32>
    %4 = arith.cmpi slt, %0, %3 : vector<2x128xi32>
    %5 = arith.andi %2, %4 : vector<2x128xi1>
    %c0 = arith.constant 0 : index
    %c0_0 = arith.constant 0 : index
    %c0_1 = arith.constant 0 : index
    %6 = vector.load %arg0[%c0, %c0_0, %c0_1] : memref<8x2x16xf32, #tpu.memory_space<vmem>>, vector<1x2x16xf32>
    %7 = vector.shape_cast %6 : vector<1x2x16xf32> to vector<2x16xf32>
    %c0_2 = arith.constant 0 : index
    %c0_3 = arith.constant 0 : index
    %8 = vector.load %arg1[%c0_2, %c0_3] : memref<16x32xf32, #tpu.memory_space<vmem>>, vector<16x32xf32>
    %cst = arith.constant dense<0.000000e+00> : vector<2x32xf32>
    %9 = tpu.matmul %7, %8, %cst {dimension_numbers = #tpu.dot_dimension_numbers<[1], [0], [0], [1], [0, 0, 1, 1], [], []>} : vector<2x16xf32>, vector<16x32xf32>, vector<2x32xf32> -> vector<2x32xf32>
    %c0_4 = arith.constant 0 : index
    %c0_5 = arith.constant 0 : index
    %10 = vector.load %arg2[%c0_4, %c0_5] : memref<1x32xf32, #tpu.memory_space<vmem>>, vector<1x32xf32>
    %11 = vector.broadcast %10 : vector<1x32xf32> to vector<2x32xf32>
    %12 = arith.addf %9, %11 : vector<2x32xf32>
    %cst_6 = arith.constant 0.000000e+00 : f32
    %13 = vector.broadcast %cst_6 : f32 to vector<2x32xf32>
    %14 = arith.cmpf ogt, %12, %13 : vector<2x32xf32>
    %cst_7 = arith.constant 0.00999999977 : f32
    %15 = vector.broadcast %cst_7 : f32 to vector<2x32xf32>
    %16 = arith.mulf %15, %12 : vector<2x32xf32>
    %17 = arith.select %14, %12, %16 : vector<2x32xi1>, vector<2x32xf32>
    %c0_8 = arith.constant 0 : index
    %c0_9 = arith.constant 0 : index
    %18 = vector.load %arg3[%c0_8, %c0_9] : memref<32x128xf32, #tpu.memory_space<vmem>>, vector<32x128xf32>
    %cst_10 = arith.constant dense<0.000000e+00> : vector<2x128xf32>
    %19 = tpu.matmul %17, %18, %cst_10 {dimension_numbers = #tpu.dot_dimension_numbers<[1], [0], [0], [1], [0, 0, 1, 1], [], []>} : vector<2x32xf32>, vector<32x128xf32>, vector<2x128xf32> -> vector<2x128xf32>
    %c0_11 = arith.constant 0 : index
    %c0_12 = arith.constant 0 : index
    %20 = vector.load %arg5[%c0_11, %c0_12] : memref<1x128xf32, #tpu.memory_space<vmem>>, vector<1x128xf32>
    %21 = vector.broadcast %20 : vector<1x128xf32> to vector<2x128xf32>
    %22 = arith.addf %19, %21 : vector<2x128xf32>
    %c0_13 = arith.constant 0 : index
    %c0_14 = arith.constant 0 : index
    %c0_15 = arith.constant 0 : index
    %23 = vector.load %arg15[%c0_13, %c0_14, %c0_15] : memref<8x2x128xf32, #tpu.memory_space<vmem>>, vector<1x2x128xf32>
    %24 = vector.shape_cast %23 : vector<1x2x128xf32> to vector<2x128xf32>
    %25 = vector.shape_cast %22 : vector<2x128xf32> to vector<1x2x128xf32>
    tpu.vector_store %arg15[%c0_13, %c0_14, %c0_15], %25 {strides = array<i32>} : memref<8x2x128xf32, #tpu.memory_space<vmem>>, vector<1x2x128xf32>,
    %c1 = arith.constant 1 : index
    %c0_16 = arith.constant 0 : index
    %c0_17 = arith.constant 0 : index
    %26 = vector.load %arg0[%c1, %c0_16, %c0_17] : memref<8x2x16xf32, #tpu.memory_space<vmem>>, vector<1x2x16xf32>
    %27 = vector.shape_cast %26 : vector<1x2x16xf32> to vector<2x16xf32>
    %c0_18 = arith.constant 0 : index
    %c0_19 = arith.constant 0 : index
    %28 = vector.load %arg1[%c0_18, %c0_19] : memref<16x32xf32, #tpu.memory_space<vmem>>, vector<16x32xf32>
    %cst_20 = arith.constant dense<0.000000e+00> : vector<2x32xf32>
    %29 = tpu.matmul %27, %28, %cst_20 {dimension_numbers = #tpu.dot_dimension_numbers<[1], [0], [0], [1], [0, 0, 1, 1], [], []>} : vector<2x16xf32>, vector<16x32xf32>, vector<2x32xf32> -> vector<2x32xf32>
    %c0_21 = arith.constant 0 : index
    %c0_22 = arith.constant 0 : index
    %30 = vector.load %arg2[%c0_21, %c0_22] : memref<1x32xf32, #tpu.memory_space<vmem>>, vector<1x32xf32>
    %31 = vector.broadcast %30 : vector<1x32xf32> to vector<2x32xf32>
    %32 = arith.addf %29, %31 : vector<2x32xf32>
    %cst_23 = arith.constant 0.000000e+00 : f32
    %33 = vector.broadcast %cst_23 : f32 to vector<2x32xf32>
    %34 = arith.cmpf ogt, %32, %33 : vector<2x32xf32>
    %cst_24 = arith.constant 0.00999999977 : f32
    %35 = vector.broadcast %cst_24 : f32 to vector<2x32xf32>
    %36 = arith.mulf %35, %32 : vector<2x32xf32>
    %37 = arith.select %34, %32, %36 : vector<2x32xi1>, vector<2x32xf32>
    %c0_25 = arith.constant 0 : index
    %c0_26 = arith.constant 0 : index
    %38 = vector.load %arg3[%c0_25, %c0_26] : memref<32x128xf32, #tpu.memory_space<vmem>>, vector<32x128xf32>
    %cst_27 = arith.constant dense<0.000000e+00> : vector<2x128xf32>
    %39 = tpu.matmul %37, %38, %cst_27 {dimension_numbers = #tpu.dot_dimension_numbers<[1], [0], [0], [1], [0, 0, 1, 1], [], []>} : vector<2x32xf32>, vector<32x128xf32>, vector<2x128xf32> -> vector<2x128xf32>
    %c0_28 = arith.constant 0 : index
    %c0_29 = arith.constant 0 : index
    %40 = vector.load %arg5[%c0_28, %c0_29] : memref<1x128xf32, #tpu.memory_space<vmem>>, vector<1x128xf32>
    %41 = vector.broadcast %40 : vector<1x128xf32> to vector<2x128xf32>
    %42 = arith.addf %39, %41 : vector<2x128xf32>
    %c1_30 = arith.constant 1 : index
    %c0_31 = arith.constant 0 : index
    %c0_32 = arith.constant 0 : index
    %43 = vector.load %arg15[%c1_30, %c0_31, %c0_32] : memref<8x2x128xf32, #tpu.memory_space<vmem>>, vector<1x2x128xf32>
    %44 = vector.shape_cast %43 : vector<1x2x128xf32> to vector<2x128xf32>
    %45 = vector.shape_cast %42 : vector<2x128xf32> to vector<1x2x128xf32>
    tpu.vector_store %arg15[%c1_30, %c0_31, %c0_32], %45 {strides = array<i32>} : memref<8x2x128xf32, #tpu.memory_space<vmem>>, vector<1x2x128xf32>,
    %c2 = arith.constant 2 : index
    %c0_33 = arith.constant 0 : index
    %c0_34 = arith.constant 0 : index
    %46 = vector.load %arg0[%c2, %c0_33, %c0_34] : memref<8x2x16xf32, #tpu.memory_space<vmem>>, vector<1x2x16xf32>
    %47 = vector.shape_cast %46 : vector<1x2x16xf32> to vector<2x16xf32>
    %c0_35 = arith.constant 0 : index
    %c0_36 = arith.constant 0 : index
    %48 = vector.load %arg1[%c0_35, %c0_36] : memref<16x32xf32, #tpu.memory_space<vmem>>, vector<16x32xf32>
    %cst_37 = arith.constant dense<0.000000e+00> : vector<2x32xf32>
    %49 = tpu.matmul %47, %48, %cst_37 {dimension_numbers = #tpu.dot_dimension_numbers<[1], [0], [0], [1], [0, 0, 1, 1], [], []>} : vector<2x16xf32>, vector<16x32xf32>, vector<2x32xf32> -> vector<2x32xf32>
    %c0_38 = arith.constant 0 : index
    %c0_39 = arith.constant 0 : index
    %50 = vector.load %arg2[%c0_38, %c0_39] : memref<1x32xf32, #tpu.memory_space<vmem>>, vector<1x32xf32>
    %51 = vector.broadcast %50 : vector<1x32xf32> to vector<2x32xf32>
    %52 = arith.addf %49, %51 : vector<2x32xf32>
    %cst_40 = arith.constant 0.000000e+00 : f32
    %53 = vector.broadcast %cst_40 : f32 to vector<2x32xf32>
    %54 = arith.cmpf ogt, %52, %53 : vector<2x32xf32>
    %cst_41 = arith.constant 0.00999999977 : f32
    %55 = vector.broadcast %cst_41 : f32 to vector<2x32xf32>
    %56 = arith.mulf %55, %52 : vector<2x32xf32>
    %57 = arith.select %54, %52, %56 : vector<2x32xi1>, vector<2x32xf32>
    %c0_42 = arith.constant 0 : index
    %c0_43 = arith.constant 0 : index
    %58 = vector.load %arg3[%c0_42, %c0_43] : memref<32x128xf32, #tpu.memory_space<vmem>>, vector<32x128xf32>
    %cst_44 = arith.constant dense<0.000000e+00> : vector<2x128xf32>
    %59 = tpu.matmul %57, %58, %cst_44 {dimension_numbers = #tpu.dot_dimension_numbers<[1], [0], [0], [1], [0, 0, 1, 1], [], []>} : vector<2x32xf32>, vector<32x128xf32>, vector<2x128xf32> -> vector<2x128xf32>
    %c0_45 = arith.constant 0 : index
    %c0_46 = arith.constant 0 : index
    %60 = vector.load %arg5[%c0_45, %c0_46] : memref<1x128xf32, #tpu.memory_space<vmem>>, vector<1x128xf32>
    %61 = vector.broadcast %60 : vector<1x128xf32> to vector<2x128xf32>
    %62 = arith.addf %59, %61 : vector<2x128xf32>
    %c2_47 = arith.constant 2 : index
    %c0_48 = arith.constant 0 : index
    %c0_49 = arith.constant 0 : index
    %63 = vector.load %arg15[%c2_47, %c0_48, %c0_49] : memref<8x2x128xf32, #tpu.memory_space<vmem>>, vector<1x2x128xf32>
    %64 = vector.shape_cast %63 : vector<1x2x128xf32> to vector<2x128xf32>
    %65 = vector.shape_cast %62 : vector<2x128xf32> to vector<1x2x128xf32>
    tpu.vector_store %arg15[%c2_47, %c0_48, %c0_49], %65 {strides = array<i32>} : memref<8x2x128xf32, #tpu.memory_space<vmem>>, vector<1x2x128xf32>,
    %c3 = arith.constant 3 : index
    %c0_50 = arith.constant 0 : index
    %c0_51 = arith.constant 0 : index
    %66 = vector.load %arg0[%c3, %c0_50, %c0_51] : memref<8x2x16xf32, #tpu.memory_space<vmem>>, vector<1x2x16xf32>
    %67 = vector.shape_cast %66 : vector<1x2x16xf32> to vector<2x16xf32>
    %c0_52 = arith.constant 0 : index
    %c0_53 = arith.constant 0 : index
    %68 = vector.load %arg1[%c0_52, %c0_53] : memref<16x32xf32, #tpu.memory_space<vmem>>, vector<16x32xf32>
    %cst_54 = arith.constant dense<0.000000e+00> : vector<2x32xf32>
    %69 = tpu.matmul %67, %68, %cst_54 {dimension_numbers = #tpu.dot_dimension_numbers<[1], [0], [0], [1], [0, 0, 1, 1], [], []>} : vector<2x16xf32>, vector<16x32xf32>, vector<2x32xf32> -> vector<2x32xf32>
    %c0_55 = arith.constant 0 : index
    %c0_56 = arith.constant 0 : index
    %70 = vector.load %arg2[%c0_55, %c0_56] : memref<1x32xf32, #tpu.memory_space<vmem>>, vector<1x32xf32>
    %71 = vector.broadcast %70 : vector<1x32xf32> to vector<2x32xf32>
    %72 = arith.addf %69, %71 : vector<2x32xf32>
    %cst_57 = arith.constant 0.000000e+00 : f32
    %73 = vector.broadcast %cst_57 : f32 to vector<2x32xf32>
    %74 = arith.cmpf ogt, %72, %73 : vector<2x32xf32>
    %cst_58 = arith.constant 0.00999999977 : f32
    %75 = vector.broadcast %cst_58 : f32 to vector<2x32xf32>
    %76 = arith.mulf %75, %72 : vector<2x32xf32>
    %77 = arith.select %74, %72, %76 : vector<2x32xi1>, vector<2x32xf32>
    %c0_59 = arith.constant 0 : index
    %c0_60 = arith.constant 0 : index
    %78 = vector.load %arg3[%c0_59, %c0_60] : memref<32x128xf32, #tpu.memory_space<vmem>>, vector<32x128xf32>
    %cst_61 = arith.constant dense<0.000000e+00> : vector<2x128xf32>
    %79 = tpu.matmul %77, %78, %cst_61 {dimension_numbers = #tpu.dot_dimension_numbers<[1], [0], [0], [1], [0, 0, 1, 1], [], []>} : vector<2x32xf32>, vector<32x128xf32>, vector<2x128xf32> -> vector<2x128xf32>
    %c0_62 = arith.constant 0 : index
    %c0_63 = arith.constant 0 : index
    %80 = vector.load %arg5[%c0_62, %c0_63] : memref<1x128xf32, #tpu.memory_space<vmem>>, vector<1x128xf32>
    %81 = vector.broadcast %80 : vector<1x128xf32> to vector<2x128xf32>
    %82 = arith.addf %79, %81 : vector<2x128xf32>
    %c3_64 = arith.constant 3 : index
    %c0_65 = arith.constant 0 : index
    %c0_66 = arith.constant 0 : index
    %83 = vector.load %arg15[%c3_64, %c0_65, %c0_66] : memref<8x2x128xf32, #tpu.memory_space<vmem>>, vector<1x2x128xf32>
    %84 = vector.shape_cast %83 : vector<1x2x128xf32> to vector<2x128xf32>
    %85 = vector.shape_cast %82 : vector<2x128xf32> to vector<1x2x128xf32>
    tpu.vector_store %arg15[%c3_64, %c0_65, %c0_66], %85 {strides = array<i32>} : memref<8x2x128xf32, #tpu.memory_space<vmem>>, vector<1x2x128xf32>,
    %c4 = arith.constant 4 : index
    %c0_67 = arith.constant 0 : index
    %c0_68 = arith.constant 0 : index
    %86 = vector.load %arg0[%c4, %c0_67, %c0_68] : memref<8x2x16xf32, #tpu.memory_space<vmem>>, vector<1x2x16xf32>
    %87 = vector.shape_cast %86 : vector<1x2x16xf32> to vector<2x16xf32>
    %c0_69 = arith.constant 0 : index
    %c0_70 = arith.constant 0 : index
    %88 = vector.load %arg1[%c0_69, %c0_70] : memref<16x32xf32, #tpu.memory_space<vmem>>, vector<16x32xf32>
    %cst_71 = arith.constant dense<0.000000e+00> : vector<2x32xf32>
    %89 = tpu.matmul %87, %88, %cst_71 {dimension_numbers = #tpu.dot_dimension_numbers<[1], [0], [0], [1], [0, 0, 1, 1], [], []>} : vector<2x16xf32>, vector<16x32xf32>, vector<2x32xf32> -> vector<2x32xf32>
    %c0_72 = arith.constant 0 : index
    %c0_73 = arith.constant 0 : index
    %90 = vector.load %arg2[%c0_72, %c0_73] : memref<1x32xf32, #tpu.memory_space<vmem>>, vector<1x32xf32>
    %91 = vector.broadcast %90 : vector<1x32xf32> to vector<2x32xf32>
    %92 = arith.addf %89, %91 : vector<2x32xf32>
    %cst_74 = arith.constant 0.000000e+00 : f32
    %93 = vector.broadcast %cst_74 : f32 to vector<2x32xf32>
    %94 = arith.cmpf ogt, %92, %93 : vector<2x32xf32>
    %cst_75 = arith.constant 0.00999999977 : f32
    %95 = vector.broadcast %cst_75 : f32 to vector<2x32xf32>
    %96 = arith.mulf %95, %92 : vector<2x32xf32>
    %97 = arith.select %94, %92, %96 : vector<2x32xi1>, vector<2x32xf32>
    %c0_76 = arith.constant 0 : index
    %c0_77 = arith.constant 0 : index
    %98 = vector.load %arg3[%c0_76, %c0_77] : memref<32x128xf32, #tpu.memory_space<vmem>>, vector<32x128xf32>
    %cst_78 = arith.constant dense<0.000000e+00> : vector<2x128xf32>
    %99 = tpu.matmul %97, %98, %cst_78 {dimension_numbers = #tpu.dot_dimension_numbers<[1], [0], [0], [1], [0, 0, 1, 1], [], []>} : vector<2x32xf32>, vector<32x128xf32>, vector<2x128xf32> -> vector<2x128xf32>
    %c0_79 = arith.constant 0 : index
    %c0_80 = arith.constant 0 : index
    %100 = vector.load %arg5[%c0_79, %c0_80] : memref<1x128xf32, #tpu.memory_space<vmem>>, vector<1x128xf32>
    %101 = vector.broadcast %100 : vector<1x128xf32> to vector<2x128xf32>
    %102 = arith.addf %99, %101 : vector<2x128xf32>
    %c4_81 = arith.constant 4 : index
    %c0_82 = arith.constant 0 : index
    %c0_83 = arith.constant 0 : index
    %103 = vector.load %arg15[%c4_81, %c0_82, %c0_83] : memref<8x2x128xf32, #tpu.memory_space<vmem>>, vector<1x2x128xf32>
    %104 = vector.shape_cast %103 : vector<1x2x128xf32> to vector<2x128xf32>
    %105 = vector.shape_cast %102 : vector<2x128xf32> to vector<1x2x128xf32>
    tpu.vector_store %arg15[%c4_81, %c0_82, %c0_83], %105 {strides = array<i32>} : memref<8x2x128xf32, #tpu.memory_space<vmem>>, vector<1x2x128xf32>,
    %c5 = arith.constant 5 : index
    %c0_84 = arith.constant 0 : index
    %c0_85 = arith.constant 0 : index
    %106 = vector.load %arg0[%c5, %c0_84, %c0_85] : memref<8x2x16xf32, #tpu.memory_space<vmem>>, vector<1x2x16xf32>
    %107 = vector.shape_cast %106 : vector<1x2x16xf32> to vector<2x16xf32>
    %c0_86 = arith.constant 0 : index
    %c0_87 = arith.constant 0 : index
    %108 = vector.load %arg1[%c0_86, %c0_87] : memref<16x32xf32, #tpu.memory_space<vmem>>, vector<16x32xf32>
    %cst_88 = arith.constant dense<0.000000e+00> : vector<2x32xf32>
    %109 = tpu.matmul %107, %108, %cst_88 {dimension_numbers = #tpu.dot_dimension_numbers<[1], [0], [0], [1], [0, 0, 1, 1], [], []>} : vector<2x16xf32>, vector<16x32xf32>, vector<2x32xf32> -> vector<2x32xf32>
    %c0_89 = arith.constant 0 : index
    %c0_90 = arith.constant 0 : index
    %110 = vector.load %arg2[%c0_89, %c0_90] : memref<1x32xf32, #tpu.memory_space<vmem>>, vector<1x32xf32>
    %111 = vector.broadcast %110 : vector<1x32xf32> to vector<2x32xf32>
    %112 = arith.addf %109, %111 : vector<2x32xf32>
    %cst_91 = arith.constant 0.000000e+00 : f32
    %113 = vector.broadcast %cst_91 : f32 to vector<2x32xf32>
    %114 = arith.cmpf ogt, %112, %113 : vector<2x32xf32>
    %cst_92 = arith.constant 0.00999999977 : f32
    %115 = vector.broadcast %cst_92 : f32 to vector<2x32xf32>
    %116 = arith.mulf %115, %112 : vector<2x32xf32>
    %117 = arith.select %114, %112, %116 : vector<2x32xi1>, vector<2x32xf32>
    %c0_93 = arith.constant 0 : index
    %c0_94 = arith.constant 0 : index
    %118 = vector.load %arg3[%c0_93, %c0_94] : memref<32x128xf32, #tpu.memory_space<vmem>>, vector<32x128xf32>
    %cst_95 = arith.constant dense<0.000000e+00> : vector<2x128xf32>
    %119 = tpu.matmul %117, %118, %cst_95 {dimension_numbers = #tpu.dot_dimension_numbers<[1], [0], [0], [1], [0, 0, 1, 1], [], []>} : vector<2x32xf32>, vector<32x128xf32>, vector<2x128xf32> -> vector<2x128xf32>
    %c0_96 = arith.constant 0 : index
    %c0_97 = arith.constant 0 : index
    %120 = vector.load %arg5[%c0_96, %c0_97] : memref<1x128xf32, #tpu.memory_space<vmem>>, vector<1x128xf32>
    %121 = vector.broadcast %120 : vector<1x128xf32> to vector<2x128xf32>
    %122 = arith.addf %119, %121 : vector<2x128xf32>
    %c5_98 = arith.constant 5 : index
    %c0_99 = arith.constant 0 : index
    %c0_100 = arith.constant 0 : index
    %123 = vector.load %arg15[%c5_98, %c0_99, %c0_100] : memref<8x2x128xf32, #tpu.memory_space<vmem>>, vector<1x2x128xf32>
    %124 = vector.shape_cast %123 : vector<1x2x128xf32> to vector<2x128xf32>
    %125 = vector.shape_cast %122 : vector<2x128xf32> to vector<1x2x128xf32>
    tpu.vector_store %arg15[%c5_98, %c0_99, %c0_100], %125 {strides = array<i32>} : memref<8x2x128xf32, #tpu.memory_space<vmem>>, vector<1x2x128xf32>,
    %c6 = arith.constant 6 : index
    %c0_101 = arith.constant 0 : index
    %c0_102 = arith.constant 0 : index
    %126 = vector.load %arg0[%c6, %c0_101, %c0_102] : memref<8x2x16xf32, #tpu.memory_space<vmem>>, vector<1x2x16xf32>
    %127 = vector.shape_cast %126 : vector<1x2x16xf32> to vector<2x16xf32>
    %c0_103 = arith.constant 0 : index
    %c0_104 = arith.constant 0 : index
    %128 = vector.load %arg1[%c0_103, %c0_104] : memref<16x32xf32, #tpu.memory_space<vmem>>, vector<16x32xf32>
    %cst_105 = arith.constant dense<0.000000e+00> : vector<2x32xf32>
    %129 = tpu.matmul %127, %128, %cst_105 {dimension_numbers = #tpu.dot_dimension_numbers<[1], [0], [0], [1], [0, 0, 1, 1], [], []>} : vector<2x16xf32>, vector<16x32xf32>, vector<2x32xf32> -> vector<2x32xf32>
    %c0_106 = arith.constant 0 : index
    %c0_107 = arith.constant 0 : index
    %130 = vector.load %arg2[%c0_106, %c0_107] : memref<1x32xf32, #tpu.memory_space<vmem>>, vector<1x32xf32>
    %131 = vector.broadcast %130 : vector<1x32xf32> to vector<2x32xf32>
    %132 = arith.addf %129, %131 : vector<2x32xf32>
    %cst_108 = arith.constant 0.000000e+00 : f32
    %133 = vector.broadcast %cst_108 : f32 to vector<2x32xf32>
    %134 = arith.cmpf ogt, %132, %133 : vector<2x32xf32>
    %cst_109 = arith.constant 0.00999999977 : f32
    %135 = vector.broadcast %cst_109 : f32 to vector<2x32xf32>
    %136 = arith.mulf %135, %132 : vector<2x32xf32>
    %137 = arith.select %134, %132, %136 : vector<2x32xi1>, vector<2x32xf32>
    %c0_110 = arith.constant 0 : index
    %c0_111 = arith.constant 0 : index
    %138 = vector.load %arg3[%c0_110, %c0_111] : memref<32x128xf32, #tpu.memory_space<vmem>>, vector<32x128xf32>
    %cst_112 = arith.constant dense<0.000000e+00> : vector<2x128xf32>
    %139 = tpu.matmul %137, %138, %cst_112 {dimension_numbers = #tpu.dot_dimension_numbers<[1], [0], [0], [1], [0, 0, 1, 1], [], []>} : vector<2x32xf32>, vector<32x128xf32>, vector<2x128xf32> -> vector<2x128xf32>
    %c0_113 = arith.constant 0 : index
    %c0_114 = arith.constant 0 : index
    %140 = vector.load %arg5[%c0_113, %c0_114] : memref<1x128xf32, #tpu.memory_space<vmem>>, vector<1x128xf32>
    %141 = vector.broadcast %140 : vector<1x128xf32> to vector<2x128xf32>
    %142 = arith.addf %139, %141 : vector<2x128xf32>
    %c6_115 = arith.constant 6 : index
    %c0_116 = arith.constant 0 : index
    %c0_117 = arith.constant 0 : index
    %143 = vector.load %arg15[%c6_115, %c0_116, %c0_117] : memref<8x2x128xf32, #tpu.memory_space<vmem>>, vector<1x2x128xf32>
    %144 = vector.shape_cast %143 : vector<1x2x128xf32> to vector<2x128xf32>
    %145 = vector.shape_cast %142 : vector<2x128xf32> to vector<1x2x128xf32>
    tpu.vector_store %arg15[%c6_115, %c0_116, %c0_117], %145 {strides = array<i32>} : memref<8x2x128xf32, #tpu.memory_space<vmem>>, vector<1x2x128xf32>,
    %c7 = arith.constant 7 : index
    %c0_118 = arith.constant 0 : index
    %c0_119 = arith.constant 0 : index
    %146 = vector.load %arg0[%c7, %c0_118, %c0_119] : memref<8x2x16xf32, #tpu.memory_space<vmem>>, vector<1x2x16xf32>
    %147 = vector.shape_cast %146 : vector<1x2x16xf32> to vector<2x16xf32>
    %c0_120 = arith.constant 0 : index
    %c0_121 = arith.constant 0 : index
    %148 = vector.load %arg1[%c0_120, %c0_121] : memref<16x32xf32, #tpu.memory_space<vmem>>, vector<16x32xf32>
    %cst_122 = arith.constant dense<0.000000e+00> : vector<2x32xf32>
    %149 = tpu.matmul %147, %148, %cst_122 {dimension_numbers = #tpu.dot_dimension_numbers<[1], [0], [0], [1], [0, 0, 1, 1], [], []>} : vector<2x16xf32>, vector<16x32xf32>, vector<2x32xf32> -> vector<2x32xf32>
    %c0_123 = arith.constant 0 : index
    %c0_124 = arith.constant 0 : index
    %150 = vector.load %arg2[%c0_123, %c0_124] : memref<1x32xf32, #tpu.memory_space<vmem>>, vector<1x32xf32>
    %151 = vector.broadcast %150 : vector<1x32xf32> to vector<2x32xf32>
    %152 = arith.addf %149, %151 : vector<2x32xf32>
    %cst_125 = arith.constant 0.000000e+00 : f32
    %153 = vector.broadcast %cst_125 : f32 to vector<2x32xf32>
    %154 = arith.cmpf ogt, %152, %153 : vector<2x32xf32>
    %cst_126 = arith.constant 0.00999999977 : f32
    %155 = vector.broadcast %cst_126 : f32 to vector<2x32xf32>
    %156 = arith.mulf %155, %152 : vector<2x32xf32>
    %157 = arith.select %154, %152, %156 : vector<2x32xi1>, vector<2x32xf32>
    %c0_127 = arith.constant 0 : index
    %c0_128 = arith.constant 0 : index
    %158 = vector.load %arg3[%c0_127, %c0_128] : memref<32x128xf32, #tpu.memory_space<vmem>>, vector<32x128xf32>
    %cst_129 = arith.constant dense<0.000000e+00> : vector<2x128xf32>
    %159 = tpu.matmul %157, %158, %cst_129 {dimension_numbers = #tpu.dot_dimension_numbers<[1], [0], [0], [1], [0, 0, 1, 1], [], []>} : vector<2x32xf32>, vector<32x128xf32>, vector<2x128xf32> -> vector<2x128xf32>
    %c0_130 = arith.constant 0 : index
    %c0_131 = arith.constant 0 : index
    %160 = vector.load %arg5[%c0_130, %c0_131] : memref<1x128xf32, #tpu.memory_space<vmem>>, vector<1x128xf32>
    %161 = vector.broadcast %160 : vector<1x128xf32> to vector<2x128xf32>
    %162 = arith.addf %159, %161 : vector<2x128xf32>
    %c7_132 = arith.constant 7 : index
    %c0_133 = arith.constant 0 : index
    %c0_134 = arith.constant 0 : index
    %163 = vector.load %arg15[%c7_132, %c0_133, %c0_134] : memref<8x2x128xf32, #tpu.memory_space<vmem>>, vector<1x2x128xf32>
    %164 = vector.shape_cast %163 : vector<1x2x128xf32> to vector<2x128xf32>
    %165 = vector.shape_cast %162 : vector<2x128xf32> to vector<1x2x128xf32>
    tpu.vector_store %arg15[%c7_132, %c0_133, %c0_134], %165 {strides = array<i32>} : memref<8x2x128xf32, #tpu.memory_space<vmem>>, vector<1x2x128xf32>,
    %cst_135 = arith.constant 0.000000e+00 : f32
    %166 = vector.broadcast %cst_135 : f32 to vector<2x128xf32>
    %cst_136 = arith.constant 0.000000e+00 : f32
    %167 = vector.broadcast %cst_136 : f32 to vector<2x128xf32>
    %c0_137 = arith.constant 0 : index
    %c0_138 = arith.constant 0 : index
    %c0_139 = arith.constant 0 : index
    %168 = vector.load %arg15[%c0_137, %c0_138, %c0_139] : memref<8x2x128xf32, #tpu.memory_space<vmem>>, vector<1x2x128xf32>
    %169 = vector.shape_cast %168 : vector<1x2x128xf32> to vector<2x128xf32>
    %c0_140 = arith.constant 0 : index
    %c0_141 = arith.constant 0 : index
    %170 = vector.load %arg4[%c0_140, %c0_141] : memref<128x128xf32, #tpu.memory_space<vmem>>, vector<128x128xf32>
    %cst_142 = arith.constant dense<0.000000e+00> : vector<2x128xf32>
    %171 = tpu.matmul %166, %170, %cst_142 {dimension_numbers = #tpu.dot_dimension_numbers<[1], [0], [0], [1], [0, 0, 1, 1], [], []>} : vector<2x128xf32>, vector<128x128xf32>, vector<2x128xf32> -> vector<2x128xf32>
    %172 = arith.addf %169, %171 : vector<2x128xf32>
    %173 = math.tanh %172 : vector<2x128xf32>
    %174 = arith.negf %172 : vector<2x128xf32>
    %175 = math.exp %174 : vector<2x128xf32>
    %cst_143 = arith.constant 1.000000e+00 : f32
    %176 = vector.broadcast %cst_143 : f32 to vector<2x128xf32>
    %177 = arith.addf %176, %175 : vector<2x128xf32>
    %178 = arith.divf %176, %177 : vector<2x128xf32>
    %179 = arith.select %5, %173, %178 : vector<2x128xi1>, vector<2x128xf32>
    %c32_i32 = arith.constant 32 : i32
    %180 = tpu.dynamic_rotate %179 by %c32_i32 dim 1 : vector<2x128xf32>, i32 -> vector<2x128xf32>
    %c96_i32_144 = arith.constant 96 : i32
    %181 = tpu.dynamic_rotate %179 by %c96_i32_144 dim 1 : vector<2x128xf32>, i32 -> vector<2x128xf32>
    %182 = arith.mulf %180, %181 : vector<2x128xf32>
    %183 = arith.mulf %179, %167 : vector<2x128xf32>
    %184 = arith.addf %183, %182 : vector<2x128xf32>
    %c64_i32_145 = arith.constant 64 : i32
    %185 = tpu.dynamic_rotate %179 by %c64_i32_145 dim 1 : vector<2x128xf32>, i32 -> vector<2x128xf32>
    %186 = math.tanh %184 : vector<2x128xf32>
    %187 = arith.mulf %185, %186 : vector<2x128xf32>
    %c0_146 = arith.constant 0 : index
    %c0_147 = arith.constant 0 : index
    %c0_148 = arith.constant 0 : index
    %188 = vector.load %arg16[%c0_146, %c0_147, %c0_148] : memref<8x2x128xf32, #tpu.memory_space<vmem>>, vector<1x2x128xf32>
    %189 = vector.shape_cast %188 : vector<1x2x128xf32> to vector<2x128xf32>
    %190 = vector.shape_cast %187 : vector<2x128xf32> to vector<1x2x128xf32>
    tpu.vector_store %arg16[%c0_146, %c0_147, %c0_148], %190 {strides = array<i32>} : memref<8x2x128xf32, #tpu.memory_space<vmem>>, vector<1x2x128xf32>,
    %c1_149 = arith.constant 1 : index
    %c0_150 = arith.constant 0 : index
    %c0_151 = arith.constant 0 : index
    %191 = vector.load %arg15[%c1_149, %c0_150, %c0_151] : memref<8x2x128xf32, #tpu.memory_space<vmem>>, vector<1x2x128xf32>
    %192 = vector.shape_cast %191 : vector<1x2x128xf32> to vector<2x128xf32>
    %c0_152 = arith.constant 0 : index
    %c0_153 = arith.constant 0 : index
    %193 = vector.load %arg4[%c0_152, %c0_153] : memref<128x128xf32, #tpu.memory_space<vmem>>, vector<128x128xf32>
    %cst_154 = arith.constant dense<0.000000e+00> : vector<2x128xf32>
    %194 = tpu.matmul %187, %193, %cst_154 {dimension_numbers = #tpu.dot_dimension_numbers<[1], [0], [0], [1], [0, 0, 1, 1], [], []>} : vector<2x128xf32>, vector<128x128xf32>, vector<2x128xf32> -> vector<2x128xf32>
    %195 = arith.addf %192, %194 : vector<2x128xf32>
    %196 = math.tanh %195 : vector<2x128xf32>
    %197 = arith.negf %195 : vector<2x128xf32>
    %198 = math.exp %197 : vector<2x128xf32>
    %cst_155 = arith.constant 1.000000e+00 : f32
    %199 = vector.broadcast %cst_155 : f32 to vector<2x128xf32>
    %200 = arith.addf %199, %198 : vector<2x128xf32>
    %201 = arith.divf %199, %200 : vector<2x128xf32>
    %202 = arith.select %5, %196, %201 : vector<2x128xi1>, vector<2x128xf32>
    %c32_i32_156 = arith.constant 32 : i32
    %203 = tpu.dynamic_rotate %202 by %c32_i32_156 dim 1 : vector<2x128xf32>, i32 -> vector<2x128xf32>
    %c96_i32_157 = arith.constant 96 : i32
    %204 = tpu.dynamic_rotate %202 by %c96_i32_157 dim 1 : vector<2x128xf32>, i32 -> vector<2x128xf32>
    %205 = arith.mulf %203, %204 : vector<2x128xf32>
    %206 = arith.mulf %202, %184 : vector<2x128xf32>
    %207 = arith.addf %206, %205 : vector<2x128xf32>
    %c64_i32_158 = arith.constant 64 : i32
    %208 = tpu.dynamic_rotate %202 by %c64_i32_158 dim 1 : vector<2x128xf32>, i32 -> vector<2x128xf32>
    %209 = math.tanh %207 : vector<2x128xf32>
    %210 = arith.mulf %208, %209 : vector<2x128xf32>
    %c1_159 = arith.constant 1 : index
    %c0_160 = arith.constant 0 : index
    %c0_161 = arith.constant 0 : index
    %211 = vector.load %arg16[%c1_159, %c0_160, %c0_161] : memref<8x2x128xf32, #tpu.memory_space<vmem>>, vector<1x2x128xf32>
    %212 = vector.shape_cast %211 : vector<1x2x128xf32> to vector<2x128xf32>
    %213 = vector.shape_cast %210 : vector<2x128xf32> to vector<1x2x128xf32>
    tpu.vector_store %arg16[%c1_159, %c0_160, %c0_161], %213 {strides = array<i32>} : memref<8x2x128xf32, #tpu.memory_space<vmem>>, vector<1x2x128xf32>,
    %c2_162 = arith.constant 2 : index
    %c0_163 = arith.constant 0 : index
    %c0_164 = arith.constant 0 : index
    %214 = vector.load %arg15[%c2_162, %c0_163, %c0_164] : memref<8x2x128xf32, #tpu.memory_space<vmem>>, vector<1x2x128xf32>
    %215 = vector.shape_cast %214 : vector<1x2x128xf32> to vector<2x128xf32>
    %c0_165 = arith.constant 0 : index
    %c0_166 = arith.constant 0 : index
    %216 = vector.load %arg4[%c0_165, %c0_166] : memref<128x128xf32, #tpu.memory_space<vmem>>, vector<128x128xf32>
    %cst_167 = arith.constant dense<0.000000e+00> : vector<2x128xf32>
    %217 = tpu.matmul %210, %216, %cst_167 {dimension_numbers = #tpu.dot_dimension_numbers<[1], [0], [0], [1], [0, 0, 1, 1], [], []>} : vector<2x128xf32>, vector<128x128xf32>, vector<2x128xf32> -> vector<2x128xf32>
    %218 = arith.addf %215, %217 : vector<2x128xf32>
    %219 = math.tanh %218 : vector<2x128xf32>
    %220 = arith.negf %218 : vector<2x128xf32>
    %221 = math.exp %220 : vector<2x128xf32>
    %cst_168 = arith.constant 1.000000e+00 : f32
    %222 = vector.broadcast %cst_168 : f32 to vector<2x128xf32>
    %223 = arith.addf %222, %221 : vector<2x128xf32>
    %224 = arith.divf %222, %223 : vector<2x128xf32>
    %225 = arith.select %5, %219, %224 : vector<2x128xi1>, vector<2x128xf32>
    %c32_i32_169 = arith.constant 32 : i32
    %226 = tpu.dynamic_rotate %225 by %c32_i32_169 dim 1 : vector<2x128xf32>, i32 -> vector<2x128xf32>
    %c96_i32_170 = arith.constant 96 : i32
    %227 = tpu.dynamic_rotate %225 by %c96_i32_170 dim 1 : vector<2x128xf32>, i32 -> vector<2x128xf32>
    %228 = arith.mulf %226, %227 : vector<2x128xf32>
    %229 = arith.mulf %225, %207 : vector<2x128xf32>
    %230 = arith.addf %229, %228 : vector<2x128xf32>
    %c64_i32_171 = arith.constant 64 : i32
    %231 = tpu.dynamic_rotate %225 by %c64_i32_171 dim 1 : vector<2x128xf32>, i32 -> vector<2x128xf32>
    %232 = math.tanh %230 : vector<2x128xf32>
    %233 = arith.mulf %231, %232 : vector<2x128xf32>
    %c2_172 = arith.constant 2 : index
    %c0_173 = arith.constant 0 : index
    %c0_174 = arith.constant 0 : index
    %234 = vector.load %arg16[%c2_172, %c0_173, %c0_174] : memref<8x2x128xf32, #tpu.memory_space<vmem>>, vector<1x2x128xf32>
    %235 = vector.shape_cast %234 : vector<1x2x128xf32> to vector<2x128xf32>
    %236 = vector.shape_cast %233 : vector<2x128xf32> to vector<1x2x128xf32>
    tpu.vector_store %arg16[%c2_172, %c0_173, %c0_174], %236 {strides = array<i32>} : memref<8x2x128xf32, #tpu.memory_space<vmem>>, vector<1x2x128xf32>,
    %c3_175 = arith.constant 3 : index
    %c0_176 = arith.constant 0 : index
    %c0_177 = arith.constant 0 : index
    %237 = vector.load %arg15[%c3_175, %c0_176, %c0_177] : memref<8x2x128xf32, #tpu.memory_space<vmem>>, vector<1x2x128xf32>
    %238 = vector.shape_cast %237 : vector<1x2x128xf32> to vector<2x128xf32>
    %c0_178 = arith.constant 0 : index
    %c0_179 = arith.constant 0 : index
    %239 = vector.load %arg4[%c0_178, %c0_179] : memref<128x128xf32, #tpu.memory_space<vmem>>, vector<128x128xf32>
    %cst_180 = arith.constant dense<0.000000e+00> : vector<2x128xf32>
    %240 = tpu.matmul %233, %239, %cst_180 {dimension_numbers = #tpu.dot_dimension_numbers<[1], [0], [0], [1], [0, 0, 1, 1], [], []>} : vector<2x128xf32>, vector<128x128xf32>, vector<2x128xf32> -> vector<2x128xf32>
    %241 = arith.addf %238, %240 : vector<2x128xf32>
    %242 = math.tanh %241 : vector<2x128xf32>
    %243 = arith.negf %241 : vector<2x128xf32>
    %244 = math.exp %243 : vector<2x128xf32>
    %cst_181 = arith.constant 1.000000e+00 : f32
    %245 = vector.broadcast %cst_181 : f32 to vector<2x128xf32>
    %246 = arith.addf %245, %244 : vector<2x128xf32>
    %247 = arith.divf %245, %246 : vector<2x128xf32>
    %248 = arith.select %5, %242, %247 : vector<2x128xi1>, vector<2x128xf32>
    %c32_i32_182 = arith.constant 32 : i32
    %249 = tpu.dynamic_rotate %248 by %c32_i32_182 dim 1 : vector<2x128xf32>, i32 -> vector<2x128xf32>
    %c96_i32_183 = arith.constant 96 : i32
    %250 = tpu.dynamic_rotate %248 by %c96_i32_183 dim 1 : vector<2x128xf32>, i32 -> vector<2x128xf32>
    %251 = arith.mulf %249, %250 : vector<2x128xf32>
    %252 = arith.mulf %248, %230 : vector<2x128xf32>
    %253 = arith.addf %252, %251 : vector<2x128xf32>
    %c64_i32_184 = arith.constant 64 : i32
    %254 = tpu.dynamic_rotate %248 by %c64_i32_184 dim 1 : vector<2x128xf32>, i32 -> vector<2x128xf32>
    %255 = math.tanh %253 : vector<2x128xf32>
    %256 = arith.mulf %254, %255 : vector<2x128xf32>
    %c3_185 = arith.constant 3 : index
    %c0_186 = arith.constant 0 : index
    %c0_187 = arith.constant 0 : index
    %257 = vector.load %arg16[%c3_185, %c0_186, %c0_187] : memref<8x2x128xf32, #tpu.memory_space<vmem>>, vector<1x2x128xf32>
    %258 = vector.shape_cast %257 : vector<1x2x128xf32> to vector<2x128xf32>
    %259 = vector.shape_cast %256 : vector<2x128xf32> to vector<1x2x128xf32>
    tpu.vector_store %arg16[%c3_185, %c0_186, %c0_187], %259 {strides = array<i32>} : memref<8x2x128xf32, #tpu.memory_space<vmem>>, vector<1x2x128xf32>,
    %c4_188 = arith.constant 4 : index
    %c0_189 = arith.constant 0 : index
    %c0_190 = arith.constant 0 : index
    %260 = vector.load %arg15[%c4_188, %c0_189, %c0_190] : memref<8x2x128xf32, #tpu.memory_space<vmem>>, vector<1x2x128xf32>
    %261 = vector.shape_cast %260 : vector<1x2x128xf32> to vector<2x128xf32>
    %c0_191 = arith.constant 0 : index
    %c0_192 = arith.constant 0 : index
    %262 = vector.load %arg4[%c0_191, %c0_192] : memref<128x128xf32, #tpu.memory_space<vmem>>, vector<128x128xf32>
    %cst_193 = arith.constant dense<0.000000e+00> : vector<2x128xf32>
    %263 = tpu.matmul %256, %262, %cst_193 {dimension_numbers = #tpu.dot_dimension_numbers<[1], [0], [0], [1], [0, 0, 1, 1], [], []>} : vector<2x128xf32>, vector<128x128xf32>, vector<2x128xf32> -> vector<2x128xf32>
    %264 = arith.addf %261, %263 : vector<2x128xf32>
    %265 = math.tanh %264 : vector<2x128xf32>
    %266 = arith.negf %264 : vector<2x128xf32>
    %267 = math.exp %266 : vector<2x128xf32>
    %cst_194 = arith.constant 1.000000e+00 : f32
    %268 = vector.broadcast %cst_194 : f32 to vector<2x128xf32>
    %269 = arith.addf %268, %267 : vector<2x128xf32>
    %270 = arith.divf %268, %269 : vector<2x128xf32>
    %271 = arith.select %5, %265, %270 : vector<2x128xi1>, vector<2x128xf32>
    %c32_i32_195 = arith.constant 32 : i32
    %272 = tpu.dynamic_rotate %271 by %c32_i32_195 dim 1 : vector<2x128xf32>, i32 -> vector<2x128xf32>
    %c96_i32_196 = arith.constant 96 : i32
    %273 = tpu.dynamic_rotate %271 by %c96_i32_196 dim 1 : vector<2x128xf32>, i32 -> vector<2x128xf32>
    %274 = arith.mulf %272, %273 : vector<2x128xf32>
    %275 = arith.mulf %271, %253 : vector<2x128xf32>
    %276 = arith.addf %275, %274 : vector<2x128xf32>
    %c64_i32_197 = arith.constant 64 : i32
    %277 = tpu.dynamic_rotate %271 by %c64_i32_197 dim 1 : vector<2x128xf32>, i32 -> vector<2x128xf32>
    %278 = math.tanh %276 : vector<2x128xf32>
    %279 = arith.mulf %277, %278 : vector<2x128xf32>
    %c4_198 = arith.constant 4 : index
    %c0_199 = arith.constant 0 : index
    %c0_200 = arith.constant 0 : index
    %280 = vector.load %arg16[%c4_198, %c0_199, %c0_200] : memref<8x2x128xf32, #tpu.memory_space<vmem>>, vector<1x2x128xf32>
    %281 = vector.shape_cast %280 : vector<1x2x128xf32> to vector<2x128xf32>
    %282 = vector.shape_cast %279 : vector<2x128xf32> to vector<1x2x128xf32>
    tpu.vector_store %arg16[%c4_198, %c0_199, %c0_200], %282 {strides = array<i32>} : memref<8x2x128xf32, #tpu.memory_space<vmem>>, vector<1x2x128xf32>,
    %c5_201 = arith.constant 5 : index
    %c0_202 = arith.constant 0 : index
    %c0_203 = arith.constant 0 : index
    %283 = vector.load %arg15[%c5_201, %c0_202, %c0_203] : memref<8x2x128xf32, #tpu.memory_space<vmem>>, vector<1x2x128xf32>
    %284 = vector.shape_cast %283 : vector<1x2x128xf32> to vector<2x128xf32>
    %c0_204 = arith.constant 0 : index
    %c0_205 = arith.constant 0 : index
    %285 = vector.load %arg4[%c0_204, %c0_205] : memref<128x128xf32, #tpu.memory_space<vmem>>, vector<128x128xf32>
    %cst_206 = arith.constant dense<0.000000e+00> : vector<2x128xf32>
    %286 = tpu.matmul %279, %285, %cst_206 {dimension_numbers = #tpu.dot_dimension_numbers<[1], [0], [0], [1], [0, 0, 1, 1], [], []>} : vector<2x128xf32>, vector<128x128xf32>, vector<2x128xf32> -> vector<2x128xf32>
    %287 = arith.addf %284, %286 : vector<2x128xf32>
    %288 = math.tanh %287 : vector<2x128xf32>
    %289 = arith.negf %287 : vector<2x128xf32>
    %290 = math.exp %289 : vector<2x128xf32>
    %cst_207 = arith.constant 1.000000e+00 : f32
    %291 = vector.broadcast %cst_207 : f32 to vector<2x128xf32>
    %292 = arith.addf %291, %290 : vector<2x128xf32>
    %293 = arith.divf %291, %292 : vector<2x128xf32>
    %294 = arith.select %5, %288, %293 : vector<2x128xi1>, vector<2x128xf32>
    %c32_i32_208 = arith.constant 32 : i32
    %295 = tpu.dynamic_rotate %294 by %c32_i32_208 dim 1 : vector<2x128xf32>, i32 -> vector<2x128xf32>
    %c96_i32_209 = arith.constant 96 : i32
    %296 = tpu.dynamic_rotate %294 by %c96_i32_209 dim 1 : vector<2x128xf32>, i32 -> vector<2x128xf32>
    %297 = arith.mulf %295, %296 : vector<2x128xf32>
    %298 = arith.mulf %294, %276 : vector<2x128xf32>
    %299 = arith.addf %298, %297 : vector<2x128xf32>
    %c64_i32_210 = arith.constant 64 : i32
    %300 = tpu.dynamic_rotate %294 by %c64_i32_210 dim 1 : vector<2x128xf32>, i32 -> vector<2x128xf32>
    %301 = math.tanh %299 : vector<2x128xf32>
    %302 = arith.mulf %300, %301 : vector<2x128xf32>
    %c5_211 = arith.constant 5 : index
    %c0_212 = arith.constant 0 : index
    %c0_213 = arith.constant 0 : index
    %303 = vector.load %arg16[%c5_211, %c0_212, %c0_213] : memref<8x2x128xf32, #tpu.memory_space<vmem>>, vector<1x2x128xf32>
    %304 = vector.shape_cast %303 : vector<1x2x128xf32> to vector<2x128xf32>
    %305 = vector.shape_cast %302 : vector<2x128xf32> to vector<1x2x128xf32>
    tpu.vector_store %arg16[%c5_211, %c0_212, %c0_213], %305 {strides = array<i32>} : memref<8x2x128xf32, #tpu.memory_space<vmem>>, vector<1x2x128xf32>,
    %c6_214 = arith.constant 6 : index
    %c0_215 = arith.constant 0 : index
    %c0_216 = arith.constant 0 : index
    %306 = vector.load %arg15[%c6_214, %c0_215, %c0_216] : memref<8x2x128xf32, #tpu.memory_space<vmem>>, vector<1x2x128xf32>
    %307 = vector.shape_cast %306 : vector<1x2x128xf32> to vector<2x128xf32>
    %c0_217 = arith.constant 0 : index
    %c0_218 = arith.constant 0 : index
    %308 = vector.load %arg4[%c0_217, %c0_218] : memref<128x128xf32, #tpu.memory_space<vmem>>, vector<128x128xf32>
    %cst_219 = arith.constant dense<0.000000e+00> : vector<2x128xf32>
    %309 = tpu.matmul %302, %308, %cst_219 {dimension_numbers = #tpu.dot_dimension_numbers<[1], [0], [0], [1], [0, 0, 1, 1], [], []>} : vector<2x128xf32>, vector<128x128xf32>, vector<2x128xf32> -> vector<2x128xf32>
    %310 = arith.addf %307, %309 : vector<2x128xf32>
    %311 = math.tanh %310 : vector<2x128xf32>
    %312 = arith.negf %310 : vector<2x128xf32>
    %313 = math.exp %312 : vector<2x128xf32>
    %cst_220 = arith.constant 1.000000e+00 : f32
    %314 = vector.broadcast %cst_220 : f32 to vector<2x128xf32>
    %315 = arith.addf %314, %313 : vector<2x128xf32>
    %316 = arith.divf %314, %315 : vector<2x128xf32>
    %317 = arith.select %5, %311, %316 : vector<2x128xi1>, vector<2x128xf32>
    %c32_i32_221 = arith.constant 32 : i32
    %318 = tpu.dynamic_rotate %317 by %c32_i32_221 dim 1 : vector<2x128xf32>, i32 -> vector<2x128xf32>
    %c96_i32_222 = arith.constant 96 : i32
    %319 = tpu.dynamic_rotate %317 by %c96_i32_222 dim 1 : vector<2x128xf32>, i32 -> vector<2x128xf32>
    %320 = arith.mulf %318, %319 : vector<2x128xf32>
    %321 = arith.mulf %317, %299 : vector<2x128xf32>
    %322 = arith.addf %321, %320 : vector<2x128xf32>
    %c64_i32_223 = arith.constant 64 : i32
    %323 = tpu.dynamic_rotate %317 by %c64_i32_223 dim 1 : vector<2x128xf32>, i32 -> vector<2x128xf32>
    %324 = math.tanh %322 : vector<2x128xf32>
    %325 = arith.mulf %323, %324 : vector<2x128xf32>
    %c6_224 = arith.constant 6 : index
    %c0_225 = arith.constant 0 : index
    %c0_226 = arith.constant 0 : index
    %326 = vector.load %arg16[%c6_224, %c0_225, %c0_226] : memref<8x2x128xf32, #tpu.memory_space<vmem>>, vector<1x2x128xf32>
    %327 = vector.shape_cast %326 : vector<1x2x128xf32> to vector<2x128xf32>
    %328 = vector.shape_cast %325 : vector<2x128xf32> to vector<1x2x128xf32>
    tpu.vector_store %arg16[%c6_224, %c0_225, %c0_226], %328 {strides = array<i32>} : memref<8x2x128xf32, #tpu.memory_space<vmem>>, vector<1x2x128xf32>,
    %c7_227 = arith.constant 7 : index
    %c0_228 = arith.constant 0 : index
    %c0_229 = arith.constant 0 : index
    %329 = vector.load %arg15[%c7_227, %c0_228, %c0_229] : memref<8x2x128xf32, #tpu.memory_space<vmem>>, vector<1x2x128xf32>
    %330 = vector.shape_cast %329 : vector<1x2x128xf32> to vector<2x128xf32>
    %c0_230 = arith.constant 0 : index
    %c0_231 = arith.constant 0 : index
    %331 = vector.load %arg4[%c0_230, %c0_231] : memref<128x128xf32, #tpu.memory_space<vmem>>, vector<128x128xf32>
    %cst_232 = arith.constant dense<0.000000e+00> : vector<2x128xf32>
    %332 = tpu.matmul %325, %331, %cst_232 {dimension_numbers = #tpu.dot_dimension_numbers<[1], [0], [0], [1], [0, 0, 1, 1], [], []>} : vector<2x128xf32>, vector<128x128xf32>, vector<2x128xf32> -> vector<2x128xf32>
    %333 = arith.addf %330, %332 : vector<2x128xf32>
    %334 = math.tanh %333 : vector<2x128xf32>
    %335 = arith.negf %333 : vector<2x128xf32>
    %336 = math.exp %335 : vector<2x128xf32>
    %cst_233 = arith.constant 1.000000e+00 : f32
    %337 = vector.broadcast %cst_233 : f32 to vector<2x128xf32>
    %338 = arith.addf %337, %336 : vector<2x128xf32>
    %339 = arith.divf %337, %338 : vector<2x128xf32>
    %340 = arith.select %5, %334, %339 : vector<2x128xi1>, vector<2x128xf32>
    %c32_i32_234 = arith.constant 32 : i32
    %341 = tpu.dynamic_rotate %340 by %c32_i32_234 dim 1 : vector<2x128xf32>, i32 -> vector<2x128xf32>
    %c96_i32_235 = arith.constant 96 : i32
    %342 = tpu.dynamic_rotate %340 by %c96_i32_235 dim 1 : vector<2x128xf32>, i32 -> vector<2x128xf32>
    %343 = arith.mulf %341, %342 : vector<2x128xf32>
    %344 = arith.mulf %340, %322 : vector<2x128xf32>
    %345 = arith.addf %344, %343 : vector<2x128xf32>
    %c64_i32_236 = arith.constant 64 : i32
    %346 = tpu.dynamic_rotate %340 by %c64_i32_236 dim 1 : vector<2x128xf32>, i32 -> vector<2x128xf32>
    %347 = math.tanh %345 : vector<2x128xf32>
    %348 = arith.mulf %346, %347 : vector<2x128xf32>
    %c7_237 = arith.constant 7 : index
    %c0_238 = arith.constant 0 : index
    %c0_239 = arith.constant 0 : index
    %349 = vector.load %arg16[%c7_237, %c0_238, %c0_239] : memref<8x2x128xf32, #tpu.memory_space<vmem>>, vector<1x2x128xf32>
    %350 = vector.shape_cast %349 : vector<1x2x128xf32> to vector<2x128xf32>
    %351 = vector.shape_cast %348 : vector<2x128xf32> to vector<1x2x128xf32>
    tpu.vector_store %arg16[%c7_237, %c0_238, %c0_239], %351 {strides = array<i32>} : memref<8x2x128xf32, #tpu.memory_space<vmem>>, vector<1x2x128xf32>,
    %c0_240 = arith.constant 0 : index
    %c0_241 = arith.constant 0 : index
    %c0_242 = arith.constant 0 : index
    %352 = vector.load %arg17[%c0_240, %c0_241, %c0_242] : memref<2x2x128xf32, #tpu.memory_space<vmem>>, vector<1x2x128xf32>
    %353 = vector.shape_cast %352 : vector<1x2x128xf32> to vector<2x128xf32>
    %354 = vector.shape_cast %348 : vector<2x128xf32> to vector<1x2x128xf32>
    tpu.vector_store %arg17[%c0_240, %c0_241, %c0_242], %354 {strides = array<i32>} : memref<2x2x128xf32, #tpu.memory_space<vmem>>, vector<1x2x128xf32>,
    %c0_243 = arith.constant 0 : index
    %c0_244 = arith.constant 0 : index
    %c0_245 = arith.constant 0 : index
    %355 = vector.load %arg16[%c0_243, %c0_244, %c0_245] : memref<8x2x128xf32, #tpu.memory_space<vmem>>, vector<1x2x128xf32>
    %356 = vector.shape_cast %355 : vector<1x2x128xf32> to vector<2x128xf32>
    %c0_246 = arith.constant 0 : index
    %c0_247 = arith.constant 0 : index
    %357 = vector.load %arg6[%c0_246, %c0_247] : memref<128x128xf32, #tpu.memory_space<vmem>>, vector<128x128xf32>
    %cst_248 = arith.constant dense<0.000000e+00> : vector<2x128xf32>
    %358 = tpu.matmul %356, %357, %cst_248 {dimension_numbers = #tpu.dot_dimension_numbers<[1], [0], [0], [1], [0, 0, 1, 1], [], []>} : vector<2x128xf32>, vector<128x128xf32>, vector<2x128xf32> -> vector<2x128xf32>
    %c0_249 = arith.constant 0 : index
    %c0_250 = arith.constant 0 : index
    %359 = vector.load %arg8[%c0_249, %c0_250] : memref<1x128xf32, #tpu.memory_space<vmem>>, vector<1x128xf32>
    %360 = vector.broadcast %359 : vector<1x128xf32> to vector<2x128xf32>
    %361 = arith.addf %358, %360 : vector<2x128xf32>
    %c0_251 = arith.constant 0 : index
    %c0_252 = arith.constant 0 : index
    %c0_253 = arith.constant 0 : index
    %362 = vector.load %arg15[%c0_251, %c0_252, %c0_253] : memref<8x2x128xf32, #tpu.memory_space<vmem>>, vector<1x2x128xf32>
    %363 = vector.shape_cast %362 : vector<1x2x128xf32> to vector<2x128xf32>
    %364 = vector.shape_cast %361 : vector<2x128xf32> to vector<1x2x128xf32>
    tpu.vector_store %arg15[%c0_251, %c0_252, %c0_253], %364 {strides = array<i32>} : memref<8x2x128xf32, #tpu.memory_space<vmem>>, vector<1x2x128xf32>,
    %c1_254 = arith.constant 1 : index
    %c0_255 = arith.constant 0 : index
    %c0_256 = arith.constant 0 : index
    %365 = vector.load %arg16[%c1_254, %c0_255, %c0_256] : memref<8x2x128xf32, #tpu.memory_space<vmem>>, vector<1x2x128xf32>
    %366 = vector.shape_cast %365 : vector<1x2x128xf32> to vector<2x128xf32>
    %c0_257 = arith.constant 0 : index
    %c0_258 = arith.constant 0 : index
    %367 = vector.load %arg6[%c0_257, %c0_258] : memref<128x128xf32, #tpu.memory_space<vmem>>, vector<128x128xf32>
    %cst_259 = arith.constant dense<0.000000e+00> : vector<2x128xf32>
    %368 = tpu.matmul %366, %367, %cst_259 {dimension_numbers = #tpu.dot_dimension_numbers<[1], [0], [0], [1], [0, 0, 1, 1], [], []>} : vector<2x128xf32>, vector<128x128xf32>, vector<2x128xf32> -> vector<2x128xf32>
    %c0_260 = arith.constant 0 : index
    %c0_261 = arith.constant 0 : index
    %369 = vector.load %arg8[%c0_260, %c0_261] : memref<1x128xf32, #tpu.memory_space<vmem>>, vector<1x128xf32>
    %370 = vector.broadcast %369 : vector<1x128xf32> to vector<2x128xf32>
    %371 = arith.addf %368, %370 : vector<2x128xf32>
    %c1_262 = arith.constant 1 : index
    %c0_263 = arith.constant 0 : index
    %c0_264 = arith.constant 0 : index
    %372 = vector.load %arg15[%c1_262, %c0_263, %c0_264] : memref<8x2x128xf32, #tpu.memory_space<vmem>>, vector<1x2x128xf32>
    %373 = vector.shape_cast %372 : vector<1x2x128xf32> to vector<2x128xf32>
    %374 = vector.shape_cast %371 : vector<2x128xf32> to vector<1x2x128xf32>
    tpu.vector_store %arg15[%c1_262, %c0_263, %c0_264], %374 {strides = array<i32>} : memref<8x2x128xf32, #tpu.memory_space<vmem>>, vector<1x2x128xf32>,
    %c2_265 = arith.constant 2 : index
    %c0_266 = arith.constant 0 : index
    %c0_267 = arith.constant 0 : index
    %375 = vector.load %arg16[%c2_265, %c0_266, %c0_267] : memref<8x2x128xf32, #tpu.memory_space<vmem>>, vector<1x2x128xf32>
    %376 = vector.shape_cast %375 : vector<1x2x128xf32> to vector<2x128xf32>
    %c0_268 = arith.constant 0 : index
    %c0_269 = arith.constant 0 : index
    %377 = vector.load %arg6[%c0_268, %c0_269] : memref<128x128xf32, #tpu.memory_space<vmem>>, vector<128x128xf32>
    %cst_270 = arith.constant dense<0.000000e+00> : vector<2x128xf32>
    %378 = tpu.matmul %376, %377, %cst_270 {dimension_numbers = #tpu.dot_dimension_numbers<[1], [0], [0], [1], [0, 0, 1, 1], [], []>} : vector<2x128xf32>, vector<128x128xf32>, vector<2x128xf32> -> vector<2x128xf32>
    %c0_271 = arith.constant 0 : index
    %c0_272 = arith.constant 0 : index
    %379 = vector.load %arg8[%c0_271, %c0_272] : memref<1x128xf32, #tpu.memory_space<vmem>>, vector<1x128xf32>
    %380 = vector.broadcast %379 : vector<1x128xf32> to vector<2x128xf32>
    %381 = arith.addf %378, %380 : vector<2x128xf32>
    %c2_273 = arith.constant 2 : index
    %c0_274 = arith.constant 0 : index
    %c0_275 = arith.constant 0 : index
    %382 = vector.load %arg15[%c2_273, %c0_274, %c0_275] : memref<8x2x128xf32, #tpu.memory_space<vmem>>, vector<1x2x128xf32>
    %383 = vector.shape_cast %382 : vector<1x2x128xf32> to vector<2x128xf32>
    %384 = vector.shape_cast %381 : vector<2x128xf32> to vector<1x2x128xf32>
    tpu.vector_store %arg15[%c2_273, %c0_274, %c0_275], %384 {strides = array<i32>} : memref<8x2x128xf32, #tpu.memory_space<vmem>>, vector<1x2x128xf32>,
    %c3_276 = arith.constant 3 : index
    %c0_277 = arith.constant 0 : index
    %c0_278 = arith.constant 0 : index
    %385 = vector.load %arg16[%c3_276, %c0_277, %c0_278] : memref<8x2x128xf32, #tpu.memory_space<vmem>>, vector<1x2x128xf32>
    %386 = vector.shape_cast %385 : vector<1x2x128xf32> to vector<2x128xf32>
    %c0_279 = arith.constant 0 : index
    %c0_280 = arith.constant 0 : index
    %387 = vector.load %arg6[%c0_279, %c0_280] : memref<128x128xf32, #tpu.memory_space<vmem>>, vector<128x128xf32>
    %cst_281 = arith.constant dense<0.000000e+00> : vector<2x128xf32>
    %388 = tpu.matmul %386, %387, %cst_281 {dimension_numbers = #tpu.dot_dimension_numbers<[1], [0], [0], [1], [0, 0, 1, 1], [], []>} : vector<2x128xf32>, vector<128x128xf32>, vector<2x128xf32> -> vector<2x128xf32>
    %c0_282 = arith.constant 0 : index
    %c0_283 = arith.constant 0 : index
    %389 = vector.load %arg8[%c0_282, %c0_283] : memref<1x128xf32, #tpu.memory_space<vmem>>, vector<1x128xf32>
    %390 = vector.broadcast %389 : vector<1x128xf32> to vector<2x128xf32>
    %391 = arith.addf %388, %390 : vector<2x128xf32>
    %c3_284 = arith.constant 3 : index
    %c0_285 = arith.constant 0 : index
    %c0_286 = arith.constant 0 : index
    %392 = vector.load %arg15[%c3_284, %c0_285, %c0_286] : memref<8x2x128xf32, #tpu.memory_space<vmem>>, vector<1x2x128xf32>
    %393 = vector.shape_cast %392 : vector<1x2x128xf32> to vector<2x128xf32>
    %394 = vector.shape_cast %391 : vector<2x128xf32> to vector<1x2x128xf32>
    tpu.vector_store %arg15[%c3_284, %c0_285, %c0_286], %394 {strides = array<i32>} : memref<8x2x128xf32, #tpu.memory_space<vmem>>, vector<1x2x128xf32>,
    %c4_287 = arith.constant 4 : index
    %c0_288 = arith.constant 0 : index
    %c0_289 = arith.constant 0 : index
    %395 = vector.load %arg16[%c4_287, %c0_288, %c0_289] : memref<8x2x128xf32, #tpu.memory_space<vmem>>, vector<1x2x128xf32>
    %396 = vector.shape_cast %395 : vector<1x2x128xf32> to vector<2x128xf32>
    %c0_290 = arith.constant 0 : index
    %c0_291 = arith.constant 0 : index
    %397 = vector.load %arg6[%c0_290, %c0_291] : memref<128x128xf32, #tpu.memory_space<vmem>>, vector<128x128xf32>
    %cst_292 = arith.constant dense<0.000000e+00> : vector<2x128xf32>
    %398 = tpu.matmul %396, %397, %cst_292 {dimension_numbers = #tpu.dot_dimension_numbers<[1], [0], [0], [1], [0, 0, 1, 1], [], []>} : vector<2x128xf32>, vector<128x128xf32>, vector<2x128xf32> -> vector<2x128xf32>
    %c0_293 = arith.constant 0 : index
    %c0_294 = arith.constant 0 : index
    %399 = vector.load %arg8[%c0_293, %c0_294] : memref<1x128xf32, #tpu.memory_space<vmem>>, vector<1x128xf32>
    %400 = vector.broadcast %399 : vector<1x128xf32> to vector<2x128xf32>
    %401 = arith.addf %398, %400 : vector<2x128xf32>
    %c4_295 = arith.constant 4 : index
    %c0_296 = arith.constant 0 : index
    %c0_297 = arith.constant 0 : index
    %402 = vector.load %arg15[%c4_295, %c0_296, %c0_297] : memref<8x2x128xf32, #tpu.memory_space<vmem>>, vector<1x2x128xf32>
    %403 = vector.shape_cast %402 : vector<1x2x128xf32> to vector<2x128xf32>
    %404 = vector.shape_cast %401 : vector<2x128xf32> to vector<1x2x128xf32>
    tpu.vector_store %arg15[%c4_295, %c0_296, %c0_297], %404 {strides = array<i32>} : memref<8x2x128xf32, #tpu.memory_space<vmem>>, vector<1x2x128xf32>,
    %c5_298 = arith.constant 5 : index
    %c0_299 = arith.constant 0 : index
    %c0_300 = arith.constant 0 : index
    %405 = vector.load %arg16[%c5_298, %c0_299, %c0_300] : memref<8x2x128xf32, #tpu.memory_space<vmem>>, vector<1x2x128xf32>
    %406 = vector.shape_cast %405 : vector<1x2x128xf32> to vector<2x128xf32>
    %c0_301 = arith.constant 0 : index
    %c0_302 = arith.constant 0 : index
    %407 = vector.load %arg6[%c0_301, %c0_302] : memref<128x128xf32, #tpu.memory_space<vmem>>, vector<128x128xf32>
    %cst_303 = arith.constant dense<0.000000e+00> : vector<2x128xf32>
    %408 = tpu.matmul %406, %407, %cst_303 {dimension_numbers = #tpu.dot_dimension_numbers<[1], [0], [0], [1], [0, 0, 1, 1], [], []>} : vector<2x128xf32>, vector<128x128xf32>, vector<2x128xf32> -> vector<2x128xf32>
    %c0_304 = arith.constant 0 : index
    %c0_305 = arith.constant 0 : index
    %409 = vector.load %arg8[%c0_304, %c0_305] : memref<1x128xf32, #tpu.memory_space<vmem>>, vector<1x128xf32>
    %410 = vector.broadcast %409 : vector<1x128xf32> to vector<2x128xf32>
    %411 = arith.addf %408, %410 : vector<2x128xf32>
    %c5_306 = arith.constant 5 : index
    %c0_307 = arith.constant 0 : index
    %c0_308 = arith.constant 0 : index
    %412 = vector.load %arg15[%c5_306, %c0_307, %c0_308] : memref<8x2x128xf32, #tpu.memory_space<vmem>>, vector<1x2x128xf32>
    %413 = vector.shape_cast %412 : vector<1x2x128xf32> to vector<2x128xf32>
    %414 = vector.shape_cast %411 : vector<2x128xf32> to vector<1x2x128xf32>
    tpu.vector_store %arg15[%c5_306, %c0_307, %c0_308], %414 {strides = array<i32>} : memref<8x2x128xf32, #tpu.memory_space<vmem>>, vector<1x2x128xf32>,
    %c6_309 = arith.constant 6 : index
    %c0_310 = arith.constant 0 : index
    %c0_311 = arith.constant 0 : index
    %415 = vector.load %arg16[%c6_309, %c0_310, %c0_311] : memref<8x2x128xf32, #tpu.memory_space<vmem>>, vector<1x2x128xf32>
    %416 = vector.shape_cast %415 : vector<1x2x128xf32> to vector<2x128xf32>
    %c0_312 = arith.constant 0 : index
    %c0_313 = arith.constant 0 : index
    %417 = vector.load %arg6[%c0_312, %c0_313] : memref<128x128xf32, #tpu.memory_space<vmem>>, vector<128x128xf32>
    %cst_314 = arith.constant dense<0.000000e+00> : vector<2x128xf32>
    %418 = tpu.matmul %416, %417, %cst_314 {dimension_numbers = #tpu.dot_dimension_numbers<[1], [0], [0], [1], [0, 0, 1, 1], [], []>} : vector<2x128xf32>, vector<128x128xf32>, vector<2x128xf32> -> vector<2x128xf32>
    %c0_315 = arith.constant 0 : index
    %c0_316 = arith.constant 0 : index
    %419 = vector.load %arg8[%c0_315, %c0_316] : memref<1x128xf32, #tpu.memory_space<vmem>>, vector<1x128xf32>
    %420 = vector.broadcast %419 : vector<1x128xf32> to vector<2x128xf32>
    %421 = arith.addf %418, %420 : vector<2x128xf32>
    %c6_317 = arith.constant 6 : index
    %c0_318 = arith.constant 0 : index
    %c0_319 = arith.constant 0 : index
    %422 = vector.load %arg15[%c6_317, %c0_318, %c0_319] : memref<8x2x128xf32, #tpu.memory_space<vmem>>, vector<1x2x128xf32>
    %423 = vector.shape_cast %422 : vector<1x2x128xf32> to vector<2x128xf32>
    %424 = vector.shape_cast %421 : vector<2x128xf32> to vector<1x2x128xf32>
    tpu.vector_store %arg15[%c6_317, %c0_318, %c0_319], %424 {strides = array<i32>} : memref<8x2x128xf32, #tpu.memory_space<vmem>>, vector<1x2x128xf32>,
    %c7_320 = arith.constant 7 : index
    %c0_321 = arith.constant 0 : index
    %c0_322 = arith.constant 0 : index
    %425 = vector.load %arg16[%c7_320, %c0_321, %c0_322] : memref<8x2x128xf32, #tpu.memory_space<vmem>>, vector<1x2x128xf32>
    %426 = vector.shape_cast %425 : vector<1x2x128xf32> to vector<2x128xf32>
    %c0_323 = arith.constant 0 : index
    %c0_324 = arith.constant 0 : index
    %427 = vector.load %arg6[%c0_323, %c0_324] : memref<128x128xf32, #tpu.memory_space<vmem>>, vector<128x128xf32>
    %cst_325 = arith.constant dense<0.000000e+00> : vector<2x128xf32>
    %428 = tpu.matmul %426, %427, %cst_325 {dimension_numbers = #tpu.dot_dimension_numbers<[1], [0], [0], [1], [0, 0, 1, 1], [], []>} : vector<2x128xf32>, vector<128x128xf32>, vector<2x128xf32> -> vector<2x128xf32>
    %c0_326 = arith.constant 0 : index
    %c0_327 = arith.constant 0 : index
    %429 = vector.load %arg8[%c0_326, %c0_327] : memref<1x128xf32, #tpu.memory_space<vmem>>, vector<1x128xf32>
    %430 = vector.broadcast %429 : vector<1x128xf32> to vector<2x128xf32>
    %431 = arith.addf %428, %430 : vector<2x128xf32>
    %c7_328 = arith.constant 7 : index
    %c0_329 = arith.constant 0 : index
    %c0_330 = arith.constant 0 : index
    %432 = vector.load %arg15[%c7_328, %c0_329, %c0_330] : memref<8x2x128xf32, #tpu.memory_space<vmem>>, vector<1x2x128xf32>
    %433 = vector.shape_cast %432 : vector<1x2x128xf32> to vector<2x128xf32>
    %434 = vector.shape_cast %431 : vector<2x128xf32> to vector<1x2x128xf32>
    tpu.vector_store %arg15[%c7_328, %c0_329, %c0_330], %434 {strides = array<i32>} : memref<8x2x128xf32, #tpu.memory_space<vmem>>, vector<1x2x128xf32>,
    %cst_331 = arith.constant 0.000000e+00 : f32
    %435 = vector.broadcast %cst_331 : f32 to vector<2x128xf32>
    %cst_332 = arith.constant 0.000000e+00 : f32
    %436 = vector.broadcast %cst_332 : f32 to vector<2x128xf32>
    %c0_333 = arith.constant 0 : index
    %c0_334 = arith.constant 0 : index
    %c0_335 = arith.constant 0 : index
    %437 = vector.load %arg15[%c0_333, %c0_334, %c0_335] : memref<8x2x128xf32, #tpu.memory_space<vmem>>, vector<1x2x128xf32>
    %438 = vector.shape_cast %437 : vector<1x2x128xf32> to vector<2x128xf32>
    %c0_336 = arith.constant 0 : index
    %c0_337 = arith.constant 0 : index
    %439 = vector.load %arg7[%c0_336, %c0_337] : memref<128x128xf32, #tpu.memory_space<vmem>>, vector<128x128xf32>
    %cst_338 = arith.constant dense<0.000000e+00> : vector<2x128xf32>
    %440 = tpu.matmul %435, %439, %cst_338 {dimension_numbers = #tpu.dot_dimension_numbers<[1], [0], [0], [1], [0, 0, 1, 1], [], []>} : vector<2x128xf32>, vector<128x128xf32>, vector<2x128xf32> -> vector<2x128xf32>
    %441 = arith.addf %438, %440 : vector<2x128xf32>
    %442 = math.tanh %441 : vector<2x128xf32>
    %443 = arith.negf %441 : vector<2x128xf32>
    %444 = math.exp %443 : vector<2x128xf32>
    %cst_339 = arith.constant 1.000000e+00 : f32
    %445 = vector.broadcast %cst_339 : f32 to vector<2x128xf32>
    %446 = arith.addf %445, %444 : vector<2x128xf32>
    %447 = arith.divf %445, %446 : vector<2x128xf32>
    %448 = arith.select %5, %442, %447 : vector<2x128xi1>, vector<2x128xf32>
    %c32_i32_340 = arith.constant 32 : i32
    %449 = tpu.dynamic_rotate %448 by %c32_i32_340 dim 1 : vector<2x128xf32>, i32 -> vector<2x128xf32>
    %c96_i32_341 = arith.constant 96 : i32
    %450 = tpu.dynamic_rotate %448 by %c96_i32_341 dim 1 : vector<2x128xf32>, i32 -> vector<2x128xf32>
    %451 = arith.mulf %449, %450 : vector<2x128xf32>
    %452 = arith.mulf %448, %436 : vector<2x128xf32>
    %453 = arith.addf %452, %451 : vector<2x128xf32>
    %c64_i32_342 = arith.constant 64 : i32
    %454 = tpu.dynamic_rotate %448 by %c64_i32_342 dim 1 : vector<2x128xf32>, i32 -> vector<2x128xf32>
    %455 = math.tanh %453 : vector<2x128xf32>
    %456 = arith.mulf %454, %455 : vector<2x128xf32>
    %c0_343 = arith.constant 0 : index
    %c0_344 = arith.constant 0 : index
    %c0_345 = arith.constant 0 : index
    %457 = vector.load %arg16[%c0_343, %c0_344, %c0_345] : memref<8x2x128xf32, #tpu.memory_space<vmem>>, vector<1x2x128xf32>
    %458 = vector.shape_cast %457 : vector<1x2x128xf32> to vector<2x128xf32>
    %459 = vector.shape_cast %456 : vector<2x128xf32> to vector<1x2x128xf32>
    tpu.vector_store %arg16[%c0_343, %c0_344, %c0_345], %459 {strides = array<i32>} : memref<8x2x128xf32, #tpu.memory_space<vmem>>, vector<1x2x128xf32>,
    %c1_346 = arith.constant 1 : index
    %c0_347 = arith.constant 0 : index
    %c0_348 = arith.constant 0 : index
    %460 = vector.load %arg15[%c1_346, %c0_347, %c0_348] : memref<8x2x128xf32, #tpu.memory_space<vmem>>, vector<1x2x128xf32>
    %461 = vector.shape_cast %460 : vector<1x2x128xf32> to vector<2x128xf32>
    %c0_349 = arith.constant 0 : index
    %c0_350 = arith.constant 0 : index
    %462 = vector.load %arg7[%c0_349, %c0_350] : memref<128x128xf32, #tpu.memory_space<vmem>>, vector<128x128xf32>
    %cst_351 = arith.constant dense<0.000000e+00> : vector<2x128xf32>
    %463 = tpu.matmul %456, %462, %cst_351 {dimension_numbers = #tpu.dot_dimension_numbers<[1], [0], [0], [1], [0, 0, 1, 1], [], []>} : vector<2x128xf32>, vector<128x128xf32>, vector<2x128xf32> -> vector<2x128xf32>
    %464 = arith.addf %461, %463 : vector<2x128xf32>
    %465 = math.tanh %464 : vector<2x128xf32>
    %466 = arith.negf %464 : vector<2x128xf32>
    %467 = math.exp %466 : vector<2x128xf32>
    %cst_352 = arith.constant 1.000000e+00 : f32
    %468 = vector.broadcast %cst_352 : f32 to vector<2x128xf32>
    %469 = arith.addf %468, %467 : vector<2x128xf32>
    %470 = arith.divf %468, %469 : vector<2x128xf32>
    %471 = arith.select %5, %465, %470 : vector<2x128xi1>, vector<2x128xf32>
    %c32_i32_353 = arith.constant 32 : i32
    %472 = tpu.dynamic_rotate %471 by %c32_i32_353 dim 1 : vector<2x128xf32>, i32 -> vector<2x128xf32>
    %c96_i32_354 = arith.constant 96 : i32
    %473 = tpu.dynamic_rotate %471 by %c96_i32_354 dim 1 : vector<2x128xf32>, i32 -> vector<2x128xf32>
    %474 = arith.mulf %472, %473 : vector<2x128xf32>
    %475 = arith.mulf %471, %453 : vector<2x128xf32>
    %476 = arith.addf %475, %474 : vector<2x128xf32>
    %c64_i32_355 = arith.constant 64 : i32
    %477 = tpu.dynamic_rotate %471 by %c64_i32_355 dim 1 : vector<2x128xf32>, i32 -> vector<2x128xf32>
    %478 = math.tanh %476 : vector<2x128xf32>
    %479 = arith.mulf %477, %478 : vector<2x128xf32>
    %c1_356 = arith.constant 1 : index
    %c0_357 = arith.constant 0 : index
    %c0_358 = arith.constant 0 : index
    %480 = vector.load %arg16[%c1_356, %c0_357, %c0_358] : memref<8x2x128xf32, #tpu.memory_space<vmem>>, vector<1x2x128xf32>
    %481 = vector.shape_cast %480 : vector<1x2x128xf32> to vector<2x128xf32>
    %482 = vector.shape_cast %479 : vector<2x128xf32> to vector<1x2x128xf32>
    tpu.vector_store %arg16[%c1_356, %c0_357, %c0_358], %482 {strides = array<i32>} : memref<8x2x128xf32, #tpu.memory_space<vmem>>, vector<1x2x128xf32>,
    %c2_359 = arith.constant 2 : index
    %c0_360 = arith.constant 0 : index
    %c0_361 = arith.constant 0 : index
    %483 = vector.load %arg15[%c2_359, %c0_360, %c0_361] : memref<8x2x128xf32, #tpu.memory_space<vmem>>, vector<1x2x128xf32>
    %484 = vector.shape_cast %483 : vector<1x2x128xf32> to vector<2x128xf32>
    %c0_362 = arith.constant 0 : index
    %c0_363 = arith.constant 0 : index
    %485 = vector.load %arg7[%c0_362, %c0_363] : memref<128x128xf32, #tpu.memory_space<vmem>>, vector<128x128xf32>
    %cst_364 = arith.constant dense<0.000000e+00> : vector<2x128xf32>
    %486 = tpu.matmul %479, %485, %cst_364 {dimension_numbers = #tpu.dot_dimension_numbers<[1], [0], [0], [1], [0, 0, 1, 1], [], []>} : vector<2x128xf32>, vector<128x128xf32>, vector<2x128xf32> -> vector<2x128xf32>
    %487 = arith.addf %484, %486 : vector<2x128xf32>
    %488 = math.tanh %487 : vector<2x128xf32>
    %489 = arith.negf %487 : vector<2x128xf32>
    %490 = math.exp %489 : vector<2x128xf32>
    %cst_365 = arith.constant 1.000000e+00 : f32
    %491 = vector.broadcast %cst_365 : f32 to vector<2x128xf32>
    %492 = arith.addf %491, %490 : vector<2x128xf32>
    %493 = arith.divf %491, %492 : vector<2x128xf32>
    %494 = arith.select %5, %488, %493 : vector<2x128xi1>, vector<2x128xf32>
    %c32_i32_366 = arith.constant 32 : i32
    %495 = tpu.dynamic_rotate %494 by %c32_i32_366 dim 1 : vector<2x128xf32>, i32 -> vector<2x128xf32>
    %c96_i32_367 = arith.constant 96 : i32
    %496 = tpu.dynamic_rotate %494 by %c96_i32_367 dim 1 : vector<2x128xf32>, i32 -> vector<2x128xf32>
    %497 = arith.mulf %495, %496 : vector<2x128xf32>
    %498 = arith.mulf %494, %476 : vector<2x128xf32>
    %499 = arith.addf %498, %497 : vector<2x128xf32>
    %c64_i32_368 = arith.constant 64 : i32
    %500 = tpu.dynamic_rotate %494 by %c64_i32_368 dim 1 : vector<2x128xf32>, i32 -> vector<2x128xf32>
    %501 = math.tanh %499 : vector<2x128xf32>
    %502 = arith.mulf %500, %501 : vector<2x128xf32>
    %c2_369 = arith.constant 2 : index
    %c0_370 = arith.constant 0 : index
    %c0_371 = arith.constant 0 : index
    %503 = vector.load %arg16[%c2_369, %c0_370, %c0_371] : memref<8x2x128xf32, #tpu.memory_space<vmem>>, vector<1x2x128xf32>
    %504 = vector.shape_cast %503 : vector<1x2x128xf32> to vector<2x128xf32>
    %505 = vector.shape_cast %502 : vector<2x128xf32> to vector<1x2x128xf32>
    tpu.vector_store %arg16[%c2_369, %c0_370, %c0_371], %505 {strides = array<i32>} : memref<8x2x128xf32, #tpu.memory_space<vmem>>, vector<1x2x128xf32>,
    %c3_372 = arith.constant 3 : index
    %c0_373 = arith.constant 0 : index
    %c0_374 = arith.constant 0 : index
    %506 = vector.load %arg15[%c3_372, %c0_373, %c0_374] : memref<8x2x128xf32, #tpu.memory_space<vmem>>, vector<1x2x128xf32>
    %507 = vector.shape_cast %506 : vector<1x2x128xf32> to vector<2x128xf32>
    %c0_375 = arith.constant 0 : index
    %c0_376 = arith.constant 0 : index
    %508 = vector.load %arg7[%c0_375, %c0_376] : memref<128x128xf32, #tpu.memory_space<vmem>>, vector<128x128xf32>
    %cst_377 = arith.constant dense<0.000000e+00> : vector<2x128xf32>
    %509 = tpu.matmul %502, %508, %cst_377 {dimension_numbers = #tpu.dot_dimension_numbers<[1], [0], [0], [1], [0, 0, 1, 1], [], []>} : vector<2x128xf32>, vector<128x128xf32>, vector<2x128xf32> -> vector<2x128xf32>
    %510 = arith.addf %507, %509 : vector<2x128xf32>
    %511 = math.tanh %510 : vector<2x128xf32>
    %512 = arith.negf %510 : vector<2x128xf32>
    %513 = math.exp %512 : vector<2x128xf32>
    %cst_378 = arith.constant 1.000000e+00 : f32
    %514 = vector.broadcast %cst_378 : f32 to vector<2x128xf32>
    %515 = arith.addf %514, %513 : vector<2x128xf32>
    %516 = arith.divf %514, %515 : vector<2x128xf32>
    %517 = arith.select %5, %511, %516 : vector<2x128xi1>, vector<2x128xf32>
    %c32_i32_379 = arith.constant 32 : i32
    %518 = tpu.dynamic_rotate %517 by %c32_i32_379 dim 1 : vector<2x128xf32>, i32 -> vector<2x128xf32>
    %c96_i32_380 = arith.constant 96 : i32
    %519 = tpu.dynamic_rotate %517 by %c96_i32_380 dim 1 : vector<2x128xf32>, i32 -> vector<2x128xf32>
    %520 = arith.mulf %518, %519 : vector<2x128xf32>
    %521 = arith.mulf %517, %499 : vector<2x128xf32>
    %522 = arith.addf %521, %520 : vector<2x128xf32>
    %c64_i32_381 = arith.constant 64 : i32
    %523 = tpu.dynamic_rotate %517 by %c64_i32_381 dim 1 : vector<2x128xf32>, i32 -> vector<2x128xf32>
    %524 = math.tanh %522 : vector<2x128xf32>
    %525 = arith.mulf %523, %524 : vector<2x128xf32>
    %c3_382 = arith.constant 3 : index
    %c0_383 = arith.constant 0 : index
    %c0_384 = arith.constant 0 : index
    %526 = vector.load %arg16[%c3_382, %c0_383, %c0_384] : memref<8x2x128xf32, #tpu.memory_space<vmem>>, vector<1x2x128xf32>
    %527 = vector.shape_cast %526 : vector<1x2x128xf32> to vector<2x128xf32>
    %528 = vector.shape_cast %525 : vector<2x128xf32> to vector<1x2x128xf32>
    tpu.vector_store %arg16[%c3_382, %c0_383, %c0_384], %528 {strides = array<i32>} : memref<8x2x128xf32, #tpu.memory_space<vmem>>, vector<1x2x128xf32>,
    %c4_385 = arith.constant 4 : index
    %c0_386 = arith.constant 0 : index
    %c0_387 = arith.constant 0 : index
    %529 = vector.load %arg15[%c4_385, %c0_386, %c0_387] : memref<8x2x128xf32, #tpu.memory_space<vmem>>, vector<1x2x128xf32>
    %530 = vector.shape_cast %529 : vector<1x2x128xf32> to vector<2x128xf32>
    %c0_388 = arith.constant 0 : index
    %c0_389 = arith.constant 0 : index
    %531 = vector.load %arg7[%c0_388, %c0_389] : memref<128x128xf32, #tpu.memory_space<vmem>>, vector<128x128xf32>
    %cst_390 = arith.constant dense<0.000000e+00> : vector<2x128xf32>
    %532 = tpu.matmul %525, %531, %cst_390 {dimension_numbers = #tpu.dot_dimension_numbers<[1], [0], [0], [1], [0, 0, 1, 1], [], []>} : vector<2x128xf32>, vector<128x128xf32>, vector<2x128xf32> -> vector<2x128xf32>
    %533 = arith.addf %530, %532 : vector<2x128xf32>
    %534 = math.tanh %533 : vector<2x128xf32>
    %535 = arith.negf %533 : vector<2x128xf32>
    %536 = math.exp %535 : vector<2x128xf32>
    %cst_391 = arith.constant 1.000000e+00 : f32
    %537 = vector.broadcast %cst_391 : f32 to vector<2x128xf32>
    %538 = arith.addf %537, %536 : vector<2x128xf32>
    %539 = arith.divf %537, %538 : vector<2x128xf32>
    %540 = arith.select %5, %534, %539 : vector<2x128xi1>, vector<2x128xf32>
    %c32_i32_392 = arith.constant 32 : i32
    %541 = tpu.dynamic_rotate %540 by %c32_i32_392 dim 1 : vector<2x128xf32>, i32 -> vector<2x128xf32>
    %c96_i32_393 = arith.constant 96 : i32
    %542 = tpu.dynamic_rotate %540 by %c96_i32_393 dim 1 : vector<2x128xf32>, i32 -> vector<2x128xf32>
    %543 = arith.mulf %541, %542 : vector<2x128xf32>
    %544 = arith.mulf %540, %522 : vector<2x128xf32>
    %545 = arith.addf %544, %543 : vector<2x128xf32>
    %c64_i32_394 = arith.constant 64 : i32
    %546 = tpu.dynamic_rotate %540 by %c64_i32_394 dim 1 : vector<2x128xf32>, i32 -> vector<2x128xf32>
    %547 = math.tanh %545 : vector<2x128xf32>
    %548 = arith.mulf %546, %547 : vector<2x128xf32>
    %c4_395 = arith.constant 4 : index
    %c0_396 = arith.constant 0 : index
    %c0_397 = arith.constant 0 : index
    %549 = vector.load %arg16[%c4_395, %c0_396, %c0_397] : memref<8x2x128xf32, #tpu.memory_space<vmem>>, vector<1x2x128xf32>
    %550 = vector.shape_cast %549 : vector<1x2x128xf32> to vector<2x128xf32>
    %551 = vector.shape_cast %548 : vector<2x128xf32> to vector<1x2x128xf32>
    tpu.vector_store %arg16[%c4_395, %c0_396, %c0_397], %551 {strides = array<i32>} : memref<8x2x128xf32, #tpu.memory_space<vmem>>, vector<1x2x128xf32>,
    %c5_398 = arith.constant 5 : index
    %c0_399 = arith.constant 0 : index
    %c0_400 = arith.constant 0 : index
    %552 = vector.load %arg15[%c5_398, %c0_399, %c0_400] : memref<8x2x128xf32, #tpu.memory_space<vmem>>, vector<1x2x128xf32>
    %553 = vector.shape_cast %552 : vector<1x2x128xf32> to vector<2x128xf32>
    %c0_401 = arith.constant 0 : index
    %c0_402 = arith.constant 0 : index
    %554 = vector.load %arg7[%c0_401, %c0_402] : memref<128x128xf32, #tpu.memory_space<vmem>>, vector<128x128xf32>
    %cst_403 = arith.constant dense<0.000000e+00> : vector<2x128xf32>
    %555 = tpu.matmul %548, %554, %cst_403 {dimension_numbers = #tpu.dot_dimension_numbers<[1], [0], [0], [1], [0, 0, 1, 1], [], []>} : vector<2x128xf32>, vector<128x128xf32>, vector<2x128xf32> -> vector<2x128xf32>
    %556 = arith.addf %553, %555 : vector<2x128xf32>
    %557 = math.tanh %556 : vector<2x128xf32>
    %558 = arith.negf %556 : vector<2x128xf32>
    %559 = math.exp %558 : vector<2x128xf32>
    %cst_404 = arith.constant 1.000000e+00 : f32
    %560 = vector.broadcast %cst_404 : f32 to vector<2x128xf32>
    %561 = arith.addf %560, %559 : vector<2x128xf32>
    %562 = arith.divf %560, %561 : vector<2x128xf32>
    %563 = arith.select %5, %557, %562 : vector<2x128xi1>, vector<2x128xf32>
    %c32_i32_405 = arith.constant 32 : i32
    %564 = tpu.dynamic_rotate %563 by %c32_i32_405 dim 1 : vector<2x128xf32>, i32 -> vector<2x128xf32>
    %c96_i32_406 = arith.constant 96 : i32
    %565 = tpu.dynamic_rotate %563 by %c96_i32_406 dim 1 : vector<2x128xf32>, i32 -> vector<2x128xf32>
    %566 = arith.mulf %564, %565 : vector<2x128xf32>
    %567 = arith.mulf %563, %545 : vector<2x128xf32>
    %568 = arith.addf %567, %566 : vector<2x128xf32>
    %c64_i32_407 = arith.constant 64 : i32
    %569 = tpu.dynamic_rotate %563 by %c64_i32_407 dim 1 : vector<2x128xf32>, i32 -> vector<2x128xf32>
    %570 = math.tanh %568 : vector<2x128xf32>
    %571 = arith.mulf %569, %570 : vector<2x128xf32>
    %c5_408 = arith.constant 5 : index
    %c0_409 = arith.constant 0 : index
    %c0_410 = arith.constant 0 : index
    %572 = vector.load %arg16[%c5_408, %c0_409, %c0_410] : memref<8x2x128xf32, #tpu.memory_space<vmem>>, vector<1x2x128xf32>
    %573 = vector.shape_cast %572 : vector<1x2x128xf32> to vector<2x128xf32>
    %574 = vector.shape_cast %571 : vector<2x128xf32> to vector<1x2x128xf32>
    tpu.vector_store %arg16[%c5_408, %c0_409, %c0_410], %574 {strides = array<i32>} : memref<8x2x128xf32, #tpu.memory_space<vmem>>, vector<1x2x128xf32>,
    %c6_411 = arith.constant 6 : index
    %c0_412 = arith.constant 0 : index
    %c0_413 = arith.constant 0 : index
    %575 = vector.load %arg15[%c6_411, %c0_412, %c0_413] : memref<8x2x128xf32, #tpu.memory_space<vmem>>, vector<1x2x128xf32>
    %576 = vector.shape_cast %575 : vector<1x2x128xf32> to vector<2x128xf32>
    %c0_414 = arith.constant 0 : index
    %c0_415 = arith.constant 0 : index
    %577 = vector.load %arg7[%c0_414, %c0_415] : memref<128x128xf32, #tpu.memory_space<vmem>>, vector<128x128xf32>
    %cst_416 = arith.constant dense<0.000000e+00> : vector<2x128xf32>
    %578 = tpu.matmul %571, %577, %cst_416 {dimension_numbers = #tpu.dot_dimension_numbers<[1], [0], [0], [1], [0, 0, 1, 1], [], []>} : vector<2x128xf32>, vector<128x128xf32>, vector<2x128xf32> -> vector<2x128xf32>
    %579 = arith.addf %576, %578 : vector<2x128xf32>
    %580 = math.tanh %579 : vector<2x128xf32>
    %581 = arith.negf %579 : vector<2x128xf32>
    %582 = math.exp %581 : vector<2x128xf32>
    %cst_417 = arith.constant 1.000000e+00 : f32
    %583 = vector.broadcast %cst_417 : f32 to vector<2x128xf32>
    %584 = arith.addf %583, %582 : vector<2x128xf32>
    %585 = arith.divf %583, %584 : vector<2x128xf32>
    %586 = arith.select %5, %580, %585 : vector<2x128xi1>, vector<2x128xf32>
    %c32_i32_418 = arith.constant 32 : i32
    %587 = tpu.dynamic_rotate %586 by %c32_i32_418 dim 1 : vector<2x128xf32>, i32 -> vector<2x128xf32>
    %c96_i32_419 = arith.constant 96 : i32
    %588 = tpu.dynamic_rotate %586 by %c96_i32_419 dim 1 : vector<2x128xf32>, i32 -> vector<2x128xf32>
    %589 = arith.mulf %587, %588 : vector<2x128xf32>
    %590 = arith.mulf %586, %568 : vector<2x128xf32>
    %591 = arith.addf %590, %589 : vector<2x128xf32>
    %c64_i32_420 = arith.constant 64 : i32
    %592 = tpu.dynamic_rotate %586 by %c64_i32_420 dim 1 : vector<2x128xf32>, i32 -> vector<2x128xf32>
    %593 = math.tanh %591 : vector<2x128xf32>
    %594 = arith.mulf %592, %593 : vector<2x128xf32>
    %c6_421 = arith.constant 6 : index
    %c0_422 = arith.constant 0 : index
    %c0_423 = arith.constant 0 : index
    %595 = vector.load %arg16[%c6_421, %c0_422, %c0_423] : memref<8x2x128xf32, #tpu.memory_space<vmem>>, vector<1x2x128xf32>
    %596 = vector.shape_cast %595 : vector<1x2x128xf32> to vector<2x128xf32>
    %597 = vector.shape_cast %594 : vector<2x128xf32> to vector<1x2x128xf32>
    tpu.vector_store %arg16[%c6_421, %c0_422, %c0_423], %597 {strides = array<i32>} : memref<8x2x128xf32, #tpu.memory_space<vmem>>, vector<1x2x128xf32>,
    %c7_424 = arith.constant 7 : index
    %c0_425 = arith.constant 0 : index
    %c0_426 = arith.constant 0 : index
    %598 = vector.load %arg15[%c7_424, %c0_425, %c0_426] : memref<8x2x128xf32, #tpu.memory_space<vmem>>, vector<1x2x128xf32>
    %599 = vector.shape_cast %598 : vector<1x2x128xf32> to vector<2x128xf32>
    %c0_427 = arith.constant 0 : index
    %c0_428 = arith.constant 0 : index
    %600 = vector.load %arg7[%c0_427, %c0_428] : memref<128x128xf32, #tpu.memory_space<vmem>>, vector<128x128xf32>
    %cst_429 = arith.constant dense<0.000000e+00> : vector<2x128xf32>
    %601 = tpu.matmul %594, %600, %cst_429 {dimension_numbers = #tpu.dot_dimension_numbers<[1], [0], [0], [1], [0, 0, 1, 1], [], []>} : vector<2x128xf32>, vector<128x128xf32>, vector<2x128xf32> -> vector<2x128xf32>
    %602 = arith.addf %599, %601 : vector<2x128xf32>
    %603 = math.tanh %602 : vector<2x128xf32>
    %604 = arith.negf %602 : vector<2x128xf32>
    %605 = math.exp %604 : vector<2x128xf32>
    %cst_430 = arith.constant 1.000000e+00 : f32
    %606 = vector.broadcast %cst_430 : f32 to vector<2x128xf32>
    %607 = arith.addf %606, %605 : vector<2x128xf32>
    %608 = arith.divf %606, %607 : vector<2x128xf32>
    %609 = arith.select %5, %603, %608 : vector<2x128xi1>, vector<2x128xf32>
    %c32_i32_431 = arith.constant 32 : i32
    %610 = tpu.dynamic_rotate %609 by %c32_i32_431 dim 1 : vector<2x128xf32>, i32 -> vector<2x128xf32>
    %c96_i32_432 = arith.constant 96 : i32
    %611 = tpu.dynamic_rotate %609 by %c96_i32_432 dim 1 : vector<2x128xf32>, i32 -> vector<2x128xf32>
    %612 = arith.mulf %610, %611 : vector<2x128xf32>
    %613 = arith.mulf %609, %591 : vector<2x128xf32>
    %614 = arith.addf %613, %612 : vector<2x128xf32>
    %c64_i32_433 = arith.constant 64 : i32
    %615 = tpu.dynamic_rotate %609 by %c64_i32_433 dim 1 : vector<2x128xf32>, i32 -> vector<2x128xf32>
    %616 = math.tanh %614 : vector<2x128xf32>
    %617 = arith.mulf %615, %616 : vector<2x128xf32>
    %c7_434 = arith.constant 7 : index
    %c0_435 = arith.constant 0 : index
    %c0_436 = arith.constant 0 : index
    %618 = vector.load %arg16[%c7_434, %c0_435, %c0_436] : memref<8x2x128xf32, #tpu.memory_space<vmem>>, vector<1x2x128xf32>
    %619 = vector.shape_cast %618 : vector<1x2x128xf32> to vector<2x128xf32>
    %620 = vector.shape_cast %617 : vector<2x128xf32> to vector<1x2x128xf32>
    tpu.vector_store %arg16[%c7_434, %c0_435, %c0_436], %620 {strides = array<i32>} : memref<8x2x128xf32, #tpu.memory_space<vmem>>, vector<1x2x128xf32>,
    %c1_437 = arith.constant 1 : index
    %c0_438 = arith.constant 0 : index
    %c0_439 = arith.constant 0 : index
    %621 = vector.load %arg17[%c1_437, %c0_438, %c0_439] : memref<2x2x128xf32, #tpu.memory_space<vmem>>, vector<1x2x128xf32>
    %622 = vector.shape_cast %621 : vector<1x2x128xf32> to vector<2x128xf32>
    %623 = vector.shape_cast %617 : vector<2x128xf32> to vector<1x2x128xf32>
    tpu.vector_store %arg17[%c1_437, %c0_438, %c0_439], %623 {strides = array<i32>} : memref<2x2x128xf32, #tpu.memory_space<vmem>>, vector<1x2x128xf32>,
    %c0_440 = arith.constant 0 : index
    %c0_441 = arith.constant 0 : index
    %c0_442 = arith.constant 0 : index
    %624 = vector.load %arg17[%c0_440, %c0_441, %c0_442] : memref<2x2x128xf32, #tpu.memory_space<vmem>>, vector<1x2x128xf32>
    %625 = vector.shape_cast %624 : vector<1x2x128xf32> to vector<2x128xf32>
    %c1_443 = arith.constant 1 : index
    %c0_444 = arith.constant 0 : index
    %c0_445 = arith.constant 0 : index
    %626 = vector.load %arg17[%c1_443, %c0_444, %c0_445] : memref<2x2x128xf32, #tpu.memory_space<vmem>>, vector<1x2x128xf32>
    %627 = vector.shape_cast %626 : vector<1x2x128xf32> to vector<2x128xf32>
    %628 = vector.extract_strided_slice %625 {offsets = [0, 0], sizes = [1, 128], strides = [1, 1]} : vector<2x128xf32> to vector<1x128xf32>
    %629 = vector.extract_strided_slice %627 {offsets = [0, 0], sizes = [1, 128], strides = [1, 1]} : vector<2x128xf32> to vector<1x128xf32>
    %630 = tpu.concatenate %628, %629 in 0 : vector<1x128xf32>, vector<1x128xf32> -> vector<2x128xf32>
    %cst_446 = arith.constant 0.000000e+00 : f32
    %631 = vector.broadcast %cst_446 : f32 to vector<2x128xf32>
    %632 = arith.cmpf ogt, %630, %631 : vector<2x128xf32>
    %cst_447 = arith.constant 0.00999999977 : f32
    %633 = vector.broadcast %cst_447 : f32 to vector<2x128xf32>
    %634 = arith.mulf %633, %630 : vector<2x128xf32>
    %635 = arith.select %632, %630, %634 : vector<2x128xi1>, vector<2x128xf32>
    %c0_448 = arith.constant 0 : index
    %c0_449 = arith.constant 0 : index
    %636 = vector.load %arg9[%c0_448, %c0_449] : memref<128x32xf32, #tpu.memory_space<vmem>>, vector<128x32xf32>
    %cst_450 = arith.constant dense<0.000000e+00> : vector<2x32xf32>
    %637 = tpu.matmul %635, %636, %cst_450 {dimension_numbers = #tpu.dot_dimension_numbers<[1], [0], [0], [1], [0, 0, 1, 1], [], []>} : vector<2x128xf32>, vector<128x32xf32>, vector<2x32xf32> -> vector<2x32xf32>
    %638 = vector.extract_strided_slice %625 {offsets = [1, 0], sizes = [1, 128], strides = [1, 1]} : vector<2x128xf32> to vector<1x128xf32>
    %639 = vector.extract_strided_slice %627 {offsets = [1, 0], sizes = [1, 128], strides = [1, 1]} : vector<2x128xf32> to vector<1x128xf32>
    %640 = tpu.concatenate %638, %639 in 0 : vector<1x128xf32>, vector<1x128xf32> -> vector<2x128xf32>
    %cst_451 = arith.constant 0.000000e+00 : f32
    %641 = vector.broadcast %cst_451 : f32 to vector<2x128xf32>
    %642 = arith.cmpf ogt, %640, %641 : vector<2x128xf32>
    %cst_452 = arith.constant 0.00999999977 : f32
    %643 = vector.broadcast %cst_452 : f32 to vector<2x128xf32>
    %644 = arith.mulf %643, %640 : vector<2x128xf32>
    %645 = arith.select %642, %640, %644 : vector<2x128xi1>, vector<2x128xf32>
    %c0_453 = arith.constant 0 : index
    %c0_454 = arith.constant 0 : index
    %646 = vector.load %arg10[%c0_453, %c0_454] : memref<128x32xf32, #tpu.memory_space<vmem>>, vector<128x32xf32>
    %cst_455 = arith.constant dense<0.000000e+00> : vector<2x32xf32>
    %647 = tpu.matmul %645, %646, %cst_455 {dimension_numbers = #tpu.dot_dimension_numbers<[1], [0], [0], [1], [0, 0, 1, 1], [], []>} : vector<2x128xf32>, vector<128x32xf32>, vector<2x32xf32> -> vector<2x32xf32>
    %648 = arith.addf %637, %647 : vector<2x32xf32>
    %c0_456 = arith.constant 0 : index
    %c0_457 = arith.constant 0 : index
    %649 = vector.load %arg11[%c0_456, %c0_457] : memref<1x32xf32, #tpu.memory_space<vmem>>, vector<1x32xf32>
    %650 = vector.broadcast %649 : vector<1x32xf32> to vector<2x32xf32>
    %651 = arith.addf %648, %650 : vector<2x32xf32>
    %c0_458 = arith.constant 0 : index
    %c0_459 = arith.constant 0 : index
    %652 = vector.load %arg12[%c0_458, %c0_459] : memref<32x8xf32, #tpu.memory_space<vmem>>, vector<32x8xf32>
    %cst_460 = arith.constant dense<0.000000e+00> : vector<2x8xf32>
    %653 = tpu.matmul %651, %652, %cst_460 {dimension_numbers = #tpu.dot_dimension_numbers<[1], [0], [0], [1], [0, 0, 1, 1], [], []>} : vector<2x32xf32>, vector<32x8xf32>, vector<2x8xf32> -> vector<2x8xf32>
    %c0_461 = arith.constant 0 : index
    %c0_462 = arith.constant 0 : index
    %654 = vector.load %arg13[%c0_461, %c0_462] : memref<1x8xf32, #tpu.memory_space<vmem>>, vector<1x8xf32>
    %655 = vector.broadcast %654 : vector<1x8xf32> to vector<2x8xf32>
    %656 = arith.addf %653, %655 : vector<2x8xf32>
    %cst_463 = arith.constant 0.000000e+00 : f32
    %657 = vector.broadcast %cst_463 : f32 to vector<2x8xf32>
    %658 = arith.cmpf ogt, %656, %657 : vector<2x8xf32>
    %cst_464 = arith.constant 0.00999999977 : f32
    %659 = vector.broadcast %cst_464 : f32 to vector<2x8xf32>
    %660 = arith.mulf %659, %656 : vector<2x8xf32>
    %661 = arith.select %658, %656, %660 : vector<2x8xi1>, vector<2x8xf32>
    %c0_465 = arith.constant 0 : index
    %c0_466 = arith.constant 0 : index
    %662 = vector.load %arg14[%c0_465, %c0_466] : memref<2x8xf32, #tpu.memory_space<vmem>>, vector<2x8xf32>
    tpu.vector_store %arg14[%c0_465, %c0_466], %661 {strides = array<i32>} : memref<2x8xf32, #tpu.memory_space<vmem>>, vector<2x8xf32>,
    return
  }
}

</mosaic_0001>

<bundles_post_ra>
// kernel: bonds_lstm_forward.1
= control target key start
LH: loop header
LB: loop body
LE: loop exit
PB: predicated region body
PF: predicated region fallthrough
CT: control target
= control target key end

     0   :  { %vm60_vm0 = vcmask 130048   ;;  %s3733_s0 = inlined_call_operand.vmem [shape: f32[8,2,16], index: 0, kind: input, shape index: {}]   ;;  %s3734_s1 = inlined_call_operand.vmem [shape: f32[16,32], index: 1, kind: input, shape index: {}]   ;;  %s3735_s2 = inlined_call_operand.vmem [shape: f32[1,32], index: 2, kind: input, shape index: {}]   ;;  %s3736_s3 = inlined_call_operand.vmem [shape: f32[32,128], index: 3, kind: input, shape index: {}]   ;;  %s3737_s4 = inlined_call_operand.vmem [shape: f32[128,128], index: 4, kind: input, shape index: {}]   ;;  %s3738_s5 = inlined_call_operand.vmem [shape: f32[1,128], index: 5, kind: input, shape index: {}]   ;;  %s3739_s6 = inlined_call_operand.vmem [shape: f32[128,128], index: 6, kind: input, shape index: {}]   ;;  %s3740_s7 = inlined_call_operand.vmem [shape: f32[128,128], index: 7, kind: input, shape index: {}]   ;;  %s3741_s8 = inlined_call_operand.vmem [shape: f32[1,128], index: 8, kind: input, shape index: {}]   ;;  %s3742_s9 = inlined_call_operand.vmem [shape: f32[128,32], index: 9, kind: input, shape index: {}]   ;;  %s3743_s10 = inlined_call_operand.vmem [shape: f32[128,32], index: 10, kind: input, shape index: {}]   ;;  %s3744_s11 = inlined_call_operand.vmem [shape: f32[1,32], index: 11, kind: input, shape index: {}]   ;;  %s3745_s12 = inlined_call_operand.vmem [shape: f32[32,8], index: 12, kind: input, shape index: {}]   ;;  %s3746_s13 = inlined_call_operand.vmem [shape: f32[1,8], index: 13, kind: input, shape index: {}]   ;;  %s3747_s14 = inlined_call_operand.hbm [shape: f32[2,8], index: 14, kind: output, shape index: {}]  }
   0x1   :  { %v2525_v0 = vld [vmem:[%s3734_s1 + $0x8] sm:$0xff]  ;;  %v2530_v1 = vld [vmem:[%s3734_s1] sm:$0xff]  ;;  %v2546_v4 = vld [vmem:[%s3736_s3 + $0x18] sm:$0xff] }
   0x2   :  { %78 = vmatpush.msra.mxu3 %v2525_v0  ;;  %v53_v2 = vld [vmem:[%s3733_s0] sm:$0x3]  ;;  %346 = vmatpush.msra.mxu0 %v2525_v0  ;;  %v2228_v3 = vld [vmem:[%s3733_s0 + $0x8] sm:$0x3]  ;;  %v2553_v5 = vld [vmem:[%s3737_s4 + $0x78] sm:$0xff] }
   0x3   :  { %145 = vmatpush.msra.mxu2 %v2525_v0  ;;  %v2558_v6 = vld [vmem:[%s3737_s4 + $0x70] sm:$0xff]  ;;  %111 = vmatpush.msra.mxu1 %v2546_v4  ;;  %v2566_v7 = vld [vmem:[%s3737_s4 + $0x68] sm:$0xff]  ;;  %v2574_v8 = vld [vmem:[%s3737_s4 + $0x60] sm:$0xff] }
   0x4   :  { %79 = vmatpush.msra.mxu3 %v2530_v1  ;;  %347 = vmatpush.msra.mxu0 %v2530_v1  ;;  %v2581_v9 = vld [vmem:[%s3737_s4 + $0x58] sm:$0xff] }
   0x5   :  { %2217 = vmatmul.msk.f32.vlgmr.msra.gmra.mxu3 %vm60_vm0, %v53_v2  ;;  %2229 = vmatmul.msk.f32.vlgmr.msra.gmra.mxu0 %vm60_vm0, %v2228_v3 }
   0x6   :  { %480 = vmatpush.msrb.mxu0 %v2525_v0  ;;  %146 = vmatpush.msra.mxu2 %v2530_v1 }
   0x7   :  { %177 = vmatpush.msrb.mxu3 %v2546_v4 }
   0x8   :  { %481 = vmatpush.msrb.mxu0 %v2530_v1  ;;  %378 = vmatpush.msrb.mxu2 %v2546_v4 }
   0xa   :  { %606 = vmatpush.msra.mxu0 %v2553_v5 }
   0xc   :  { %607 = vmatpush.msra.mxu0 %v2558_v6 }
   0xe   :  { %608 = vmatpush.msra.mxu0 %v2566_v7 }
  0x10   :  { %609 = vmatpush.msra.mxu0 %v2574_v8 }
  0x11   :  { %19 = vsyncpa [#allocation6], 0  ;;  %v2588_v10 = vld [vmem:[%s3737_s4 + $0x50] sm:$0xff]  ;;  %v2594_v11 = vld [vmem:[%s3737_s4 + $0x48] sm:$0xff]  ;;  %v2442_v26 = vmov 0.0   ;;  %vm95_vm2 = vcmask 261120   ;;  %v48_v53 = vlaneseq }
  0x12   :  { %610 = vmatpush.msra.mxu0 %v2581_v9  ;;  %v2600_v12 = vld [vmem:[%s3737_s4 + $0x40] sm:$0xff]  ;;  %v2607_v13 = vld [vmem:[%s3736_s3 + $0x10] sm:$0xff]  ;;  %v2612_v14 = vld [vmem:[%s3737_s4 + $0x38] sm:$0xff]  ;;  %s2443_s21 = smov 64   ;;  %s2444_s22 = smov 32  }
  0x13   :  { %112 = vmatpush.msra.mxu1 %v2607_v13  ;;  %v2619_v15 = vld [vmem:[%s3736_s3 + $0x8] sm:$0xff]  ;;  %v2624_v16 = vld [vmem:[%s3737_s4 + $0x30] sm:$0xff]  ;;  %379 = vmatpush.msrb.mxu2 %v2607_v13  ;;  %v2633_v17 = vld [vmem:[%s3736_s3] sm:$0xff]  ;;  %v49_v57 = vand.u32 127, %v48_v53  ;;  %s2445_s23 = smov 96   ;;  %s2446_s25 = smov [#allocation5]  }
  0x14   :  { %611 = vmatpush.msra.mxu0 %v2588_v10  ;;  %178 = vmatpush.msrb.mxu3 %v2607_v13  ;;  %v2638_v18 = vld [vmem:[%s3737_s4 + $0x28] sm:$0xff]  ;;  %v2651_v20 = vld [vmem:[%s3737_s4 + $0x20] sm:$0xff]  ;;  %v2656_v21 = vld [vmem:[%s3737_s4 + $0x18] sm:$0xff] }
  0x15   :  { %113 = vmatpush.msra.mxu1 %v2619_v15  ;;  %380 = vmatpush.msrb.mxu2 %v2619_v15  ;;  %v2234_v19 = vld [vmem:[%s3733_s0 + $0xc] sm:$0x3]  ;;  %v2219_v22 = vld [vmem:[%s3733_s0 + $0x2] sm:$0x3]  ;;  %v2667_v23 = vld [vmem:[%s3737_s4 + $0x10] sm:$0xff]  ;;  %vm50_vm5 = vcmp.ge.s32.totalorder %v49_v57, 64 }
  0x16   :  { %612 = vmatpush.msra.mxu0 %v2594_v11  ;;  %179 = vmatpush.msrb.mxu3 %v2619_v15  ;;  %v2676_v24 = vld [vmem:[%s3737_s4 + $0x8] sm:$0xff]  ;;  %v2685_v25 = vld [vmem:[%s3737_s4] sm:$0xff]  ;;  %vm51_vm6 = vcmp.lt.s32.totalorder %v49_v57, 96  ;;  %v2096_v63 = vld [vmem:[%s3742_s9 + $0x78] sm:$0xff] }
  0x17   :  { %114 = vmatpush.msra.mxu1 %v2633_v17  ;;  %2235 = vmatmul.msk.f32.vlgmr.msrb.gmra.mxu0 %vm60_vm0, %v2234_v19  ;;  %v2263_v27 = vld [vmem:[%s3735_s2] ss:$0 sm:$0xff]  ;;  %vm2747_vm8 = vmand %vm50_vm5, %vm51_vm6 }
  0x18   :  { %613 = vmatpush.msra.mxu0 %v2600_v12  ;;  %381 = vmatpush.msrb.mxu2 %v2633_v17  ;;  %v2262_v30 = vld [vmem:[%s3735_s2] ss:$0 sm:$0xff] }
  0x19   :  { %180 = vmatpush.msrb.mxu3 %v2633_v17  ;;  %2220 = vmatmul.msk.f32.vlgmr.msra.gmra.mxu2 %vm60_vm0, %v2219_v22  ;;  %v2265_v37 = vld [vmem:[%s3735_s2] ss:$0 sm:$0xff] }
  0x1a   :  { %614 = vmatpush.msra.mxu0 %v2612_v14  ;;  %212 = vmatpush.msrb.mxu1 %v2525_v0  ;;  %v2264_v42 = vld [vmem:[%s3738_s5] ss:$0 sm:$0xff] }
  0x1b   :  { %512 = vmatpush.msra.mxu2 %v2546_v4  ;;  %244 = vmatpush.msra.mxu3 %v2546_v4  ;;  %v2267_v52 = vld [vmem:[%s3738_s5] ss:$0 sm:$0xff] }
  0x1c   :  { %615 = vmatpush.msra.mxu0 %v2624_v16  ;;  %213 = vmatpush.msrb.mxu1 %v2530_v1 }
  0x1d   :  { %513 = vmatpush.msra.mxu2 %v2607_v13  ;;  %245 = vmatpush.msra.mxu3 %v2607_v13 }
  0x1e   :  { %616 = vmatpush.msra.mxu0 %v2638_v18 }
  0x1f   :  { %514 = vmatpush.msra.mxu2 %v2619_v15  ;;  %246 = vmatpush.msra.mxu3 %v2619_v15 }
  0x20   :  { %617 = vmatpush.msra.mxu0 %v2651_v20 }
  0x21   :  { %515 = vmatpush.msra.mxu2 %v2633_v17  ;;  %247 = vmatpush.msra.mxu3 %v2633_v17 }
  0x22   :  { %618 = vmatpush.msra.mxu0 %v2656_v21 }
  0x24   :  { %619 = vmatpush.msra.mxu0 %v2667_v23 }
  0x26   :  { %620 = vmatpush.msra.mxu0 %v2676_v24 }
  0x28   :  { %621 = vmatpush.msra.mxu0 %v2685_v25 }
  0x29   :  { %622 = vmatmul.f32.vlgmr.msra.gmra.mxu0 %v2442_v26 }
  0x2a   :  { %893 = vmatpush.msrb.mxu0 %v2553_v5 }
  0x2c   :  { %894 = vmatpush.msrb.mxu0 %v2558_v6 }
  0x2e   :  { %895 = vmatpush.msrb.mxu0 %v2566_v7 }
  0x30   :  { %896 = vmatpush.msrb.mxu0 %v2574_v8 }
  0x32   :  { %897 = vmatpush.msrb.mxu0 %v2581_v9 }
  0x34   :  { %898 = vmatpush.msrb.mxu0 %v2588_v10 }
  0x36   :  { %899 = vmatpush.msrb.mxu0 %v2594_v11 }
  0x38   :  { %900 = vmatpush.msrb.mxu0 %v2600_v12 }
  0x3a   :  { %901 = vmatpush.msrb.mxu0 %v2612_v14 }
  0x3c   :  { %902 = vmatpush.msrb.mxu0 %v2624_v16 }
  0x3e   :  { %903 = vmatpush.msrb.mxu0 %v2638_v18 }
  0x40   :  { %904 = vmatpush.msrb.mxu0 %v2651_v20 }
  0x42   :  { %905 = vmatpush.msrb.mxu0 %v2656_v21 }
  0x44   :  { %906 = vmatpush.msrb.mxu0 %v2667_v23 }
  0x46   :  { %907 = vmatpush.msrb.mxu0 %v2676_v24 }
  0x48   :  { %908 = vmatpush.msrb.mxu0 %v2685_v25 }
  0x82   :  { %v349_v28 = vpop.f32.mrf.mxu0 }
  0x83   :  { %v350_v29 = vadd.f32 %v2263_v27, %v349_v28 }
  0x85   :  { %vm352_vm1 = vcmp.gt.f32.partialorder %v350_v29, 0.0  ;;  %v353_v31 = vmul.f32 0.01, %v350_v29 }
  0x87   :  { %v354_v33 = vsel %vm352_vm1, %v350_v29, %v353_v31  ;;  %v2268_v29 = vld [vmem:[%s3738_s5] ss:$0 sm:$0xff] }
  0x88   :  { %v81_v32 = vpop.f32.mrf.mxu3  ;;  %2230 = vmatmul.msk.f32.vlgmr.msrb.gmra.mxu2 %vm95_vm2, %v354_v33 }
  0x89   :  { %v82_v34 = vadd.f32 %v2262_v30, %v81_v32  ;;  %677 = vmatpush.msrb.mxu2 %v2553_v5  ;;  %v2266_v32 = vld [vmem:[%s3735_s2] ss:$0 sm:$0xff] }
  0x8b   :  { %v85_v35 = vmul.f32 0.01, %v82_v34  ;;  %vm84_vm3 = vcmp.gt.f32.partialorder %v82_v34, 0.0  ;;  %678 = vmatpush.msrb.mxu2 %v2558_v6 }
  0x8d   :  { %v86_v36 = vsel %vm84_vm3, %v82_v34, %v85_v35  ;;  %679 = vmatpush.msrb.mxu2 %v2566_v7 }
  0x8e   :  { %2218 = vmatmul.msk.f32.vlgmr.msra.gmra.mxu1 %vm95_vm2, %v86_v36 }
  0x8f   :  { %279 = vmatpush.msra.mxu1 %v2525_v0  ;;  %680 = vmatpush.msrb.mxu2 %v2574_v8 }
  0x91   :  { %280 = vmatpush.msra.mxu1 %v2530_v1  ;;  %681 = vmatpush.msrb.mxu2 %v2581_v9 }
  0x93   :  { %682 = vmatpush.msrb.mxu2 %v2588_v10 }
  0x94   :  { %v483_v38 = vpop.f32.mrf.mxu0 }
  0x95   :  { %683 = vmatpush.msrb.mxu2 %v2594_v11  ;;  %v484_v39 = vadd.f32 %v2265_v37, %v483_v38 }
  0x97   :  { %684 = vmatpush.msrb.mxu2 %v2600_v12  ;;  %vm486_vm4 = vcmp.gt.f32.partialorder %v484_v39, 0.0  ;;  %v487_v40 = vmul.f32 0.01, %v484_v39 }
  0x99   :  { %685 = vmatpush.msrb.mxu2 %v2612_v14  ;;  %v488_v41 = vsel %vm486_vm4, %v484_v39, %v487_v40 }
  0x9a   :  { %2236 = vmatmul.msk.f32.vlgmr.msra.gmra.mxu2 %vm95_vm2, %v488_v41 }
  0x9b   :  { %686 = vmatpush.msrb.mxu2 %v2624_v16 }
  0x9c   :  { %v148_v49 = vpop.f32.mrf.mxu2 }
  0x9d   :  { %687 = vmatpush.msrb.mxu2 %v2638_v18  ;;  %v149_v33 = vadd.f32 %v2266_v32, %v148_v49  ;;  %v2271_v32 = vld [vmem:[%s3735_s2] ss:$0 sm:$0xff] }
  0x9f   :  { %688 = vmatpush.msrb.mxu2 %v2651_v20  ;;  %v152_v34 = vmul.f32 0.01, %v149_v33  ;;  %vm151_vm12 = vcmp.gt.f32.partialorder %v149_v33, 0.0 }
  0xa1   :  { %689 = vmatpush.msrb.mxu2 %v2656_v21  ;;  %v153_v35 = vsel %vm151_vm12, %v149_v33, %v152_v34 }
  0xa2   :  { %2221 = vmatmul.msk.f32.vlgmr.msrb.gmra.mxu3 %vm95_vm2, %v153_v35 }
  0xa3   :  { %690 = vmatpush.msrb.mxu2 %v2667_v23  ;;  %311 = vmatpush.msrb.mxu3 %v2546_v4 }
  0xa5   :  { %691 = vmatpush.msrb.mxu2 %v2676_v24  ;;  %312 = vmatpush.msrb.mxu3 %v2607_v13 }
  0xa6   :  { %v623_v45 = vpop.f32.mrf.mxu0 }
  0xa7   :  { %692 = vmatpush.msrb.mxu2 %v2685_v25  ;;  %313 = vmatpush.msrb.mxu3 %v2619_v15 }
  0xa9   :  { %314 = vmatpush.msrb.mxu3 %v2633_v17 }
 0x10b   :  { %v116_v43 = vpop.f32.mrf.mxu1  ;;  %v383_v54 = vpop.f32.mrf.mxu2 }
 0x10c   :  { %v117_v44 = vadd.f32 %v2264_v42, %v116_v43  ;;  %v384_v55 = vadd.f32 %v2267_v52, %v383_v54  ;;  %v2225_v52 = vld [vmem:[%s3733_s0 + $0x6] sm:$0x3] }
 0x10e   :  { %119 = vst [vmem:[#allocation2] sm:$0x3] %v117_v44  ;;  %v2269_v44 = vld [vmem:[%s3738_s5] ss:$0 sm:$0xff] }
 0x10f   :  { %387 = vst [vmem:[#allocation2 + $0x8] sm:$0x3] %v384_v55 }
 0x115   :  { %v589_v46 = vld [vmem:[#allocation2] sm:$0x3] }
 0x116   :  { %v626_v47 = vadd.f32 %v623_v45, %v589_v46 }
 0x118   :  { %v2240_v48 = vmul.f32 -1.442695, %v626_v47 }
 0x11a   :  { %2288 = vpow2.f32 %v2240_v48 }
 0x11d   :  { %v517_v30 = vpop.f32.mrf.mxu2 }
 0x11e   :  { %v518_v31 = vadd.f32 %v2268_v29, %v517_v30 }
 0x120   :  { %v2289_v50 = vpop.eup %2288  ;;  %521 = vst [vmem:[#allocation2 + $0xc] sm:$0x3] %v518_v31  ;;  %v2237_v31 = vld [vmem:[%s3733_s0 + $0xe] sm:$0x3] }
 0x121   :  { %v631_v51 = vadd.f32 1.0, %v2289_v50 }
 0x123   :  { %2290 = vrcp.f32 %v631_v51  ;;  %v643_v60 = vand.u32 2147483648, %v631_v51  ;;  %v641_v62 = vand.u32 2147483647, %v631_v51  ;;  %vm637_vm9 = vweird.f32 %v631_v51 }
 0x124   :  { %2292 = vtanh.f32 %v626_v47  ;;  %v2222_v47 = vld [vmem:[%s3733_s0 + $0x4] sm:$0x3] }
 0x125   :  { %v644_v3 = vor.u32 1.1754944e-38, %v643_v60  ;;  %vm642_vm11 = vcmp.eq.f32.partialorder %v641_v62, 8.507059e+37  ;;  %v182_v45 = vpop.f32.mrf.mxu3  ;;  %2223 = vmatmul.msk.f32.vlgmr.msrb.gmra.mxu1 %vm60_vm0, %v2222_v47 }
 0x126   :  { %v183_v46 = vadd.f32 %v2269_v44, %v182_v45  ;;  %413 = vmatpush.msrb.mxu1 %v2525_v0 }
 0x128   :  { %186 = vst [vmem:[#allocation2 + $0x2] sm:$0x3] %v183_v46  ;;  %414 = vmatpush.msrb.mxu1 %v2530_v1 }
 0x129   :  { %v2291_v56 = vpop.eup %2290 }
 0x12a   :  { %v633_v58 = vmul.f32 %v2291_v56, %v631_v51  ;;  %vm638_vm7 = vweird.f32 %v2291_v56  ;;  %v2293_v22 = vpop.eup %2292 }
 0x12b   :  { %vm639_vm10 = vmor %vm637_vm9, %vm638_vm7 }
 0x12c   :  { %v634_v59 = vsub.f32 1.0, %v633_v58 }
 0x12d   :  { %2226 = vmatmul.msk.f32.vlgmr.msra.gmra.mxu1 %vm60_vm0, %v2225_v52 }
 0x12e   :  { %v635_v61 = vmul.f32 %v2291_v56, %v634_v59  ;;  %547 = vmatpush.msra.mxu1 %v2525_v0 }
 0x12f   :  { %v660_v48 = vld [vmem:[#allocation2 + $0x2] sm:$0x3] }
 0x130   :  { %v636_v2 = vadd.f32 %v2291_v56, %v635_v61  ;;  %548 = vmatpush.msra.mxu1 %v2530_v1 }
 0x132   :  { %v640_v19 = vsel %vm639_vm10, %v2291_v56, %v636_v2 }
 0x133   :  { %v645_v27 = vsel %vm642_vm11, %v644_v3, %v640_v19  ;;  %v2231_v19 = vld [vmem:[%s3733_s0 + $0xa] sm:$0x3]  ;;  %s2208_s0 = sshll.u32 %s3747_s14, 4  ;;  %s2209_s0 = int_to_ptr.hbm [resolvable:$true] %s2208_s0 }
 0x134   :  { %v647_v28 = vsel %vm2747_vm8, %v2293_v22, %v645_v27  ;;  %v2270_v22 = vld [vmem:[%s3735_s2] ss:$0 sm:$0xff] }
 0x135   :  { %655 = vrot.lane.b32.xlu1 %v647_v28, %s2443_s21  ;;  %648 = vrot.lane.b32.xlu0 %v647_v28, %s2444_s22  ;;  %v653_v39 = vmul.f32 0.0, %v647_v28 }
 0x136   :  { %2232 = vmatmul.msk.f32.vlgmr.msrb.gmra.mxu1 %vm60_vm0, %v2231_v19 }
 0x137   :  { %749 = vmatpush.msrb.mxu1 %v2553_v5 }
 0x139   :  { %750 = vmatpush.msrb.mxu1 %v2558_v6 }
 0x13b   :  { %751 = vmatpush.msrb.mxu1 %v2566_v7 }
 0x13d   :  { %650 = vrot.lane.b32.xlu0 %v647_v28, %s2445_s23  ;;  %752 = vmatpush.msrb.mxu1 %v2574_v8 }
 0x13e   :  { %2238 = vmatmul.msk.f32.vlgmr.msra.gmra.mxu1 %vm60_vm0, %v2237_v31 }
 0x13f   :  { %753 = vmatpush.msrb.mxu1 %v2581_v9 }
 0x141   :  { %754 = vmatpush.msrb.mxu1 %v2588_v10 }
 0x143   :  { %755 = vmatpush.msrb.mxu1 %v2594_v11 }
 0x145   :  { %756 = vmatpush.msrb.mxu1 %v2600_v12 }
 0x147   :  { %757 = vmatpush.msrb.mxu1 %v2612_v14 }
 0x149   :  { %758 = vmatpush.msrb.mxu1 %v2624_v16 }
 0x14b   :  { %759 = vmatpush.msrb.mxu1 %v2638_v18 }
 0x14d   :  { %760 = vmatpush.msrb.mxu1 %v2651_v20 }
 0x14f   :  { %761 = vmatpush.msrb.mxu1 %v2656_v21 }
 0x151   :  { %762 = vmatpush.msrb.mxu1 %v2667_v23 }
 0x153   :  { %763 = vmatpush.msrb.mxu1 %v2676_v24 }
 0x155   :  { %764 = vmatpush.msrb.mxu1 %v2685_v25 }
 0x1a2   :  { %v215_v27 = vpop.f32.mrf.mxu1 }
 0x1a3   :  { %v216_v28 = vadd.f32 %v2270_v22, %v215_v27 }
 0x1a5   :  { %vm218_vm3 = vcmp.gt.f32.partialorder %v216_v28, 0.0  ;;  %v219_v29 = vmul.f32 0.01, %v216_v28 }
 0x1a7   :  { %v649_v36 = vpop.permute.xlu0 %648  ;;  %v656_v42 = vpop.permute.xlu1 %655  ;;  %v220_v30 = vsel %vm218_vm3, %v216_v28, %v219_v29 }
 0x1a8   :  { %2224 = vmatmul.msk.f32.vlgmr.msra.gmra.mxu3 %vm95_vm2, %v220_v30 }
 0x1a9   :  { %445 = vmatpush.msra.mxu3 %v2546_v4 }
 0x1aa   :  { %v282_v33 = vpop.f32.mrf.mxu1 }
 0x1ab   :  { %446 = vmatpush.msra.mxu3 %v2607_v13  ;;  %v283_v34 = vadd.f32 %v2271_v32, %v282_v33 }
 0x1ad   :  { %447 = vmatpush.msra.mxu3 %v2619_v15  ;;  %vm285_vm4 = vcmp.gt.f32.partialorder %v283_v34, 0.0  ;;  %v286_v35 = vmul.f32 0.01, %v283_v34 }
 0x1af   :  { %v651_v37 = vpop.permute.xlu0 %650  ;;  %448 = vmatpush.msra.mxu3 %v2633_v17 }
 0x1b0   :  { %v652_v38 = vmul.f32 %v651_v37, %v649_v36  ;;  %v287_v36 = vsel %vm285_vm4, %v283_v34, %v286_v35 }
 0x1b1   :  { %2227 = vmatmul.msk.f32.vlgmr.msrb.gmra.mxu3 %vm95_vm2, %v287_v36 }
 0x1b2   :  { %v2767_v40 = vadd.f32 %v653_v39, %v652_v38  ;;  %579 = vmatpush.msrb.mxu3 %v2546_v4  ;;  %v2272_v4 = vld [vmem:[%s3735_s2] ss:$0 sm:$0xff] }
 0x1b4   :  { %2294 = vtanh.f32 %v2767_v40  ;;  %580 = vmatpush.msrb.mxu3 %v2607_v13  ;;  %v416_v13 = vpop.f32.mrf.mxu1 }
 0x1b6   :  { %581 = vmatpush.msrb.mxu3 %v2619_v15  ;;  %v417_v15 = vadd.f32 %v2272_v4, %v416_v13 }
 0x1b8   :  { %582 = vmatpush.msrb.mxu3 %v2633_v17  ;;  %vm419_vm0 = vcmp.gt.f32.partialorder %v417_v15, 0.0  ;;  %v420_v46 = vmul.f32 0.01, %v417_v15  ;;  %v2273_v17 = vld [vmem:[%s3738_s5] ss:$0 sm:$0xff] }
 0x1ba   :  { %v2295_v41 = vpop.eup %2294 }
 0x1bb   :  { %v658_v43 = vmul.f32 %v2295_v41, %v656_v42 }
 0x1bd   :  { %659 = vst [vmem:[#allocation3] sm:$0x3] %v658_v43  ;;  %693 = vmatmul.f32.vlgmr.msrb.gmra.mxu2 %v658_v43 }
 0x240   :  { %v694_v49 = vpop.f32.mrf.mxu2 }
 0x241   :  { %v697_v50 = vadd.f32 %v694_v49, %v660_v48 }
 0x243   :  { %v2241_v51 = vmul.f32 -1.442695, %v697_v50 }
 0x245   :  { %2296 = vpow2.f32 %v2241_v51 }
 0x24b   :  { %v2297_v53 = vpop.eup %2296 }
 0x24c   :  { %v702_v54 = vadd.f32 1.0, %v2297_v53 }
 0x24e   :  { %2298 = vrcp.f32 %v702_v54  ;;  %v714_v58 = vand.u32 2147483648, %v702_v54  ;;  %v712_v60 = vand.u32 2147483647, %v702_v54  ;;  %vm708_vm14 = vweird.f32 %v702_v54 }
 0x24f   :  { %2300 = vtanh.f32 %v697_v50 }
 0x250   :  { %v715_v62 = vor.u32 1.1754944e-38, %v714_v58  ;;  %vm713_vm1 = vcmp.eq.f32.partialorder %v712_v60, 8.507059e+37 }
 0x254   :  { %v2299_v55 = vpop.eup %2298 }
 0x255   :  { %v704_v56 = vmul.f32 %v2299_v55, %v702_v54  ;;  %vm709_vm13 = vweird.f32 %v2299_v55  ;;  %v2301_v0 = vpop.eup %2300 }
 0x256   :  { %vm710_vm15 = vmor %vm708_vm14, %vm709_vm13 }
 0x257   :  { %v705_v57 = vsub.f32 1.0, %v704_v56 }
 0x259   :  { %v706_v59 = vmul.f32 %v2299_v55, %v705_v57 }
 0x25b   :  { %v707_v61 = vadd.f32 %v2299_v55, %v706_v59  ;;  %v2276_v59 = vld [vmem:[%s3738_s5] ss:$0 sm:$0xff] }
 0x25d   :  { %v711_v2 = vsel %vm710_vm15, %v2299_v55, %v707_v61 }
 0x25e   :  { %v716_v3 = vsel %vm713_vm1, %v715_v62, %v711_v2  ;;  %v2277_v62 = vld [vmem:[%s3738_s5] ss:$0 sm:$0xff] }
 0x25f   :  { %v718_v1 = vsel %vm2747_vm8, %v2301_v0, %v716_v3 }
 0x260   :  { %721 = vrot.lane.b32.xlu2 %v718_v1, %s2445_s23  ;;  %719 = vrot.lane.b32.xlu1 %v718_v1, %s2444_s22  ;;  %v724_v41 = vmul.f32 %v718_v1, %v2767_v40  ;;  %v421_v40 = vsel %vm419_vm0, %v417_v15, %v420_v46 }
 0x261   :  { %2233 = vmatmul.msk.f32.vlgmr.msra.gmra.mxu3 %vm95_vm2, %v421_v40  ;;  %v2887_v40 = vld [vmem:[%s3739_s6 + $0x78] sm:$0xff] }
 0x262   :  { %821 = vmatpush.msra.mxu3 %v2553_v5  ;;  %v2274_v5 = vld [vmem:[%s3735_s2] ss:$0 sm:$0xff]  ;;  %1186 = vmatpush.msra.mxu0 %v2887_v40 }
 0x264   :  { %822 = vmatpush.msra.mxu3 %v2558_v6  ;;  %v249_v6 = vpop.f32.mrf.mxu3 }
 0x266   :  { %823 = vmatpush.msra.mxu3 %v2566_v7  ;;  %v250_v7 = vadd.f32 %v2273_v17, %v249_v6  ;;  %v2892_v17 = vld [vmem:[%s3739_s6 + $0x70] sm:$0xff]  ;;  %v2904_v6 = vld [vmem:[%s3739_s6 + $0x60] sm:$0xff] }
 0x267   :  { %1187 = vmatpush.msra.mxu0 %v2892_v17 }
 0x268   :  { %726 = vrot.lane.b32.xlu2 %v718_v1, %s2443_s21  ;;  %824 = vmatpush.msra.mxu3 %v2574_v8  ;;  %v550_v8 = vpop.f32.mrf.mxu1  ;;  %253 = vst [vmem:[#allocation2 + $0x4] sm:$0x3] %v250_v7  ;;  %v2910_v7 = vld [vmem:[%s3739_s6 + $0x58] sm:$0xff] }
 0x26a   :  { %825 = vmatpush.msra.mxu3 %v2581_v9  ;;  %v551_v9 = vadd.f32 %v2274_v5, %v550_v8  ;;  %v2898_v5 = vld [vmem:[%s3739_s6 + $0x68] sm:$0xff]  ;;  %v2917_v8 = vld [vmem:[%s3739_s6 + $0x50] sm:$0xff] }
 0x26b   :  { %1188 = vmatpush.msra.mxu0 %v2898_v5 }
 0x26c   :  { %826 = vmatpush.msra.mxu3 %v2588_v10  ;;  %vm553_vm5 = vcmp.gt.f32.partialorder %v551_v9, 0.0  ;;  %v554_v10 = vmul.f32 0.01, %v551_v9 }
 0x26d   :  { %1189 = vmatpush.msra.mxu0 %v2904_v6 }
 0x26e   :  { %827 = vmatpush.msra.mxu3 %v2594_v11  ;;  %v555_v11 = vsel %vm553_vm5, %v551_v9, %v554_v10  ;;  %v2923_v9 = vld [vmem:[%s3739_s6 + $0x48] sm:$0xff]  ;;  %v2929_v10 = vld [vmem:[%s3739_s6 + $0x40] sm:$0xff] }
 0x26f   :  { %2239 = vmatmul.msk.f32.vlgmr.msrb.gmra.mxu3 %vm95_vm2, %v555_v11  ;;  %1190 = vmatpush.msra.mxu0 %v2910_v7  ;;  %v2935_v11 = vld [vmem:[%s3739_s6 + $0x38] sm:$0xff] }
 0x270   :  { %828 = vmatpush.msra.mxu3 %v2600_v12  ;;  %v732_v12 = vld [vmem:[#allocation2 + $0x4] sm:$0x3] }
 0x271   :  { %1191 = vmatpush.msra.mxu0 %v2917_v8 }
 0x272   :  { %829 = vmatpush.msra.mxu3 %v2612_v14 }
 0x273   :  { %1192 = vmatpush.msra.mxu0 %v2923_v9 }
 0x274   :  { %830 = vmatpush.msra.mxu3 %v2624_v16 }
 0x275   :  { %1193 = vmatpush.msra.mxu0 %v2929_v10 }
 0x276   :  { %831 = vmatpush.msra.mxu3 %v2638_v18  ;;  %v2275_v18 = vld [vmem:[%s3738_s5] ss:$0 sm:$0xff] }
 0x277   :  { %1194 = vmatpush.msra.mxu0 %v2935_v11 }
 0x278   :  { %832 = vmatpush.msra.mxu3 %v2651_v20  ;;  %v316_v20 = vpop.f32.mrf.mxu3 }
 0x279   :  { %v317_v48 = vadd.f32 %v2275_v18, %v316_v20  ;;  %v2959_v18 = vld [vmem:[%s3739_s6 + $0x18] sm:$0xff]  ;;  %v2964_v20 = vld [vmem:[%s3739_s6 + $0x10] sm:$0xff] }
 0x27a   :  { %833 = vmatpush.msra.mxu3 %v2656_v21 }
 0x27b   :  { %320 = vst [vmem:[#allocation2 + $0x6] sm:$0x3] %v317_v48  ;;  %v2976_v48 = vld [vmem:[%s3739_s6] sm:$0xff] }
 0x27c   :  { %834 = vmatpush.msra.mxu3 %v2667_v23 }
 0x27e   :  { %835 = vmatpush.msra.mxu3 %v2676_v24 }
 0x280   :  { %836 = vmatpush.msra.mxu3 %v2685_v25 }
 0x282   :  { %v804_v31 = vld [vmem:[#allocation2 + $0x6] sm:$0x3] }
 0x2ba   :  { %v722_v37 = vpop.permute.xlu2 %721 }
 0x2c2   :  { %v727_v44 = vpop.permute.xlu2 %726 }
 0x2d2   :  { %v720_v38 = vpop.permute.xlu1 %719 }
 0x2d3   :  { %v723_v39 = vmul.f32 %v722_v37, %v720_v38 }
 0x2d5   :  { %v2831_v42 = vadd.f32 %v724_v41, %v723_v39 }
 0x2d7   :  { %2302 = vtanh.f32 %v2831_v42 }
 0x2dd   :  { %v2303_v43 = vpop.eup %2302 }
 0x2de   :  { %v729_v45 = vmul.f32 %v2303_v43, %v727_v44 }
 0x2e0   :  { %731 = vst [vmem:[#allocation3 + $0x2] sm:$0x3] %v729_v45  ;;  %765 = vmatmul.f32.vlgmr.msrb.gmra.mxu1 %v729_v45 }
 0x2e4   :  { %v450_v60 = vpop.f32.mrf.mxu3 }
 0x2e5   :  { %v451_v61 = vadd.f32 %v2276_v59, %v450_v60  ;;  %v962_v60 = vld [vmem:[%s3737_s4 + $0x68] sm:$0xff] }
 0x2e7   :  { %454 = vst [vmem:[#allocation2 + $0xa] sm:$0x3] %v451_v61  ;;  %v2278_v61 = vld [vmem:[%s3741_s8] ss:$0 sm:$0xff] }
 0x2f2   :  { %v584_v2 = vpop.f32.mrf.mxu3 }
 0x2f3   :  { %v585_v0 = vadd.f32 %v2277_v62, %v584_v2  ;;  %v961_v62 = vld [vmem:[%s3737_s4 + $0x60] sm:$0xff]  ;;  %v960_v2 = vld [vmem:[%s3737_s4 + $0x58] sm:$0xff] }
 0x2f5   :  { %588 = vst [vmem:[#allocation2 + $0xe] sm:$0x3] %v585_v0 }
 0x35d   :  { %v766_v14 = vpop.f32.mrf.mxu1 }
 0x35e   :  { %v769_v16 = vadd.f32 %v766_v14, %v732_v12  ;;  %v2940_v12 = vld [vmem:[%s3739_s6 + $0x30] sm:$0xff]  ;;  %v2946_v14 = vld [vmem:[%s3739_s6 + $0x28] sm:$0xff] }
 0x35f   :  { %1195 = vmatpush.msra.mxu0 %v2940_v12 }
 0x360   :  { %v2242_v47 = vmul.f32 -1.442695, %v769_v16 }
 0x361   :  { %1196 = vmatpush.msra.mxu0 %v2946_v14 }
 0x362   :  { %2304 = vpow2.f32 %v2242_v47  ;;  %v2970_v47 = vld [vmem:[%s3739_s6 + $0x8] sm:$0xff] }
 0x368   :  { %v2305_v21 = vpop.eup %2304 }
 0x369   :  { %v774_v49 = vadd.f32 1.0, %v2305_v21 }
 0x36b   :  { %2306 = vrcp.f32 %v774_v49  ;;  %v786_v25 = vand.u32 2147483648, %v774_v49  ;;  %v784_v52 = vand.u32 2147483647, %v774_v49  ;;  %vm780_vm7 = vweird.f32 %v774_v49 }
 0x36c   :  { %2308 = vtanh.f32 %v769_v16  ;;  %v2952_v16 = vld [vmem:[%s3739_s6 + $0x20] sm:$0xff] }
 0x36d   :  { %v787_v54 = vor.u32 1.1754944e-38, %v786_v25  ;;  %vm785_vm10 = vcmp.eq.f32.partialorder %v784_v52, 8.507059e+37  ;;  %1197 = vmatpush.msra.mxu0 %v2952_v16 }
 0x36f   :  { %1198 = vmatpush.msra.mxu0 %v2959_v18 }
 0x371   :  { %v2307_v23 = vpop.eup %2306  ;;  %1199 = vmatpush.msra.mxu0 %v2964_v20 }
 0x372   :  { %v776_v50 = vmul.f32 %v2307_v23, %v774_v49  ;;  %vm781_vm6 = vweird.f32 %v2307_v23  ;;  %v2309_v56 = vpop.eup %2308 }
 0x373   :  { %vm782_vm9 = vmor %vm780_vm7, %vm781_vm6  ;;  %1200 = vmatpush.msra.mxu0 %v2970_v47 }
 0x374   :  { %v777_v24 = vsub.f32 1.0, %v776_v50 }
 0x375   :  { %1201 = vmatpush.msra.mxu0 %v2976_v48 }
 0x376   :  { %v778_v51 = vmul.f32 %v2307_v23, %v777_v24 }
 0x378   :  { %v779_v53 = vadd.f32 %v2307_v23, %v778_v51 }
 0x37a   :  { %v783_v55 = vsel %vm782_vm9, %v2307_v23, %v779_v53  ;;  %v1165_v53 = vld [vmem:[#allocation3] sm:$0x3] }
 0x37b   :  { %v788_v57 = vsel %vm785_vm10, %v787_v54, %v783_v55  ;;  %v876_v54 = vld [vmem:[#allocation2 + $0x8] sm:$0x3] }
 0x37c   :  { %v790_v58 = vsel %vm2747_vm8, %v2309_v56, %v788_v57  ;;  %v964_v57 = vld [vmem:[%s3737_s4 + $0x78] sm:$0xff] }
 0x37d   :  { %798 = vrot.lane.b32.xlu2 %v790_v58, %s2443_s21  ;;  %793 = vrot.lane.b32.xlu1 %v790_v58, %s2445_s23  ;;  %v796_v22 = vmul.f32 %v790_v58, %v2831_v42 }
 0x37e   :  { %791 = vrot.lane.b32.xlu0 %v790_v58, %s2444_s22  ;;  %v963_v58 = vld [vmem:[%s3737_s4 + $0x70] sm:$0xff]  ;;  %965 = vmatpush.msra.mxu2 %v964_v57 }
 0x37f   :  { %1037 = vmatpush.msra.mxu1 %v964_v57  ;;  %1109 = vmatpush.msrb.mxu3 %v964_v57  ;;  %v3158_v57 = vld [vmem:[%s3740_s7 + $0x20] sm:$0xff] }
 0x380   :  { %966 = vmatpush.msra.mxu2 %v963_v58 }
 0x381   :  { %1038 = vmatpush.msra.mxu1 %v963_v58  ;;  %1110 = vmatpush.msrb.mxu3 %v963_v58  ;;  %v3168_v58 = vld [vmem:[%s3740_s7 + $0x18] sm:$0xff] }
 0x382   :  { %967 = vmatpush.msra.mxu2 %v962_v60 }
 0x383   :  { %1039 = vmatpush.msra.mxu1 %v962_v60  ;;  %1111 = vmatpush.msrb.mxu3 %v962_v60  ;;  %v3179_v60 = vld [vmem:[%s3740_s7 + $0x8] sm:$0xff] }
 0x384   :  { %968 = vmatpush.msra.mxu2 %v961_v62 }
 0x385   :  { %1040 = vmatpush.msra.mxu1 %v961_v62  ;;  %1112 = vmatpush.msrb.mxu3 %v961_v62 }
 0x386   :  { %969 = vmatpush.msra.mxu2 %v960_v2 }
 0x387   :  { %1041 = vmatpush.msra.mxu1 %v960_v2  ;;  %1113 = vmatpush.msrb.mxu3 %v960_v2 }
 0x3d7   :  { %v799_v29 = vpop.permute.xlu2 %798 }
 0x3ef   :  { %v794_v3 = vpop.permute.xlu1 %793 }
 0x3f0   :  { %v792_v1 = vpop.permute.xlu0 %791 }
 0x3f1   :  { %v795_v19 = vmul.f32 %v794_v3, %v792_v1  ;;  %v959_v1 = vld [vmem:[%s3737_s4 + $0x50] sm:$0xff] }
 0x3f2   :  { %970 = vmatpush.msra.mxu2 %v959_v1  ;;  %1042 = vmatpush.msra.mxu1 %v959_v1 }
 0x3f3   :  { %v2876_v27 = vadd.f32 %v796_v22, %v795_v19  ;;  %v958_v22 = vld [vmem:[%s3737_s4 + $0x48] sm:$0xff]  ;;  %1114 = vmatpush.msrb.mxu3 %v959_v1 }
 0x3f4   :  { %971 = vmatpush.msra.mxu2 %v958_v22  ;;  %1043 = vmatpush.msra.mxu1 %v958_v22 }
 0x3f5   :  { %2310 = vtanh.f32 %v2876_v27  ;;  %1115 = vmatpush.msrb.mxu3 %v958_v22 }
 0x3fb   :  { %v2311_v28 = vpop.eup %2310 }
 0x3fc   :  { %v801_v30 = vmul.f32 %v2311_v28, %v799_v29  ;;  %v957_v28 = vld [vmem:[%s3737_s4 + $0x40] sm:$0xff]  ;;  %v956_v29 = vld [vmem:[%s3737_s4 + $0x38] sm:$0xff] }
 0x3fd   :  { %972 = vmatpush.msra.mxu2 %v957_v28  ;;  %1044 = vmatpush.msra.mxu1 %v957_v28 }
 0x3fe   :  { %803 = vst [vmem:[#allocation3 + $0x4] sm:$0x3] %v801_v30  ;;  %837 = vmatmul.f32.vlgmr.msra.gmra.mxu3 %v801_v30 }
 0x3ff   :  { %1116 = vmatpush.msrb.mxu3 %v957_v28  ;;  %973 = vmatpush.msra.mxu2 %v956_v29  ;;  %v1207_v28 = vld [vmem:[#allocation3 + $0x2] sm:$0x3] }
 0x400   :  { %1045 = vmatpush.msra.mxu1 %v956_v29 }
 0x401   :  { %1117 = vmatpush.msrb.mxu3 %v956_v29 }
 0x481   :  { %v838_v32 = vpop.f32.mrf.mxu3 }
 0x482   :  { %v841_v33 = vadd.f32 %v838_v32, %v804_v31 }
 0x484   :  { %v2243_v34 = vmul.f32 -1.442695, %v841_v33 }
 0x486   :  { %2312 = vpow2.f32 %v2243_v34 }
 0x48c   :  { %v2313_v35 = vpop.eup %2312 }
 0x48d   :  { %v846_v36 = vadd.f32 1.0, %v2313_v35 }
 0x48f   :  { %2314 = vrcp.f32 %v846_v36  ;;  %v858_v41 = vand.u32 2147483648, %v846_v36  ;;  %v856_v43 = vand.u32 2147483647, %v846_v36  ;;  %vm852_vm12 = vweird.f32 %v846_v36 }
 0x490   :  { %2316 = vtanh.f32 %v841_v33 }
 0x491   :  { %v859_v45 = vor.u32 1.1754944e-38, %v858_v41  ;;  %vm857_vm14 = vcmp.eq.f32.partialorder %v856_v43, 8.507059e+37  ;;  %v955_v43 = vld [vmem:[%s3737_s4 + $0x30] sm:$0xff] }
 0x492   :  { %974 = vmatpush.msra.mxu2 %v955_v43  ;;  %1046 = vmatpush.msra.mxu1 %v955_v43 }
 0x493   :  { %1118 = vmatpush.msrb.mxu3 %v955_v43 }
 0x495   :  { %v2315_v37 = vpop.eup %2314 }
 0x496   :  { %v848_v38 = vmul.f32 %v2315_v37, %v846_v36  ;;  %vm853_vm11 = vweird.f32 %v2315_v37  ;;  %v2317_v13 = vpop.eup %2316 }
 0x497   :  { %vm854_vm13 = vmor %vm852_vm12, %vm853_vm11 }
 0x498   :  { %v849_v39 = vsub.f32 1.0, %v848_v38 }
 0x49a   :  { %v850_v42 = vmul.f32 %v2315_v37, %v849_v39 }
 0x49c   :  { %v851_v44 = vadd.f32 %v2315_v37, %v850_v42 }
 0x49e   :  { %v855_v4 = vsel %vm854_vm13, %v2315_v37, %v851_v44  ;;  %v954_v44 = vld [vmem:[%s3737_s4 + $0x28] sm:$0xff] }
 0x49f   :  { %v860_v15 = vsel %vm857_vm14, %v859_v45, %v855_v4  ;;  %v953_v45 = vld [vmem:[%s3737_s4 + $0x20] sm:$0xff]  ;;  %v3052_v4 = vld [vmem:[%s3740_s7 + $0x78] sm:$0xff]  ;;  %975 = vmatpush.msra.mxu2 %v954_v44  ;;  %1047 = vmatpush.msra.mxu1 %v954_v44 }
 0x4a0   :  { %v862_v46 = vsel %vm2747_vm8, %v2317_v13, %v860_v15  ;;  %v952_v13 = vld [vmem:[%s3737_s4 + $0x18] sm:$0xff]  ;;  %1119 = vmatpush.msrb.mxu3 %v954_v44  ;;  %v951_v15 = vld [vmem:[%s3737_s4 + $0x10] sm:$0xff] }
 0x4a1   :  { %870 = vrot.lane.b32.xlu2 %v862_v46, %s2443_s21  ;;  %865 = vrot.lane.b32.xlu1 %v862_v46, %s2445_s23  ;;  %v868_v50 = vmul.f32 %v862_v46, %v2876_v27 }
 0x4a2   :  { %863 = vrot.lane.b32.xlu0 %v862_v46, %s2444_s22  ;;  %976 = vmatpush.msra.mxu2 %v953_v45  ;;  %v950_v46 = vld [vmem:[%s3737_s4 + $0x8] sm:$0xff] }
 0x4a3   :  { %1048 = vmatpush.msra.mxu1 %v953_v45  ;;  %1120 = vmatpush.msrb.mxu3 %v953_v45 }
 0x4a4   :  { %977 = vmatpush.msra.mxu2 %v952_v13 }
 0x4a5   :  { %1049 = vmatpush.msra.mxu1 %v952_v13  ;;  %1121 = vmatpush.msrb.mxu3 %v952_v13 }
 0x4a6   :  { %978 = vmatpush.msra.mxu2 %v951_v15 }
 0x4a7   :  { %1050 = vmatpush.msra.mxu1 %v951_v15  ;;  %1122 = vmatpush.msrb.mxu3 %v951_v15 }
 0x4a8   :  { %979 = vmatpush.msra.mxu2 %v950_v46 }
 0x4a9   :  { %1051 = vmatpush.msra.mxu1 %v950_v46  ;;  %1123 = vmatpush.msrb.mxu3 %v950_v46 }
 0x4fb   :  { %v871_v51 = vpop.permute.xlu2 %870 }
 0x513   :  { %v866_v21 = vpop.permute.xlu1 %865 }
 0x514   :  { %v864_v49 = vpop.permute.xlu0 %863 }
 0x515   :  { %v867_v23 = vmul.f32 %v866_v21, %v864_v49  ;;  %v949_v21 = vld [vmem:[%s3737_s4] sm:$0xff]  ;;  %v3081_v49 = vld [vmem:[%s3740_s7 + $0x70] sm:$0xff] }
 0x516   :  { %980 = vmatpush.msra.mxu2 %v949_v21  ;;  %1052 = vmatpush.msra.mxu1 %v949_v21 }
 0x517   :  { %v2981_v24 = vadd.f32 %v868_v50, %v867_v23  ;;  %1124 = vmatpush.msrb.mxu3 %v949_v21  ;;  %v3089_v23 = vld [vmem:[%s3740_s7 + $0x68] sm:$0xff]  ;;  %v3097_v50 = vld [vmem:[%s3740_s7 + $0x60] sm:$0xff] }
 0x518   :  { %1228 = vmatpush.msrb.mxu2 %v2887_v40  ;;  %1270 = vmatpush.msrb.mxu1 %v2887_v40 }
 0x519   :  { %2318 = vtanh.f32 %v2981_v24 }
 0x51a   :  { %1229 = vmatpush.msrb.mxu2 %v2892_v17  ;;  %1271 = vmatpush.msrb.mxu1 %v2892_v17 }
 0x51c   :  { %1230 = vmatpush.msrb.mxu2 %v2898_v5  ;;  %1272 = vmatpush.msrb.mxu1 %v2898_v5 }
 0x51e   :  { %1231 = vmatpush.msrb.mxu2 %v2904_v6  ;;  %1273 = vmatpush.msrb.mxu1 %v2904_v6 }
 0x51f   :  { %v2319_v25 = vpop.eup %2318 }
 0x520   :  { %v873_v52 = vmul.f32 %v2319_v25, %v871_v51  ;;  %1232 = vmatpush.msrb.mxu2 %v2910_v7  ;;  %1274 = vmatpush.msrb.mxu1 %v2910_v7  ;;  %v3105_v25 = vld [vmem:[%s3740_s7 + $0x58] sm:$0xff]  ;;  %v3110_v51 = vld [vmem:[%s3740_s7 + $0x50] sm:$0xff] }
 0x522   :  { %875 = vst [vmem:[#allocation3 + $0x6] sm:$0x3] %v873_v52  ;;  %909 = vmatmul.f32.vlgmr.msrb.gmra.mxu0 %v873_v52  ;;  %1233 = vmatpush.msrb.mxu2 %v2917_v8  ;;  %v3118_v52 = vld [vmem:[%s3740_s7 + $0x48] sm:$0xff] }
 0x523   :  { %1354 = vmatpush.msrb.mxu0 %v2887_v40  ;;  %1275 = vmatpush.msrb.mxu1 %v2917_v8 }
 0x524   :  { %1234 = vmatpush.msrb.mxu2 %v2923_v9 }
 0x525   :  { %1355 = vmatpush.msrb.mxu0 %v2892_v17  ;;  %1276 = vmatpush.msrb.mxu1 %v2923_v9 }
 0x526   :  { %1235 = vmatpush.msrb.mxu2 %v2929_v10 }
 0x527   :  { %1356 = vmatpush.msrb.mxu0 %v2898_v5  ;;  %1277 = vmatpush.msrb.mxu1 %v2929_v10 }
 0x528   :  { %1236 = vmatpush.msrb.mxu2 %v2935_v11 }
 0x529   :  { %1357 = vmatpush.msrb.mxu0 %v2904_v6  ;;  %1278 = vmatpush.msrb.mxu1 %v2935_v11 }
 0x52a   :  { %1202 = vmatmul.f32.vlgmr.msra.gmra.mxu0 %v1165_v53  ;;  %1237 = vmatpush.msrb.mxu2 %v2940_v12  ;;  %v3126_v53 = vld [vmem:[%s3740_s7 + $0x40] sm:$0xff] }
 0x52b   :  { %1358 = vmatpush.msrb.mxu0 %v2910_v7  ;;  %1279 = vmatpush.msrb.mxu1 %v2940_v12 }
 0x52c   :  { %1238 = vmatpush.msrb.mxu2 %v2946_v14 }
 0x52d   :  { %1359 = vmatpush.msrb.mxu0 %v2917_v8  ;;  %1280 = vmatpush.msrb.mxu1 %v2946_v14 }
 0x52e   :  { %1239 = vmatpush.msrb.mxu2 %v2952_v16 }
 0x52f   :  { %1360 = vmatpush.msrb.mxu0 %v2923_v9  ;;  %1281 = vmatpush.msrb.mxu1 %v2952_v16 }
 0x530   :  { %1240 = vmatpush.msrb.mxu2 %v2959_v18 }
 0x531   :  { %1361 = vmatpush.msrb.mxu0 %v2929_v10  ;;  %1282 = vmatpush.msrb.mxu1 %v2959_v18 }
 0x532   :  { %1241 = vmatpush.msrb.mxu2 %v2964_v20 }
 0x533   :  { %1362 = vmatpush.msrb.mxu0 %v2935_v11  ;;  %1283 = vmatpush.msrb.mxu1 %v2964_v20 }
 0x534   :  { %1242 = vmatpush.msrb.mxu2 %v2970_v47 }
 0x535   :  { %1363 = vmatpush.msrb.mxu0 %v2940_v12  ;;  %1284 = vmatpush.msrb.mxu1 %v2970_v47 }
 0x536   :  { %1243 = vmatpush.msrb.mxu2 %v2976_v48 }
 0x537   :  { %1364 = vmatpush.msrb.mxu0 %v2946_v14  ;;  %1285 = vmatpush.msrb.mxu1 %v2976_v48 }
 0x539   :  { %1365 = vmatpush.msrb.mxu0 %v2952_v16 }
 0x53b   :  { %1366 = vmatpush.msrb.mxu0 %v2959_v18 }
 0x53d   :  { %1367 = vmatpush.msrb.mxu0 %v2964_v20 }
 0x53f   :  { %1368 = vmatpush.msrb.mxu0 %v2970_v47 }
 0x541   :  { %1369 = vmatpush.msrb.mxu0 %v2976_v48 }
 0x543   :  { %1518 = vmatpush.msra.mxu0 %v3052_v4 }
 0x545   :  { %1519 = vmatpush.msra.mxu0 %v3081_v49 }
 0x547   :  { %1520 = vmatpush.msra.mxu0 %v3089_v23 }
 0x549   :  { %1521 = vmatpush.msra.mxu0 %v3097_v50 }
 0x54b   :  { %1522 = vmatpush.msra.mxu0 %v3105_v25 }
 0x54d   :  { %1523 = vmatpush.msra.mxu0 %v3110_v51 }
 0x54f   :  { %1524 = vmatpush.msra.mxu0 %v3118_v52 }
 0x551   :  { %1525 = vmatpush.msra.mxu0 %v3126_v53 }
 0x59f   :  { %v910_v55 = vpop.f32.mrf.mxu0 }
 0x5a0   :  { %v913_v56 = vadd.f32 %v910_v55, %v876_v54  ;;  %v3137_v54 = vld [vmem:[%s3740_s7 + $0x38] sm:$0xff]  ;;  %v3142_v55 = vld [vmem:[%s3740_s7 + $0x30] sm:$0xff] }
 0x5a1   :  { %1526 = vmatpush.msra.mxu0 %v3137_v54 }
 0x5a2   :  { %v2244_v59 = vmul.f32 -1.442695, %v913_v56 }
 0x5a3   :  { %1527 = vmatpush.msra.mxu0 %v3142_v55 }
 0x5a4   :  { %2320 = vpow2.f32 %v2244_v59  ;;  %v3173_v59 = vld [vmem:[%s3740_s7 + $0x10] sm:$0xff] }
 0x5a7   :  { %v1203_v0 = vpop.f32.mrf.mxu0 }
 0x5a8   :  { %v1204_v3 = vadd.f32 %v2278_v61, %v1203_v0  ;;  %v3185_v61 = vld [vmem:[%s3740_s7] sm:$0xff] }
 0x5aa   :  { %v2321_v19 = vpop.eup %2320  ;;  %1206 = vst [vmem:[#allocation2] sm:$0x3] %v1204_v3 }
 0x5ab   :  { %v918_v27 = vadd.f32 1.0, %v2321_v19 }
 0x5ad   :  { %2322 = vrcp.f32 %v918_v27  ;;  %v930_v33 = vand.u32 2147483648, %v918_v27  ;;  %v928_v35 = vand.u32 2147483647, %v918_v27  ;;  %vm924_vm1 = vweird.f32 %v918_v27 }
 0x5ae   :  { %2324 = vtanh.f32 %v913_v56  ;;  %v3150_v56 = vld [vmem:[%s3740_s7 + $0x28] sm:$0xff] }
 0x5af   :  { %v931_v37 = vor.u32 1.1754944e-38, %v930_v33  ;;  %vm929_vm4 = vcmp.eq.f32.partialorder %v928_v35, 8.507059e+37  ;;  %1528 = vmatpush.msra.mxu0 %v3150_v56 }
 0x5b1   :  { %1529 = vmatpush.msra.mxu0 %v3158_v57 }
 0x5b3   :  { %v2323_v30 = vpop.eup %2322  ;;  %1530 = vmatpush.msra.mxu0 %v3168_v58 }
 0x5b4   :  { %v920_v31 = vmul.f32 %v2323_v30, %v918_v27  ;;  %vm925_vm15 = vweird.f32 %v2323_v30  ;;  %v2325_v39 = vpop.eup %2324 }
 0x5b5   :  { %vm926_vm3 = vmor %vm924_vm1, %vm925_vm15  ;;  %1531 = vmatpush.msra.mxu0 %v3173_v59 }
 0x5b6   :  { %v921_v32 = vsub.f32 1.0, %v920_v31 }
 0x5b7   :  { %1532 = vmatpush.msra.mxu0 %v3179_v60 }
 0x5b8   :  { %v922_v34 = vmul.f32 %v2323_v30, %v921_v32 }
 0x5b9   :  { %1533 = vmatpush.msra.mxu0 %v3185_v61 }
 0x5ba   :  { %v923_v36 = vadd.f32 %v2323_v30, %v922_v34 }
 0x5bc   :  { %v927_v38 = vsel %vm926_vm3, %v2323_v30, %v923_v36 }
 0x5bd   :  { %v932_v41 = vsel %vm929_vm4, %v931_v37, %v927_v38 }
 0x5be   :  { %v3032_v42 = vsel %vm2747_vm8, %v2325_v39, %v932_v41 }
 0x5bf   :  { %942 = vrot.lane.b32.xlu2 %v3032_v42, %s2443_s21  ;;  %937 = vrot.lane.b32.xlu1 %v3032_v42, %s2445_s23  ;;  %v940_v3 = vmul.f32 %v3032_v42, %v2981_v24 }
 0x5c0   :  { %935 = vrot.lane.b32.xlu0 %v3032_v42, %s2444_s22 }
 0x619   :  { %v943_v22 = vpop.permute.xlu2 %942 }
 0x631   :  { %v938_v62 = vpop.permute.xlu1 %937 }
 0x632   :  { %v936_v2 = vpop.permute.xlu0 %935 }
 0x633   :  { %v939_v0 = vmul.f32 %v938_v62, %v936_v2 }
 0x635   :  { %v3191_v1 = vadd.f32 %v940_v3, %v939_v0 }
 0x637   :  { %2326 = vtanh.f32 %v3191_v1 }
 0x63d   :  { %v2327_v19 = vpop.eup %2326 }
 0x63e   :  { %v945_v27 = vmul.f32 %v2327_v19, %v943_v22 }
 0x640   :  { %947 = vst [vmem:[#allocation3 + $0x8] sm:$0x3] %v945_v27  ;;  %981 = vmatmul.f32.vlgmr.msra.gmra.mxu2 %v945_v27 }
 0x641   :  { %1396 = vmatpush.msra.mxu2 %v2887_v40 }
 0x643   :  { %1397 = vmatpush.msra.mxu2 %v2892_v17 }
 0x645   :  { %1398 = vmatpush.msra.mxu2 %v2898_v5 }
 0x647   :  { %v1333_v29 = vld [vmem:[#allocation3 + $0x8] sm:$0x3]  ;;  %1399 = vmatpush.msra.mxu2 %v2904_v6 }
 0x648   :  { %1244 = vmatmul.f32.vlgmr.msrb.gmra.mxu2 %v1207_v28  ;;  %1370 = vmatmul.f32.vlgmr.msrb.gmra.mxu0 %v1333_v29 }
 0x649   :  { %1400 = vmatpush.msra.mxu2 %v2910_v7  ;;  %v948_v7 = vld [vmem:[#allocation2 + $0xa] sm:$0x3] }
 0x64b   :  { %1401 = vmatpush.msra.mxu2 %v2917_v8 }
 0x64d   :  { %1402 = vmatpush.msra.mxu2 %v2923_v9 }
 0x64f   :  { %1403 = vmatpush.msra.mxu2 %v2929_v10 }
 0x650   :  { %1534 = vmatmul.f32.vlgmr.msra.gmra.mxu0 %v2442_v26  ;;  %v2279_v26 = vld [vmem:[%s3741_s8] ss:$0 sm:$0xff] }
 0x651   :  { %1404 = vmatpush.msra.mxu2 %v2935_v11 }
 0x653   :  { %1405 = vmatpush.msra.mxu2 %v2940_v12 }
 0x655   :  { %1406 = vmatpush.msra.mxu2 %v2946_v14 }
 0x657   :  { %1407 = vmatpush.msra.mxu2 %v2952_v16 }
 0x659   :  { %1408 = vmatpush.msra.mxu2 %v2959_v18  ;;  %v2280_v18 = vld [vmem:[%s3741_s8] ss:$0 sm:$0xff] }
 0x65b   :  { %1409 = vmatpush.msra.mxu2 %v2964_v20 }
 0x65d   :  { %1410 = vmatpush.msra.mxu2 %v2970_v47 }
 0x65f   :  { %1411 = vmatpush.msra.mxu2 %v2976_v48  ;;  %v1501_v48 = vld [vmem:[#allocation2] sm:$0x3] }
 0x661   :  { %1589 = vmatpush.msrb.mxu2 %v3052_v4 }
 0x663   :  { %1590 = vmatpush.msrb.mxu2 %v3081_v49 }
 0x665   :  { %1591 = vmatpush.msrb.mxu2 %v3089_v23 }
 0x667   :  { %1592 = vmatpush.msrb.mxu2 %v3097_v50 }
 0x669   :  { %1593 = vmatpush.msrb.mxu2 %v3105_v25 }
 0x66b   :  { %1594 = vmatpush.msrb.mxu2 %v3110_v51 }
 0x66d   :  { %1595 = vmatpush.msrb.mxu2 %v3118_v52 }
 0x66f   :  { %1596 = vmatpush.msrb.mxu2 %v3126_v53 }
 0x671   :  { %1597 = vmatpush.msrb.mxu2 %v3137_v54 }
 0x673   :  { %1598 = vmatpush.msrb.mxu2 %v3142_v55 }
 0x675   :  { %1599 = vmatpush.msrb.mxu2 %v3150_v56 }
 0x677   :  { %1600 = vmatpush.msrb.mxu2 %v3158_v57 }
 0x679   :  { %1601 = vmatpush.msrb.mxu2 %v3168_v58 }
 0x67b   :  { %1602 = vmatpush.msrb.mxu2 %v3173_v59 }
 0x67d   :  { %1603 = vmatpush.msrb.mxu2 %v3179_v60 }
 0x67f   :  { %1604 = vmatpush.msrb.mxu2 %v3185_v61 }
 0x6c3   :  { %v982_v10 = vpop.f32.mrf.mxu2 }
 0x6c4   :  { %v985_v11 = vadd.f32 %v982_v10, %v948_v7 }
 0x6c5   :  { %v1371_v12 = vpop.f32.mrf.mxu0 }
 0x6c6   :  { %v2245_v14 = vmul.f32 -1.442695, %v985_v11  ;;  %v1372_v16 = vadd.f32 %v2279_v26, %v1371_v12 }
 0x6c8   :  { %2328 = vpow2.f32 %v2245_v14  ;;  %1374 = vst [vmem:[#allocation2 + $0x8] sm:$0x3] %v1372_v16 }
 0x6cb   :  { %v1245_v20 = vpop.f32.mrf.mxu2 }
 0x6cc   :  { %v1246_v47 = vadd.f32 %v2280_v18, %v1245_v20 }
 0x6cd   :  { %v1535_v24 = vpop.f32.mrf.mxu0 }
 0x6ce   :  { %v2329_v30 = vpop.eup %2328  ;;  %1248 = vst [vmem:[#allocation2 + $0x2] sm:$0x3] %v1246_v47  ;;  %v1538_v31 = vadd.f32 %v1535_v24, %v1501_v48 }
 0x6cf   :  { %v990_v32 = vadd.f32 1.0, %v2329_v30 }
 0x6d0   :  { %v2248_v33 = vmul.f32 -1.442695, %v1538_v31 }
 0x6d1   :  { %2330 = vrcp.f32 %v990_v32  ;;  %v1002_v39 = vand.u32 2147483648, %v990_v32  ;;  %v1000_v42 = vand.u32 2147483647, %v990_v32  ;;  %vm996_vm5 = vweird.f32 %v990_v32 }
 0x6d2   :  { %2332 = vpow2.f32 %v2248_v33 }
 0x6d3   :  { %2334 = vtanh.f32 %v985_v11  ;;  %v1003_v44 = vor.u32 1.1754944e-38, %v1002_v39  ;;  %vm1001_vm7 = vcmp.eq.f32.partialorder %v1000_v42, 8.507059e+37 }
 0x6d7   :  { %v2331_v34 = vpop.eup %2330 }
 0x6d8   :  { %v2333_v35 = vpop.eup %2332  ;;  %v992_v36 = vmul.f32 %v2331_v34, %v990_v32  ;;  %vm997_vm0 = vweird.f32 %v2331_v34 }
 0x6d9   :  { %v1543_v37 = vadd.f32 1.0, %v2333_v35  ;;  %vm998_vm6 = vmor %vm996_vm5, %vm997_vm0  ;;  %v2335_v45 = vpop.eup %2334 }
 0x6da   :  { %v993_v38 = vsub.f32 1.0, %v992_v36 }
 0x6db   :  { %2336 = vrcp.f32 %v1543_v37  ;;  %v1555_v0 = vand.u32 2147483648, %v1543_v37  ;;  %v1553_v19 = vand.u32 2147483647, %v1543_v37  ;;  %vm1549_vm10 = vweird.f32 %v1543_v37 }
 0x6dc   :  { %v994_v41 = vmul.f32 %v2331_v34, %v993_v38  ;;  %2338 = vtanh.f32 %v1538_v31 }
 0x6dd   :  { %v1556_v27 = vor.u32 1.1754944e-38, %v1555_v0  ;;  %vm1554_vm12 = vcmp.eq.f32.partialorder %v1553_v19, 8.507059e+37 }
 0x6de   :  { %v995_v43 = vadd.f32 %v2331_v34, %v994_v41 }
 0x6e0   :  { %v999_v13 = vsel %vm998_vm6, %v2331_v34, %v995_v43  ;;  %v1249_v34 = vld [vmem:[#allocation3 + $0x4] sm:$0x3] }
 0x6e1   :  { %v2337_v15 = vpop.eup %2336  ;;  %v1004_v46 = vsel %vm1001_vm7, %v1003_v44, %v999_v13 }
 0x6e2   :  { %v1006_v21 = vsel %vm2747_vm8, %v2335_v45, %v1004_v46  ;;  %v1545_v62 = vmul.f32 %v2337_v15, %v1543_v37  ;;  %vm1550_vm9 = vweird.f32 %v2337_v15  ;;  %v2339_v29 = vpop.eup %2338  ;;  %v1020_v37 = vld [vmem:[#allocation2 + $0xc] sm:$0x3]  ;;  %v1572_v46 = vld [vmem:[#allocation2 + $0x2] sm:$0x3] }
 0x6e3   :  { %1014 = vrot.lane.b32.xlu2 %v1006_v21, %s2443_s21  ;;  %1009 = vrot.lane.b32.xlu1 %v1006_v21, %s2445_s23  ;;  %vm1551_vm11 = vmor %vm1549_vm10, %vm1550_vm9  ;;  %v1012_v14 = vmul.f32 %v1006_v21, %v3191_v1 }
 0x6e4   :  { %1007 = vrot.lane.b32.xlu0 %v1006_v21, %s2444_s22  ;;  %v1546_v2 = vsub.f32 1.0, %v1545_v62 }
 0x6e6   :  { %v1547_v3 = vmul.f32 %v2337_v15, %v1546_v2 }
 0x6e8   :  { %v1548_v22 = vadd.f32 %v2337_v15, %v1547_v3 }
 0x6ea   :  { %v1552_v28 = vsel %vm1551_vm11, %v2337_v15, %v1548_v22 }
 0x6eb   :  { %v1557_v26 = vsel %vm1554_vm12, %v1556_v27, %v1552_v28 }
 0x6ec   :  { %v1559_v7 = vsel %vm2747_vm8, %v2339_v29, %v1557_v26 }
 0x6ed   :  { %1567 = vrot.lane.b32.xlu2 %v1559_v7, %s2443_s21  ;;  %1562 = vrot.lane.b32.xlu1 %v1559_v7, %s2445_s23  ;;  %v1565_v30 = vmul.f32 0.0, %v1559_v7 }
 0x6ee   :  { %1560 = vrot.lane.b32.xlu0 %v1559_v7, %s2444_s22 }
 0x73d   :  { %v1015_v48 = vpop.permute.xlu2 %1014 }
 0x747   :  { %v1568_v33 = vpop.permute.xlu2 %1567 }
 0x755   :  { %v1010_v10 = vpop.permute.xlu1 %1009 }
 0x756   :  { %v1008_v11 = vpop.permute.xlu0 %1007 }
 0x757   :  { %v1011_v12 = vmul.f32 %v1010_v10, %v1008_v11 }
 0x759   :  { %v3244_v16 = vadd.f32 %v1012_v14, %v1011_v12 }
 0x75b   :  { %2340 = vtanh.f32 %v3244_v16 }
 0x75f   :  { %v1563_v18 = vpop.permute.xlu1 %1562 }
 0x760   :  { %v1561_v20 = vpop.permute.xlu0 %1560 }
 0x761   :  { %v2341_v47 = vpop.eup %2340  ;;  %v1564_v24 = vmul.f32 %v1563_v18, %v1561_v20 }
 0x762   :  { %v1017_v31 = vmul.f32 %v2341_v47, %v1015_v48 }
 0x763   :  { %v3247_v32 = vadd.f32 %v1565_v30, %v1564_v24 }
 0x764   :  { %1019 = vst [vmem:[#allocation3 + $0xa] sm:$0x3] %v1017_v31  ;;  %1053 = vmatmul.f32.vlgmr.msra.gmra.mxu1 %v1017_v31 }
 0x765   :  { %2342 = vtanh.f32 %v3247_v32  ;;  %1438 = vmatpush.msra.mxu1 %v2887_v40  ;;  %v2281_v40 = vld [vmem:[%s3741_s8] ss:$0 sm:$0xff] }
 0x767   :  { %1439 = vmatpush.msra.mxu1 %v2892_v17 }
 0x769   :  { %1440 = vmatpush.msra.mxu1 %v2898_v5 }
 0x76b   :  { %v2343_v1 = vpop.eup %2342  ;;  %v1375_v35 = vld [vmem:[#allocation3 + $0xa] sm:$0x3]  ;;  %1441 = vmatpush.msra.mxu1 %v2904_v6  ;;  %v2282_v6 = vld [vmem:[%s3741_s8] ss:$0 sm:$0xff] }
 0x76c   :  { %1286 = vmatmul.f32.vlgmr.msrb.gmra.mxu1 %v1249_v34  ;;  %1412 = vmatmul.f32.vlgmr.msra.gmra.mxu2 %v1375_v35  ;;  %v1570_v36 = vmul.f32 %v2343_v1, %v1568_v33 }
 0x76e   :  { %1571 = vst [vmem:[#allocation3] sm:$0x3] %v1570_v36 }
 0x774   :  { %1605 = vmatmul.f32.vlgmr.msrb.gmra.mxu2 %v1570_v36  ;;  %v3283_v36 = vld [vmem:[%s3739_s6 + $0x58] sm:$0xff] }
 0x775   :  { %1442 = vmatpush.msra.mxu1 %v3283_v36 }
 0x777   :  { %1443 = vmatpush.msra.mxu1 %v2917_v8  ;;  %v3318_v8 = vld [vmem:[%s3739_s6 + $0x38] sm:$0xff] }
 0x779   :  { %1444 = vmatpush.msra.mxu1 %v2923_v9  ;;  %v3332_v9 = vld [vmem:[%s3739_s6 + $0x28] sm:$0xff] }
 0x7e1   :  { %v1054_v38 = vpop.f32.mrf.mxu1 }
 0x7e2   :  { %v1057_v39 = vadd.f32 %v1054_v38, %v1020_v37  ;;  %v3289_v37 = vld [vmem:[%s3739_s6 + $0x78] sm:$0xff]  ;;  %v3294_v38 = vld [vmem:[%s3739_s6 + $0x70] sm:$0xff] }
 0x7e3   :  { %1312 = vmatpush.msra.mxu3 %v3289_v37 }
 0x7e4   :  { %v2246_v41 = vmul.f32 -1.442695, %v1057_v39 }
 0x7e5   :  { %1313 = vmatpush.msra.mxu3 %v3294_v38 }
 0x7e6   :  { %2344 = vpow2.f32 %v2246_v41  ;;  %v3306_v41 = vld [vmem:[%s3739_s6 + $0x40] sm:$0xff] }
 0x7e7   :  { %1445 = vmatpush.msra.mxu1 %v3306_v41 }
 0x7e9   :  { %v1287_v17 = vpop.f32.mrf.mxu1  ;;  %1446 = vmatpush.msra.mxu1 %v3318_v8 }
 0x7ea   :  { %v1288_v5 = vadd.f32 %v2281_v40, %v1287_v17  ;;  %v3313_v40 = vld [vmem:[%s3739_s6 + $0x60] sm:$0xff]  ;;  %v3325_v17 = vld [vmem:[%s3739_s6 + $0x30] sm:$0xff] }
 0x7eb   :  { %1447 = vmatpush.msra.mxu1 %v3325_v17 }
 0x7ec   :  { %v2345_v42 = vpop.eup %2344  ;;  %1290 = vst [vmem:[#allocation2 + $0x4] sm:$0x3] %v1288_v5  ;;  %v3339_v5 = vld [vmem:[%s3739_s6 + $0x20] sm:$0xff] }
 0x7ed   :  { %v1062_v43 = vadd.f32 1.0, %v2345_v42  ;;  %1448 = vmatpush.msra.mxu1 %v3332_v9  ;;  %v3345_v42 = vld [vmem:[%s3739_s6 + $0x18] sm:$0xff] }
 0x7ef   :  { %2346 = vrcp.f32 %v1062_v43  ;;  %v1413_v44 = vpop.f32.mrf.mxu2  ;;  %v1074_v0 = vand.u32 2147483648, %v1062_v43  ;;  %v1072_v22 = vand.u32 2147483647, %v1062_v43  ;;  %vm1068_vm14 = vweird.f32 %v1062_v43  ;;  %1449 = vmatpush.msra.mxu1 %v3339_v5 }
 0x7f0   :  { %v1414_v45 = vadd.f32 %v2282_v6, %v1413_v44  ;;  %2348 = vtanh.f32 %v1057_v39  ;;  %v3301_v39 = vld [vmem:[%s3739_s6 + $0x68] sm:$0xff]  ;;  %v3352_v6 = vld [vmem:[%s3739_s6 + $0x10] sm:$0xff] }
 0x7f1   :  { %v1075_v28 = vor.u32 1.1754944e-38, %v1074_v0  ;;  %vm1073_vm1 = vcmp.eq.f32.partialorder %v1072_v22, 8.507059e+37  ;;  %1314 = vmatpush.msra.mxu3 %v3301_v39  ;;  %1450 = vmatpush.msra.mxu1 %v3345_v42  ;;  %v3361_v44 = vld [vmem:[%s3739_s6 + $0x8] sm:$0xff] }
 0x7f2   :  { %1416 = vst [vmem:[#allocation2 + $0xa] sm:$0x3] %v1414_v45  ;;  %v1301_v45 = vld [vmem:[%s3739_s6 + $0x48] sm:$0xff] }
 0x7f3   :  { %1315 = vmatpush.msra.mxu3 %v3313_v40  ;;  %1451 = vmatpush.msra.mxu1 %v3352_v6 }
 0x7f5   :  { %v2347_v13 = vpop.eup %2346  ;;  %1316 = vmatpush.msra.mxu3 %v3283_v36  ;;  %1452 = vmatpush.msra.mxu1 %v3361_v44 }
 0x7f6   :  { %v1064_v15 = vmul.f32 %v2347_v13, %v1062_v43  ;;  %vm1069_vm13 = vweird.f32 %v2347_v13  ;;  %v2349_v26 = vpop.eup %2348  ;;  %v1302_v43 = vld [vmem:[%s3739_s6 + $0x50] sm:$0xff] }
 0x7f7   :  { %v1606_v21 = vpop.f32.mrf.mxu2  ;;  %vm1070_vm15 = vmor %vm1068_vm14, %vm1069_vm13  ;;  %1317 = vmatpush.msra.mxu3 %v1302_v43 }
 0x7f8   :  { %v1609_v62 = vadd.f32 %v1606_v21, %v1572_v46  ;;  %v1065_v2 = vsub.f32 1.0, %v1064_v15  ;;  %v1092_v46 = vld [vmem:[#allocation2 + $0xe] sm:$0x3] }
 0x7f9   :  { %1318 = vmatpush.msra.mxu3 %v1301_v45 }
 0x7fa   :  { %v2249_v3 = vmul.f32 -1.442695, %v1609_v62  ;;  %v1066_v19 = vmul.f32 %v2347_v13, %v1065_v2 }
 0x7fb   :  { %1319 = vmatpush.msra.mxu3 %v3306_v41 }
 0x7fc   :  { %2350 = vpow2.f32 %v2249_v3  ;;  %v1067_v27 = vadd.f32 %v2347_v13, %v1066_v19  ;;  %v2284_v19 = vld [vmem:[%s3741_s8] ss:$0 sm:$0xff] }
 0x7fd   :  { %1320 = vmatpush.msra.mxu3 %v3318_v8 }
 0x7fe   :  { %v1071_v29 = vsel %vm1070_vm15, %v2347_v13, %v1067_v27  ;;  %v3370_v13 = vld [vmem:[%s3739_s6] sm:$0xff] }
 0x7ff   :  { %v1076_v7 = vsel %vm1073_vm1, %v1075_v28, %v1071_v29  ;;  %1453 = vmatpush.msra.mxu1 %v3370_v13  ;;  %1321 = vmatpush.msra.mxu3 %v3325_v17 }
 0x800   :  { %v3262_v10 = vsel %vm2747_vm8, %v2349_v26, %v1076_v7  ;;  %v1643_v26 = vld [vmem:[#allocation2 + $0x4] sm:$0x3] }
 0x801   :  { %1086 = vrot.lane.b32.xlu2 %v3262_v10, %s2443_s21  ;;  %1081 = vrot.lane.b32.xlu1 %v3262_v10, %s2445_s23 }
 0x802   :  { %v2351_v11 = vpop.eup %2350  ;;  %1079 = vrot.lane.b32.xlu0 %v3262_v10, %s2444_s22  ;;  %1660 = vmatpush.msrb.mxu1 %v3052_v4 }
 0x803   :  { %v1614_v12 = vadd.f32 1.0, %v2351_v11  ;;  %1322 = vmatpush.msra.mxu3 %v3332_v9 }
 0x804   :  { %1661 = vmatpush.msrb.mxu1 %v3081_v49 }
 0x805   :  { %2352 = vrcp.f32 %v1614_v12  ;;  %v1626_v47 = vand.u32 2147483648, %v1614_v12  ;;  %v1624_v24 = vand.u32 2147483647, %v1614_v12  ;;  %vm1620_vm4 = vweird.f32 %v1614_v12  ;;  %1323 = vmatpush.msra.mxu3 %v3339_v5 }
 0x806   :  { %2354 = vtanh.f32 %v1609_v62  ;;  %1662 = vmatpush.msrb.mxu1 %v3089_v23  ;;  %v1084_v23 = vmul.f32 %v3262_v10, %v3244_v16 }
 0x807   :  { %v1627_v31 = vor.u32 1.1754944e-38, %v1626_v47  ;;  %vm1625_vm5 = vcmp.eq.f32.partialorder %v1624_v24, 8.507059e+37  ;;  %1324 = vmatpush.msra.mxu3 %v3345_v42 }
 0x808   :  { %1663 = vmatpush.msrb.mxu1 %v3097_v50 }
 0x809   :  { %1325 = vmatpush.msra.mxu3 %v3352_v6 }
 0x80a   :  { %1664 = vmatpush.msrb.mxu1 %v3105_v25 }
 0x80b   :  { %v2353_v14 = vpop.eup %2352  ;;  %1326 = vmatpush.msra.mxu3 %v3361_v44 }
 0x80c   :  { %v1616_v18 = vmul.f32 %v2353_v14, %v1614_v12  ;;  %vm1621_vm3 = vweird.f32 %v2353_v14  ;;  %v2355_v33 = vpop.eup %2354  ;;  %1665 = vmatpush.msrb.mxu1 %v3110_v51 }
 0x80d   :  { %vm1622_vm0 = vmor %vm1620_vm4, %vm1621_vm3  ;;  %1327 = vmatpush.msra.mxu3 %v3370_v13 }
 0x80e   :  { %v1617_v20 = vsub.f32 1.0, %v1616_v18  ;;  %1666 = vmatpush.msrb.mxu1 %v3118_v52 }
 0x810   :  { %v1618_v48 = vmul.f32 %v2353_v14, %v1617_v20  ;;  %1667 = vmatpush.msrb.mxu1 %v3126_v53 }
 0x812   :  { %v1619_v30 = vadd.f32 %v2353_v14, %v1618_v48  ;;  %1668 = vmatpush.msrb.mxu1 %v3137_v54  ;;  %v1291_v54 = vld [vmem:[#allocation3 + $0x6] sm:$0x3] }
 0x814   :  { %v1623_v1 = vsel %vm1622_vm0, %v2353_v14, %v1619_v30  ;;  %1669 = vmatpush.msrb.mxu1 %v3142_v55 }
 0x815   :  { %v1628_v34 = vsel %vm1625_vm5, %v1627_v31, %v1623_v1 }
 0x816   :  { %v3272_v35 = vsel %vm2747_vm8, %v2355_v33, %v1628_v34  ;;  %1670 = vmatpush.msrb.mxu1 %v3150_v56 }
 0x817   :  { %1638 = vrot.lane.b32.xlu2 %v3272_v35, %s2443_s21  ;;  %1633 = vrot.lane.b32.xlu1 %v3272_v35, %s2445_s23 }
 0x818   :  { %1631 = vrot.lane.b32.xlu0 %v3272_v35, %s2444_s22  ;;  %1671 = vmatpush.msrb.mxu1 %v3158_v57 }
 0x81a   :  { %1672 = vmatpush.msrb.mxu1 %v3168_v58 }
 0x81c   :  { %1673 = vmatpush.msrb.mxu1 %v3173_v59  ;;  %v1636_v59 = vmul.f32 %v3272_v35, %v3247_v32  ;;  %v2283_v32 = vld [vmem:[%s3741_s8] ss:$0 sm:$0xff] }
 0x81e   :  { %1674 = vmatpush.msrb.mxu1 %v3179_v60 }
 0x820   :  { %1675 = vmatpush.msrb.mxu1 %v3185_v61 }
 0x85b   :  { %v1087_v52 = vpop.permute.xlu2 %1086 }
 0x871   :  { %v1639_v16 = vpop.permute.xlu2 %1638 }
 0x873   :  { %v1082_v4 = vpop.permute.xlu1 %1081 }
 0x874   :  { %v1080_v49 = vpop.permute.xlu0 %1079 }
 0x875   :  { %v1083_v50 = vmul.f32 %v1082_v4, %v1080_v49  ;;  %v3476_v4 = vld [vmem:[%s3740_s7 + $0x60] sm:$0xff]  ;;  %v3485_v49 = vld [vmem:[%s3740_s7 + $0x58] sm:$0xff] }
 0x877   :  { %v3399_v25 = vadd.f32 %v1084_v23, %v1083_v50  ;;  %v3494_v23 = vld [vmem:[%s3740_s7 + $0x50] sm:$0xff]  ;;  %v3503_v50 = vld [vmem:[%s3740_s7 + $0x48] sm:$0xff] }
 0x879   :  { %2356 = vtanh.f32 %v3399_v25 }
 0x87f   :  { %v2357_v51 = vpop.eup %2356 }
 0x880   :  { %v1089_v53 = vmul.f32 %v2357_v51, %v1087_v52  ;;  %v3512_v51 = vld [vmem:[%s3740_s7 + $0x40] sm:$0xff]  ;;  %v3521_v52 = vld [vmem:[%s3740_s7 + $0x38] sm:$0xff] }
 0x882   :  { %1091 = vst [vmem:[#allocation3 + $0xc] sm:$0x3] %v1089_v53  ;;  %1125 = vmatmul.f32.vlgmr.msrb.gmra.mxu3 %v1089_v53  ;;  %v3530_v53 = vld [vmem:[%s3740_s7 + $0x30] sm:$0xff] }
 0x883   :  { %1480 = vmatpush.msrb.mxu3 %v3289_v37 }
 0x885   :  { %1481 = vmatpush.msrb.mxu3 %v3294_v38 }
 0x887   :  { %1482 = vmatpush.msrb.mxu3 %v3301_v39 }
 0x889   :  { %v1417_v55 = vld [vmem:[#allocation3 + $0xc] sm:$0x3]  ;;  %v1634_v56 = vpop.permute.xlu1 %1633  ;;  %1483 = vmatpush.msrb.mxu3 %v3313_v40 }
 0x88a   :  { %1328 = vmatmul.f32.vlgmr.msra.gmra.mxu3 %v1291_v54  ;;  %1454 = vmatmul.f32.vlgmr.msra.gmra.mxu1 %v1417_v55  ;;  %v1632_v57 = vpop.permute.xlu0 %1631  ;;  %v3539_v54 = vld [vmem:[%s3740_s7 + $0x28] sm:$0xff]  ;;  %v1719_v55 = vld [vmem:[%s3740_s7 + $0x20] sm:$0xff] }
 0x88b   :  { %v1635_v58 = vmul.f32 %v1634_v56, %v1632_v57  ;;  %1484 = vmatpush.msrb.mxu3 %v3283_v36  ;;  %v1718_v56 = vld [vmem:[%s3740_s7 + $0x18] sm:$0xff]  ;;  %v1717_v57 = vld [vmem:[%s3740_s7 + $0x10] sm:$0xff] }
 0x88d   :  { %v3410_v60 = vadd.f32 %v1636_v59, %v1635_v58  ;;  %1485 = vmatpush.msrb.mxu3 %v1302_v43  ;;  %v1716_v58 = vld [vmem:[%s3740_s7 + $0x8] sm:$0xff]  ;;  %v1715_v59 = vld [vmem:[%s3740_s7] sm:$0xff] }
 0x88f   :  { %2358 = vtanh.f32 %v3410_v60  ;;  %1486 = vmatpush.msrb.mxu3 %v1301_v45  ;;  %v3460_v45 = vld [vmem:[%s3740_s7 + $0x70] sm:$0xff] }
 0x891   :  { %1487 = vmatpush.msrb.mxu3 %v3306_v41 }
 0x893   :  { %1488 = vmatpush.msrb.mxu3 %v3318_v8 }
 0x895   :  { %v2359_v61 = vpop.eup %2358  ;;  %1489 = vmatpush.msrb.mxu3 %v3325_v17 }
 0x896   :  { %v1641_v15 = vmul.f32 %v2359_v61, %v1639_v16 }
 0x897   :  { %1490 = vmatpush.msrb.mxu3 %v3332_v9 }
 0x898   :  { %1642 = vst [vmem:[#allocation3 + $0x2] sm:$0x3] %v1641_v15  ;;  %1676 = vmatmul.f32.vlgmr.msrb.gmra.mxu1 %v1641_v15 }
 0x899   :  { %1491 = vmatpush.msrb.mxu3 %v3339_v5 }
 0x89b   :  { %1492 = vmatpush.msrb.mxu3 %v3345_v42 }
 0x89d   :  { %1493 = vmatpush.msrb.mxu3 %v3352_v6 }
 0x89f   :  { %1494 = vmatpush.msrb.mxu3 %v3361_v44  ;;  %v3451_v44 = vld [vmem:[%s3740_s7 + $0x78] sm:$0xff] }
 0x8a0   :  { %1802 = vmatpush.msrb.mxu0 %v3451_v44  ;;  %1873 = vmatpush.msra.mxu2 %v3451_v44 }
 0x8a1   :  { %1495 = vmatpush.msrb.mxu3 %v3370_v13  ;;  %1944 = vmatpush.msra.mxu1 %v3451_v44  ;;  %v3467_v13 = vld [vmem:[%s3740_s7 + $0x68] sm:$0xff] }
 0x8a2   :  { %1803 = vmatpush.msrb.mxu0 %v3460_v45  ;;  %1874 = vmatpush.msra.mxu2 %v3460_v45 }
 0x8a3   :  { %1731 = vmatpush.msra.mxu3 %v3451_v44  ;;  %1945 = vmatpush.msra.mxu1 %v3460_v45 }
 0x8a4   :  { %1804 = vmatpush.msrb.mxu0 %v3467_v13  ;;  %1875 = vmatpush.msra.mxu2 %v3467_v13 }
 0x8a5   :  { %1732 = vmatpush.msra.mxu3 %v3460_v45  ;;  %1946 = vmatpush.msra.mxu1 %v3467_v13 }
 0x8a6   :  { %1805 = vmatpush.msrb.mxu0 %v3476_v4  ;;  %1876 = vmatpush.msra.mxu2 %v3476_v4 }
 0x8a7   :  { %1733 = vmatpush.msra.mxu3 %v3467_v13  ;;  %1947 = vmatpush.msra.mxu1 %v3476_v4 }
 0x8a8   :  { %1806 = vmatpush.msrb.mxu0 %v3485_v49  ;;  %1877 = vmatpush.msra.mxu2 %v3485_v49 }
 0x8a9   :  { %1734 = vmatpush.msra.mxu3 %v3476_v4  ;;  %1948 = vmatpush.msra.mxu1 %v3485_v49 }
 0x8aa   :  { %1807 = vmatpush.msrb.mxu0 %v3494_v23  ;;  %1878 = vmatpush.msra.mxu2 %v3494_v23 }
 0x8ab   :  { %1735 = vmatpush.msra.mxu3 %v3485_v49  ;;  %1949 = vmatpush.msra.mxu1 %v3494_v23 }
 0x8ac   :  { %1808 = vmatpush.msrb.mxu0 %v3503_v50  ;;  %1879 = vmatpush.msra.mxu2 %v3503_v50 }
 0x8ad   :  { %1736 = vmatpush.msra.mxu3 %v3494_v23  ;;  %1950 = vmatpush.msra.mxu1 %v3503_v50 }
 0x8ae   :  { %1809 = vmatpush.msrb.mxu0 %v3512_v51  ;;  %1880 = vmatpush.msra.mxu2 %v3512_v51 }
 0x8af   :  { %1737 = vmatpush.msra.mxu3 %v3503_v50  ;;  %1951 = vmatpush.msra.mxu1 %v3512_v51 }
 0x8b0   :  { %1810 = vmatpush.msrb.mxu0 %v3521_v52  ;;  %1881 = vmatpush.msra.mxu2 %v3521_v52 }
 0x8b1   :  { %1738 = vmatpush.msra.mxu3 %v3512_v51  ;;  %1952 = vmatpush.msra.mxu1 %v3521_v52 }
 0x8b2   :  { %1811 = vmatpush.msrb.mxu0 %v3530_v53  ;;  %1882 = vmatpush.msra.mxu2 %v3530_v53 }
 0x8b3   :  { %1739 = vmatpush.msra.mxu3 %v3521_v52  ;;  %1953 = vmatpush.msra.mxu1 %v3530_v53 }
 0x8b4   :  { %1812 = vmatpush.msrb.mxu0 %v3539_v54  ;;  %1883 = vmatpush.msra.mxu2 %v3539_v54 }
 0x8b5   :  { %1740 = vmatpush.msra.mxu3 %v3530_v53  ;;  %1954 = vmatpush.msra.mxu1 %v3539_v54 }
 0x8b6   :  { %1813 = vmatpush.msrb.mxu0 %v1719_v55  ;;  %1884 = vmatpush.msra.mxu2 %v1719_v55 }
 0x8b7   :  { %1741 = vmatpush.msra.mxu3 %v3539_v54  ;;  %1955 = vmatpush.msra.mxu1 %v1719_v55 }
 0x8b8   :  { %1814 = vmatpush.msrb.mxu0 %v1718_v56  ;;  %1885 = vmatpush.msra.mxu2 %v1718_v56 }
 0x8b9   :  { %1742 = vmatpush.msra.mxu3 %v1719_v55  ;;  %1956 = vmatpush.msra.mxu1 %v1718_v56 }
 0x8ba   :  { %1815 = vmatpush.msrb.mxu0 %v1717_v57  ;;  %1886 = vmatpush.msra.mxu2 %v1717_v57 }
 0x8bb   :  { %1743 = vmatpush.msra.mxu3 %v1718_v56  ;;  %1957 = vmatpush.msra.mxu1 %v1717_v57 }
 0x8bc   :  { %1816 = vmatpush.msrb.mxu0 %v1716_v58  ;;  %1887 = vmatpush.msra.mxu2 %v1716_v58 }
 0x8bd   :  { %1744 = vmatpush.msra.mxu3 %v1717_v57  ;;  %1958 = vmatpush.msra.mxu1 %v1716_v58 }
 0x8be   :  { %1817 = vmatpush.msrb.mxu0 %v1715_v59  ;;  %1888 = vmatpush.msra.mxu2 %v1715_v59 }
 0x8bf   :  { %1745 = vmatpush.msra.mxu3 %v1716_v58  ;;  %1959 = vmatpush.msra.mxu1 %v1715_v59 }
 0x8c0   :  { %2140 = vmatpush.msrb.mxu2 %v2096_v63 }
 0x8c1   :  { %1746 = vmatpush.msra.mxu3 %v1715_v59 }
 0x905   :  { %v1126_v21 = vpop.f32.mrf.mxu3 }
 0x906   :  { %v1129_v62 = vadd.f32 %v1126_v21, %v1092_v46 }
 0x907   :  { %v1455_v2 = vpop.f32.mrf.mxu1 }
 0x908   :  { %v2247_v0 = vmul.f32 -1.442695, %v1129_v62  ;;  %v1456_v3 = vadd.f32 %v2283_v32, %v1455_v2 }
 0x90a   :  { %2360 = vpow2.f32 %v2247_v0  ;;  %1458 = vst [vmem:[#allocation2 + $0xc] sm:$0x3] %v1456_v3 }
 0x90d   :  { %v1329_v22 = vpop.f32.mrf.mxu3 }
 0x90e   :  { %v1330_v27 = vadd.f32 %v2284_v19, %v1329_v22 }
 0x910   :  { %v2361_v28 = vpop.eup %2360  ;;  %1332 = vst [vmem:[#allocation2 + $0x6] sm:$0x3] %v1330_v27 }
 0x911   :  { %v1134_v29 = vadd.f32 1.0, %v2361_v28 }
 0x913   :  { %2362 = vrcp.f32 %v1134_v29  ;;  %v1146_v20 = vand.u32 2147483648, %v1134_v29  ;;  %v1144_v48 = vand.u32 2147483647, %v1134_v29  ;;  %vm1140_vm7 = vweird.f32 %v1134_v29 }
 0x915   :  { %v1677_v7 = vpop.f32.mrf.mxu1  ;;  %v1147_v1 = vor.u32 1.1754944e-38, %v1146_v20  ;;  %vm1145_vm10 = vcmp.eq.f32.partialorder %v1144_v48, 8.507059e+37 }
 0x916   :  { %v1680_v10 = vadd.f32 %v1677_v7, %v1643_v26 }
 0x918   :  { %v2250_v11 = vmul.f32 -1.442695, %v1680_v10 }
 0x919   :  { %v2363_v12 = vpop.eup %2362 }
 0x91a   :  { %2364 = vpow2.f32 %v2250_v11  ;;  %v1136_v14 = vmul.f32 %v2363_v12, %v1134_v29  ;;  %vm1141_vm6 = vweird.f32 %v2363_v12  ;;  %v1714_v11 = vld [vmem:[#allocation2 + $0x6] sm:$0x3] }
 0x91b   :  { %2366 = vtanh.f32 %v1129_v62  ;;  %vm1142_vm9 = vmor %vm1140_vm7, %vm1141_vm6 }
 0x91c   :  { %v1137_v18 = vsub.f32 1.0, %v1136_v14 }
 0x91e   :  { %v1138_v47 = vmul.f32 %v2363_v12, %v1137_v18 }
 0x920   :  { %v2365_v24 = vpop.eup %2364  ;;  %v1139_v30 = vadd.f32 %v2363_v12, %v1138_v47 }
 0x921   :  { %v1685_v31 = vadd.f32 1.0, %v2365_v24  ;;  %v2367_v34 = vpop.eup %2366 }
 0x922   :  { %v1143_v33 = vsel %vm1142_vm9, %v2363_v12, %v1139_v30 }
 0x923   :  { %2368 = vrcp.f32 %v1685_v31  ;;  %v1148_v35 = vsel %vm1145_vm10, %v1147_v1, %v1143_v33  ;;  %v1697_v41 = vand.u32 2147483648, %v1685_v31  ;;  %v1695_v8 = vand.u32 2147483647, %v1685_v31 }
 0x924   :  { %v3430_v36 = vsel %vm2747_vm8, %v2367_v34, %v1148_v35  ;;  %2370 = vtanh.f32 %v1680_v10  ;;  %vm1691_vm12 = vweird.f32 %v1685_v31 }
 0x925   :  { %1158 = vrot.lane.b32.xlu2 %v3430_v36, %s2443_s21  ;;  %1153 = vrot.lane.b32.xlu1 %v3430_v36, %s2445_s23  ;;  %v1698_v9 = vor.u32 1.1754944e-38, %v1697_v41  ;;  %vm1696_vm14 = vcmp.eq.f32.partialorder %v1695_v8, 8.507059e+37  ;;  %v1156_v15 = vmul.f32 %v3430_v36, %v3399_v25 }
 0x926   :  { %1151 = vrot.lane.b32.xlu0 %v3430_v36, %s2444_s22 }
 0x929   :  { %v2369_v37 = vpop.eup %2368 }
 0x92a   :  { %v1687_v38 = vmul.f32 %v2369_v37, %v1685_v31  ;;  %vm1692_vm11 = vweird.f32 %v2369_v37  ;;  %v2371_v42 = vpop.eup %2370 }
 0x92b   :  { %vm1693_vm13 = vmor %vm1691_vm12, %vm1692_vm11 }
 0x92c   :  { %v1688_v39 = vsub.f32 1.0, %v1687_v38 }
 0x92e   :  { %v1689_v40 = vmul.f32 %v2369_v37, %v1688_v39 }
 0x930   :  { %v1690_v17 = vadd.f32 %v2369_v37, %v1689_v40 }
 0x932   :  { %v1694_v5 = vsel %vm1693_vm13, %v2369_v37, %v1690_v17 }
 0x933   :  { %v1699_v6 = vsel %vm1696_vm14, %v1698_v9, %v1694_v5 }
 0x934   :  { %v3440_v43 = vsel %vm2747_vm8, %v2371_v42, %v1699_v6 }
 0x935   :  { %1709 = vrot.lane.b32.xlu2 %v3440_v43, %s2443_s21  ;;  %1704 = vrot.lane.b32.xlu1 %v3440_v43, %s2445_s23  ;;  %v1707_v22 = vmul.f32 %v3440_v43, %v3410_v60  ;;  %v2285_v60 = vld [vmem:[%s3741_s8] ss:$0 sm:$0xff]  ;;  %s2206_s8 = sshll.u32 %s2446_s25, 4  ;;  %s2207_s8 = int_to_ptr.vmem [resolvable:$true] %s2206_s8 }
 0x936   :  { %1702 = vrot.lane.b32.xlu0 %v3440_v43, %s2444_s22  ;;  %v1785_v43 = vld [vmem:[#allocation2 + $0x8] sm:$0x3] }
 0x97f   :  { %v1159_v62 = vpop.permute.xlu2 %1158 }
 0x98f   :  { %v1710_v29 = vpop.permute.xlu2 %1709 }
 0x997   :  { %v1154_v61 = vpop.permute.xlu1 %1153 }
 0x998   :  { %v1152_v16 = vpop.permute.xlu0 %1151 }
 0x999   :  { %v1155_v32 = vmul.f32 %v1154_v61, %v1152_v16 }
 0x99b   :  { %v1157_v46 = vadd.f32 %v1156_v15, %v1155_v32 }
 0x99d   :  { %2372 = vtanh.f32 %v1157_v46 }
 0x9a3   :  { %v2373_v21 = vpop.eup %2372 }
 0x9a4   :  { %v1161_v2 = vmul.f32 %v2373_v21, %v1159_v62 }
 0x9a6   :  { %1163 = vst [vmem:[#allocation3 + $0xe] sm:$0x3] %v1161_v2 }
 0x9a7   :  { %1164 = vst [vmem:[#allocation4] sm:$0x3] %v1161_v2  ;;  %v1705_v0 = vpop.permute.xlu1 %1704 }
 0x9a8   :  { %v1703_v3 = vpop.permute.xlu0 %1702 }
 0x9a9   :  { %v1706_v19 = vmul.f32 %v1705_v0, %v1703_v3  ;;  %v1856_v3 = vld [vmem:[#allocation2 + $0xa] sm:$0x3] }
 0x9ab   :  { %v1708_v27 = vadd.f32 %v1707_v22, %v1706_v19 }
 0x9ad   :  { %2374 = vtanh.f32 %v1708_v27  ;;  %v1459_v28 = vld [vmem:[#allocation3 + $0xe] sm:$0x3] }
 0x9ae   :  { %1496 = vmatmul.f32.vlgmr.msrb.gmra.mxu3 %v1459_v28 }
 0x9af   :  { %2015 = vmatpush.msrb.mxu3 %v3451_v44 }
 0x9b1   :  { %2016 = vmatpush.msrb.mxu3 %v3460_v45 }
 0x9b3   :  { %v2375_v25 = vpop.eup %2374  ;;  %2017 = vmatpush.msrb.mxu3 %v3467_v13 }
 0x9b4   :  { %v1712_v26 = vmul.f32 %v2375_v25, %v1710_v29 }
 0x9b5   :  { %2018 = vmatpush.msrb.mxu3 %v3476_v4 }
 0x9b6   :  { %1713 = vst [vmem:[#allocation3 + $0x4] sm:$0x3] %v1712_v26  ;;  %1747 = vmatmul.f32.vlgmr.msra.gmra.mxu3 %v1712_v26 }
 0x9b7   :  { %2019 = vmatpush.msrb.mxu3 %v3485_v49 }
 0x9b9   :  { %2020 = vmatpush.msrb.mxu3 %v3494_v23 }
 0x9bb   :  { %2021 = vmatpush.msrb.mxu3 %v3503_v50 }
 0x9bd   :  { %2022 = vmatpush.msrb.mxu3 %v3512_v51 }
 0x9bf   :  { %2023 = vmatpush.msrb.mxu3 %v3521_v52 }
 0x9c1   :  { %2024 = vmatpush.msrb.mxu3 %v3530_v53 }
 0x9c3   :  { %2025 = vmatpush.msrb.mxu3 %v3539_v54 }
 0x9c5   :  { %2026 = vmatpush.msrb.mxu3 %v1719_v55 }
 0x9c7   :  { %2027 = vmatpush.msrb.mxu3 %v1718_v56 }
 0x9c9   :  { %2028 = vmatpush.msrb.mxu3 %v1717_v57 }
 0x9cb   :  { %2029 = vmatpush.msrb.mxu3 %v1716_v58 }
 0x9cd   :  { %2030 = vmatpush.msrb.mxu3 %v1715_v59 }
 0xa31   :  { %v1497_v7 = vpop.f32.mrf.mxu3 }
 0xa32   :  { %v1498_v10 = vadd.f32 %v2285_v60, %v1497_v7 }
 0xa34   :  { %1500 = vst [vmem:[#allocation2 + $0xe] sm:$0x3] %v1498_v10 }
 0xa39   :  { %v1748_v12 = vpop.f32.mrf.mxu3 }
 0xa3a   :  { %v1751_v14 = vadd.f32 %v1748_v12, %v1714_v11 }
 0xa3c   :  { %v2251_v18 = vmul.f32 -1.442695, %v1751_v14 }
 0xa3e   :  { %2376 = vpow2.f32 %v2251_v18 }
 0xa44   :  { %v2377_v20 = vpop.eup %2376 }
 0xa45   :  { %v1756_v47 = vadd.f32 1.0, %v2377_v20 }
 0xa47   :  { %2378 = vrcp.f32 %v1756_v47  ;;  %v1768_v31 = vand.u32 2147483648, %v1756_v47  ;;  %v1766_v33 = vand.u32 2147483647, %v1756_v47  ;;  %vm1762_vm1 = vweird.f32 %v1756_v47 }
 0xa48   :  { %2380 = vtanh.f32 %v1751_v14 }
 0xa49   :  { %v1769_v35 = vor.u32 1.1754944e-38, %v1768_v31  ;;  %vm1767_vm4 = vcmp.eq.f32.partialorder %v1766_v33, 8.507059e+37 }
 0xa4d   :  { %v2379_v48 = vpop.eup %2378 }
 0xa4e   :  { %v1758_v24 = vmul.f32 %v2379_v48, %v1756_v47  ;;  %vm1763_vm15 = vweird.f32 %v2379_v48  ;;  %v2381_v37 = vpop.eup %2380 }
 0xa4f   :  { %vm1764_vm3 = vmor %vm1762_vm1, %vm1763_vm15 }
 0xa50   :  { %v1759_v30 = vsub.f32 1.0, %v1758_v24 }
 0xa52   :  { %v1760_v1 = vmul.f32 %v2379_v48, %v1759_v30 }
 0xa54   :  { %v1761_v34 = vadd.f32 %v2379_v48, %v1760_v1 }
 0xa56   :  { %v1765_v36 = vsel %vm1764_vm3, %v2379_v48, %v1761_v34 }
 0xa57   :  { %v1770_v38 = vsel %vm1767_vm4, %v1769_v35, %v1765_v36 }
 0xa58   :  { %v1772_v39 = vsel %vm2747_vm8, %v2381_v37, %v1770_v38  ;;  %v1927_v37 = vld [vmem:[#allocation2 + $0xc] sm:$0x3] }
 0xa59   :  { %1780 = vrot.lane.b32.xlu2 %v1772_v39, %s2443_s21  ;;  %1775 = vrot.lane.b32.xlu1 %v1772_v39, %s2445_s23  ;;  %v1778_v17 = vmul.f32 %v1772_v39, %v1708_v27 }
 0xa5a   :  { %1773 = vrot.lane.b32.xlu0 %v1772_v39, %s2444_s22 }
 0xab3   :  { %v1781_v42 = vpop.permute.xlu2 %1780 }
 0xacb   :  { %v1776_v41 = vpop.permute.xlu1 %1775 }
 0xacc   :  { %v1774_v40 = vpop.permute.xlu0 %1773 }
 0xacd   :  { %v1777_v8 = vmul.f32 %v1776_v41, %v1774_v40 }
 0xacf   :  { %v1779_v9 = vadd.f32 %v1778_v17, %v1777_v8 }
 0xad1   :  { %2382 = vtanh.f32 %v1779_v9 }
 0xad7   :  { %v2383_v5 = vpop.eup %2382 }
 0xad8   :  { %v1783_v6 = vmul.f32 %v2383_v5, %v1781_v42 }
 0xada   :  { %1784 = vst [vmem:[#allocation3 + $0x6] sm:$0x3] %v1783_v6  ;;  %1818 = vmatmul.f32.vlgmr.msrb.gmra.mxu0 %v1783_v6 }
 0xb57   :  { %v1819_v44 = vpop.f32.mrf.mxu0 }
 0xb58   :  { %v1822_v45 = vadd.f32 %v1819_v44, %v1785_v43 }
 0xb5a   :  { %v2252_v13 = vmul.f32 -1.442695, %v1822_v45 }
 0xb5c   :  { %2384 = vpow2.f32 %v2252_v13 }
 0xb62   :  { %v2385_v4 = vpop.eup %2384 }
 0xb63   :  { %v1827_v49 = vadd.f32 1.0, %v2385_v4 }
 0xb65   :  { %2386 = vrcp.f32 %v1827_v49  ;;  %v1839_v52 = vand.u32 2147483648, %v1827_v49  ;;  %v1837_v54 = vand.u32 2147483647, %v1827_v49  ;;  %vm1833_vm5 = vweird.f32 %v1827_v49 }
 0xb66   :  { %2388 = vtanh.f32 %v1822_v45 }
 0xb67   :  { %v1840_v56 = vor.u32 1.1754944e-38, %v1839_v52  ;;  %vm1838_vm7 = vcmp.eq.f32.partialorder %v1837_v54, 8.507059e+37 }
 0xb6b   :  { %v2387_v23 = vpop.eup %2386 }
 0xb6c   :  { %v1829_v50 = vmul.f32 %v2387_v23, %v1827_v49  ;;  %vm1834_vm0 = vweird.f32 %v2387_v23  ;;  %v2389_v58 = vpop.eup %2388 }
 0xb6d   :  { %vm1835_vm6 = vmor %vm1833_vm5, %vm1834_vm0 }
 0xb6e   :  { %v1830_v51 = vsub.f32 1.0, %v1829_v50 }
 0xb70   :  { %v1831_v53 = vmul.f32 %v2387_v23, %v1830_v51 }
 0xb72   :  { %v1832_v55 = vadd.f32 %v2387_v23, %v1831_v53 }
 0xb74   :  { %v1836_v57 = vsel %vm1835_vm6, %v2387_v23, %v1832_v55 }
 0xb75   :  { %v1841_v59 = vsel %vm1838_vm7, %v1840_v56, %v1836_v57 }
 0xb76   :  { %v1843_v61 = vsel %vm2747_vm8, %v2389_v58, %v1841_v59  ;;  %v1998_v58 = vld [vmem:[#allocation2 + $0xe] sm:$0x3] }
 0xb77   :  { %1851 = vrot.lane.b32.xlu2 %v1843_v61, %s2443_s21  ;;  %1846 = vrot.lane.b32.xlu1 %v1843_v61, %s2445_s23  ;;  %v1849_v46 = vmul.f32 %v1843_v61, %v1779_v9 }
 0xb78   :  { %1844 = vrot.lane.b32.xlu0 %v1843_v61, %s2444_s22 }
 0xbd1   :  { %v1852_v2 = vpop.permute.xlu2 %1851 }
 0xbe9   :  { %v1847_v16 = vpop.permute.xlu1 %1846 }
 0xbea   :  { %v1845_v15 = vpop.permute.xlu0 %1844 }
 0xbeb   :  { %v1848_v32 = vmul.f32 %v1847_v16, %v1845_v15 }
 0xbed   :  { %v1850_v21 = vadd.f32 %v1849_v46, %v1848_v32 }
 0xbef   :  { %2390 = vtanh.f32 %v1850_v21 }
 0xbf5   :  { %v2391_v62 = vpop.eup %2390 }
 0xbf6   :  { %v1854_v0 = vmul.f32 %v2391_v62, %v1852_v2 }
 0xbf8   :  { %1855 = vst [vmem:[#allocation3 + $0x8] sm:$0x3] %v1854_v0  ;;  %1889 = vmatmul.f32.vlgmr.msra.gmra.mxu2 %v1854_v0 }
 0xc7b   :  { %v1890_v19 = vpop.f32.mrf.mxu2 }
 0xc7c   :  { %v1893_v22 = vadd.f32 %v1890_v19, %v1856_v3 }
 0xc7e   :  { %v2253_v27 = vmul.f32 -1.442695, %v1893_v22 }
 0xc80   :  { %2392 = vpow2.f32 %v2253_v27 }
 0xc86   :  { %v2393_v28 = vpop.eup %2392 }
 0xc87   :  { %v1898_v25 = vadd.f32 1.0, %v2393_v28 }
 0xc89   :  { %2394 = vrcp.f32 %v1898_v25  ;;  %v1910_v7 = vand.u32 2147483648, %v1898_v25  ;;  %v1908_v11 = vand.u32 2147483647, %v1898_v25  ;;  %vm1904_vm10 = vweird.f32 %v1898_v25 }
 0xc8a   :  { %2396 = vtanh.f32 %v1893_v22 }
 0xc8b   :  { %v1911_v14 = vor.u32 1.1754944e-38, %v1910_v7  ;;  %vm1909_vm12 = vcmp.eq.f32.partialorder %v1908_v11, 8.507059e+37  ;;  %v2095_v7 = vld [vmem:[%s3742_s9 + $0x70] sm:$0xff]  ;;  %v2116_v11 = vld [vmem:[%s3743_s10 + $0x60] sm:$0xff] }
 0xc8c   :  { %2141 = vmatpush.msrb.mxu2 %v2095_v7 }
 0xc8f   :  { %v2395_v29 = vpop.eup %2394 }
 0xc90   :  { %v1900_v26 = vmul.f32 %v2395_v29, %v1898_v25  ;;  %vm1905_vm9 = vweird.f32 %v2395_v29  ;;  %v2397_v20 = vpop.eup %2396 }
 0xc91   :  { %vm1906_vm11 = vmor %vm1904_vm10, %vm1905_vm9  ;;  %vm2199_vm10 = vcmask 58368  }
 0xc92   :  { %v1901_v60 = vsub.f32 1.0, %v1900_v26  ;;  %v2119_v26 = vld [vmem:[%s3743_s10 + $0x78] sm:$0xff] }
 0xc93   :  { %2120 = vmatpush.msra.mxu0 %v2119_v26 }
 0xc94   :  { %v1902_v10 = vmul.f32 %v2395_v29, %v1901_v60  ;;  %v2118_v60 = vld [vmem:[%s3743_s10 + $0x70] sm:$0xff] }
 0xc95   :  { %2121 = vmatpush.msra.mxu0 %v2118_v60 }
 0xc96   :  { %v1903_v12 = vadd.f32 %v2395_v29, %v1902_v10  ;;  %v2117_v10 = vld [vmem:[%s3743_s10 + $0x68] sm:$0xff] }
 0xc97   :  { %2122 = vmatpush.msra.mxu0 %v2117_v10 }
 0xc98   :  { %v1907_v18 = vsel %vm1906_vm11, %v2395_v29, %v1903_v12  ;;  %v2094_v12 = vld [vmem:[%s3742_s9 + $0x68] sm:$0xff] }
 0xc99   :  { %v1912_v47 = vsel %vm1909_vm12, %v1911_v14, %v1907_v18  ;;  %2123 = vmatpush.msra.mxu0 %v2116_v11  ;;  %2142 = vmatpush.msrb.mxu2 %v2094_v12  ;;  %v2115_v14 = vld [vmem:[%s3743_s10 + $0x58] sm:$0xff]  ;;  %v2093_v18 = vld [vmem:[%s3742_s9 + $0x60] sm:$0xff] }
 0xc9a   :  { %v1914_v48 = vsel %vm2747_vm8, %v2397_v20, %v1912_v47  ;;  %v2114_v20 = vld [vmem:[%s3743_s10 + $0x50] sm:$0xff]  ;;  %v2092_v47 = vld [vmem:[%s3742_s9 + $0x58] sm:$0xff] }
 0xc9b   :  { %1922 = vrot.lane.b32.xlu2 %v1914_v48, %s2443_s21  ;;  %1917 = vrot.lane.b32.xlu1 %v1914_v48, %s2445_s23  ;;  %v1920_v1 = vmul.f32 %v1914_v48, %v1850_v21 }
 0xc9c   :  { %1915 = vrot.lane.b32.xlu0 %v1914_v48, %s2444_s22  ;;  %2124 = vmatpush.msra.mxu0 %v2115_v14  ;;  %v2113_v48 = vld [vmem:[%s3743_s10 + $0x48] sm:$0xff] }
 0xc9d   :  { %2143 = vmatpush.msrb.mxu2 %v2093_v18 }
 0xc9e   :  { %2125 = vmatpush.msra.mxu0 %v2114_v20 }
 0xc9f   :  { %2144 = vmatpush.msrb.mxu2 %v2092_v47 }
 0xca0   :  { %2126 = vmatpush.msra.mxu0 %v2113_v48 }
 0xcf5   :  { %v1923_v35 = vpop.permute.xlu2 %1922 }
 0xd0d   :  { %v1918_v24 = vpop.permute.xlu1 %1917 }
 0xd0e   :  { %v1916_v30 = vpop.permute.xlu0 %1915 }
 0xd0f   :  { %v1919_v31 = vmul.f32 %v1918_v24, %v1916_v30  ;;  %v2091_v24 = vld [vmem:[%s3742_s9 + $0x50] sm:$0xff]  ;;  %v2112_v30 = vld [vmem:[%s3743_s10 + $0x40] sm:$0xff] }
 0xd10   :  { %2145 = vmatpush.msrb.mxu2 %v2091_v24  ;;  %2127 = vmatpush.msra.mxu0 %v2112_v30 }
 0xd11   :  { %v1921_v33 = vadd.f32 %v1920_v1, %v1919_v31  ;;  %v2090_v31 = vld [vmem:[%s3742_s9 + $0x48] sm:$0xff]  ;;  %v2111_v1 = vld [vmem:[%s3743_s10 + $0x38] sm:$0xff] }
 0xd12   :  { %2146 = vmatpush.msrb.mxu2 %v2090_v31  ;;  %2128 = vmatpush.msra.mxu0 %v2111_v1 }
 0xd13   :  { %2398 = vtanh.f32 %v1921_v33 }
 0xd19   :  { %v2399_v34 = vpop.eup %2398 }
 0xd1a   :  { %v1925_v36 = vmul.f32 %v2399_v34, %v1923_v35  ;;  %v2110_v34 = vld [vmem:[%s3743_s10 + $0x30] sm:$0xff]  ;;  %v2088_v35 = vld [vmem:[%s3742_s9 + $0x38] sm:$0xff] }
 0xd1b   :  { %2129 = vmatpush.msra.mxu0 %v2110_v34 }
 0xd1c   :  { %1926 = vst [vmem:[#allocation3 + $0xa] sm:$0x3] %v1925_v36  ;;  %1960 = vmatmul.f32.vlgmr.msra.gmra.mxu1 %v1925_v36  ;;  %v2109_v36 = vld [vmem:[%s3743_s10 + $0x28] sm:$0xff] }
 0xd1d   :  { %2130 = vmatpush.msra.mxu0 %v2109_v36 }
 0xd99   :  { %v1961_v38 = vpop.f32.mrf.mxu1 }
 0xd9a   :  { %v1964_v39 = vadd.f32 %v1961_v38, %v1927_v37  ;;  %v2087_v37 = vld [vmem:[%s3742_s9 + $0x30] sm:$0xff]  ;;  %v2108_v38 = vld [vmem:[%s3743_s10 + $0x20] sm:$0xff] }
 0xd9b   :  { %2131 = vmatpush.msra.mxu0 %v2108_v38 }
 0xd9c   :  { %v2254_v41 = vmul.f32 -1.442695, %v1964_v39 }
 0xd9e   :  { %2400 = vpow2.f32 %v2254_v41  ;;  %v2107_v41 = vld [vmem:[%s3743_s10 + $0x18] sm:$0xff] }
 0xd9f   :  { %2132 = vmatpush.msra.mxu0 %v2107_v41 }
 0xda4   :  { %v2401_v40 = vpop.eup %2400 }
 0xda5   :  { %v1969_v8 = vadd.f32 1.0, %v2401_v40  ;;  %v2085_v40 = vld [vmem:[%s3742_s9 + $0x20] sm:$0xff] }
 0xda7   :  { %2402 = vrcp.f32 %v1969_v8  ;;  %v1981_v42 = vand.u32 2147483648, %v1969_v8  ;;  %v1979_v43 = vand.u32 2147483647, %v1969_v8  ;;  %vm1975_vm14 = vweird.f32 %v1969_v8 }
 0xda8   :  { %2404 = vtanh.f32 %v1964_v39  ;;  %v2086_v39 = vld [vmem:[%s3742_s9 + $0x28] sm:$0xff] }
 0xda9   :  { %v1982_v45 = vor.u32 1.1754944e-38, %v1981_v42  ;;  %vm1980_vm1 = vcmp.eq.f32.partialorder %v1979_v43, 8.507059e+37  ;;  %v2104_v42 = vld [vmem:[%s3743_s10] sm:$0xff] }
 0xdaa   :  { %v2081_v43 = vld [vmem:[%s3742_s9] sm:$0xff] }
 0xdad   :  { %v2403_v17 = vpop.eup %2402 }
 0xdae   :  { %v1971_v9 = vmul.f32 %v2403_v17, %v1969_v8  ;;  %vm1976_vm13 = vweird.f32 %v2403_v17  ;;  %v2405_v4 = vpop.eup %2404  ;;  %v2106_v8 = vld [vmem:[%s3743_s10 + $0x10] sm:$0xff] }
 0xdaf   :  { %vm1977_vm15 = vmor %vm1975_vm14, %vm1976_vm13  ;;  %2133 = vmatpush.msra.mxu0 %v2106_v8 }
 0xdb0   :  { %v1972_v5 = vsub.f32 1.0, %v1971_v9  ;;  %v2105_v9 = vld [vmem:[%s3743_s10 + $0x8] sm:$0xff] }
 0xdb1   :  { %2134 = vmatpush.msra.mxu0 %v2105_v9 }
 0xdb2   :  { %v1973_v6 = vmul.f32 %v2403_v17, %v1972_v5  ;;  %v2083_v5 = vld [vmem:[%s3742_s9 + $0x10] sm:$0xff] }
 0xdb3   :  { %2135 = vmatpush.msra.mxu0 %v2104_v42 }
 0xdb4   :  { %v1974_v44 = vadd.f32 %v2403_v17, %v1973_v6  ;;  %v2082_v6 = vld [vmem:[%s3742_s9 + $0x8] sm:$0xff] }
 0xdb6   :  { %v1978_v13 = vsel %vm1977_vm15, %v2403_v17, %v1974_v44  ;;  %v2084_v17 = vld [vmem:[%s3742_s9 + $0x18] sm:$0xff] }
 0xdb7   :  { %v1983_v49 = vsel %vm1980_vm1, %v1982_v45, %v1978_v13 }
 0xdb8   :  { %v1985_v23 = vsel %vm2747_vm8, %v2405_v4, %v1983_v49 }
 0xdb9   :  { %1993 = vrot.lane.b32.xlu2 %v1985_v23, %s2443_s21  ;;  %1988 = vrot.lane.b32.xlu1 %v1985_v23, %s2445_s23  ;;  %v1991_v53 = vmul.f32 %v1985_v23, %v1921_v33  ;;  %v2089_v33 = vld [vmem:[%s3742_s9 + $0x40] sm:$0xff] }
 0xdba   :  { %1986 = vrot.lane.b32.xlu0 %v1985_v23, %s2444_s22  ;;  %2147 = vmatpush.msrb.mxu2 %v2089_v33 }
 0xdbc   :  { %2148 = vmatpush.msrb.mxu2 %v2088_v35 }
 0xdbe   :  { %2149 = vmatpush.msrb.mxu2 %v2087_v37 }
 0xdc0   :  { %2150 = vmatpush.msrb.mxu2 %v2086_v39 }
 0xdc2   :  { %2151 = vmatpush.msrb.mxu2 %v2085_v40 }
 0xdc4   :  { %2152 = vmatpush.msrb.mxu2 %v2084_v17 }
 0xdc6   :  { %2153 = vmatpush.msrb.mxu2 %v2083_v5 }
 0xdc8   :  { %2154 = vmatpush.msrb.mxu2 %v2082_v6 }
 0xdca   :  { %2155 = vmatpush.msrb.mxu2 %v2081_v43 }
 0xe13   :  { %v1994_v56 = vpop.permute.xlu2 %1993 }
 0xe2b   :  { %v1989_v50 = vpop.permute.xlu1 %1988 }
 0xe2c   :  { %v1987_v51 = vpop.permute.xlu0 %1986 }
 0xe2d   :  { %v1990_v52 = vmul.f32 %v1989_v50, %v1987_v51 }
 0xe2f   :  { %v3600_v54 = vadd.f32 %v1991_v53, %v1990_v52  ;;  %v2071_v52 = vld [vmem:[#allocation4] sm:$0x3] }
 0xe30   :  { %v2098_v53 = vrot.slane %v2071_v52, 1 }
 0xe31   :  { %2406 = vtanh.f32 %v3600_v54 }
 0xe37   :  { %v2407_v55 = vpop.eup %2406 }
 0xe38   :  { %v1996_v57 = vmul.f32 %v2407_v55, %v1994_v56 }
 0xe3a   :  { %1997 = vst [vmem:[#allocation3 + $0xc] sm:$0x3] %v1996_v57  ;;  %2031 = vmatmul.f32.vlgmr.msrb.gmra.mxu3 %v1996_v57 }
 0xebd   :  { %v2032_v59 = vpop.f32.mrf.mxu3 }
 0xebe   :  { %v2035_v61 = vadd.f32 %v2032_v59, %v1998_v58 }
 0xec0   :  { %v2255_v16 = vmul.f32 -1.442695, %v2035_v61 }
 0xec2   :  { %2408 = vpow2.f32 %v2255_v16 }
 0xec8   :  { %v2409_v15 = vpop.eup %2408 }
 0xec9   :  { %v2040_v32 = vadd.f32 1.0, %v2409_v15  ;;  %v2168_v15 = vld [vmem:[%s3745_s12 + $0x18] sm:$0xff] }
 0xeca   :  { %2188 = vmatpush.msrb.mxu1 %v2168_v15 }
 0xecb   :  { %2410 = vrcp.f32 %v2040_v32  ;;  %v2052_v2 = vand.u32 2147483648, %v2040_v32  ;;  %v2050_v3 = vand.u32 2147483647, %v2040_v32  ;;  %vm2046_vm4 = vweird.f32 %v2040_v32 }
 0xecc   :  { %2412 = vtanh.f32 %v2035_v61 }
 0xecd   :  { %v2053_v22 = vor.u32 1.1754944e-38, %v2052_v2  ;;  %vm2051_vm5 = vcmp.eq.f32.partialorder %v2050_v3, 8.507059e+37 }
 0xed1   :  { %v2411_v46 = vpop.eup %2410 }
 0xed2   :  { %v2042_v21 = vmul.f32 %v2411_v46, %v2040_v32  ;;  %vm2047_vm3 = vweird.f32 %v2411_v46  ;;  %v2413_v28 = vpop.eup %2412  ;;  %v2167_v32 = vld [vmem:[%s3745_s12 + $0x10] sm:$0xff] }
 0xed3   :  { %vm2048_vm0 = vmor %vm2046_vm4, %vm2047_vm3  ;;  %2189 = vmatpush.msrb.mxu1 %v2167_v32 }
 0xed4   :  { %v2043_v62 = vsub.f32 1.0, %v2042_v21  ;;  %v2165_v21 = vld [vmem:[%s3745_s12] sm:$0xff] }
 0xed6   :  { %v2044_v0 = vmul.f32 %v2411_v46, %v2043_v62  ;;  %v2286_v62 = vld [vmem:[%s3744_s11] ss:$0 sm:$0xff] }
 0xed8   :  { %v2045_v19 = vadd.f32 %v2411_v46, %v2044_v0 }
 0xeda   :  { %v2049_v27 = vsel %vm2048_vm0, %v2411_v46, %v2045_v19  ;;  %v2166_v46 = vld [vmem:[%s3745_s12 + $0x8] sm:$0xff] }
 0xedb   :  { %v2054_v25 = vsel %vm2051_vm5, %v2053_v22, %v2049_v27  ;;  %2190 = vmatpush.msrb.mxu1 %v2166_v46  ;;  %v2287_v22 = vld [vmem:[%s3746_s13] ss:$0 sm:$0xff] }
 0xedc   :  { %v3605_v29 = vsel %vm2747_vm8, %v2413_v28, %v2054_v25  ;;  %vm2076_vm8 = vcmask 1040384  }
 0xedd   :  { %2064 = vrot.lane.b32.xlu2 %v3605_v29, %s2443_s21  ;;  %2059 = vrot.lane.b32.xlu1 %v3605_v29, %s2445_s23  ;;  %v2062_v4 = vmul.f32 %v3605_v29, %v3600_v54 }
 0xede   :  { %2057 = vrot.lane.b32.xlu0 %v3605_v29, %s2444_s22  ;;  %2191 = vmatpush.msrb.mxu1 %v2165_v21 }
 0xf37   :  { %v2065_v50 = vpop.permute.xlu2 %2064 }
 0xf4f   :  { %v2060_v44 = vpop.permute.xlu1 %2059 }
 0xf50   :  { %v2058_v45 = vpop.permute.xlu0 %2057 }
 0xf51   :  { %v2061_v13 = vmul.f32 %v2060_v44, %v2058_v45 }
 0xf53   :  { %v2063_v49 = vadd.f32 %v2062_v4, %v2061_v13 }
 0xf55   :  { %2414 = vtanh.f32 %v2063_v49 }
 0xf5b   :  { %v2415_v23 = vpop.eup %2414 }
 0xf5c   :  { %v2067_v51 = vmul.f32 %v2415_v23, %v2065_v50 }
 0xf5e   :  { %2068 = vst [vmem:[#allocation3 + $0xe] sm:$0x3] %v2067_v51 }
 0xf5f   :  { %2070 = vst [vmem:[#allocation4 + $0x2] sm:$0x3] %v2067_v51 }
 0xf66   :  { %v2072_v55 = vld [vmem:[#allocation4 + $0x2] sm:$0x3] }
 0xf67   :  { %v2074_v56 = vrot.slane %v2072_v55, 7  ;;  %v2100_v57 = vsel %vm2076_vm8, %v2098_v53, %v2072_v55 }
 0xf68   :  { %vm2101_vm6 = vcmp.gt.f32.partialorder %v2100_v57, 0.0  ;;  %v2102_v58 = vmul.f32 0.01, %v2100_v57 }
 0xf69   :  { %v2077_v59 = vsel %vm2076_vm8, %v2071_v52, %v2074_v56 }
 0xf6a   :  { %v2103_v61 = vsel %vm2101_vm6, %v2100_v57, %v2102_v58  ;;  %vm2078_vm7 = vcmp.gt.f32.partialorder %v2077_v59, 0.0  ;;  %v2079_v16 = vmul.f32 0.01, %v2077_v59 }
 0xf6b   :  { %2136 = vmatmul.f32.vlgmr.msra.gmra.mxu0 %v2103_v61 }
 0xf6c   :  { %v2080_v54 = vsel %vm2078_vm7, %v2077_v59, %v2079_v16 }
 0xf6d   :  { %2156 = vmatmul.f32.vlgmr.msrb.gmra.mxu2 %v2080_v54 }
 0xfe8   :  { %v2137_v2 = vpop.f32.mrf.mxu0 }
 0xff0   :  { %v2157_v0 = vpop.f32.mrf.mxu2 }
 0xff1   :  { %v2158_v3 = vadd.f32 %v2157_v0, %v2137_v2 }
 0xff3   :  { %v2164_v19 = vadd.f32 %v2286_v62, %v2158_v3 }
 0xff5   :  { %2256 = vmatmul.msk.f32.vlgmr.msrb.gmra.mxu1 %vm95_vm2, %v2164_v19 }
0x1072   :  { %v2193_v27 = vpop.f32.mrf.mxu1 }
0x1073   :  { %v2194_v28 = vadd.f32 %v2287_v22, %v2193_v27 }
0x1075   :  { %vm2196_vm9 = vcmp.gt.f32.partialorder %v2194_v28, 0.0  ;;  %v2197_v25 = vmul.f32 0.01, %v2194_v28 }
0x1077   :  { %v2198_v29 = vsel %vm2196_vm9, %v2194_v28, %v2197_v25 }
0x1078   :  { %2200 = vst.msk [vmem:[#allocation5] sm:$0x3] %vm2199_vm10, %v2198_v29 }
0x1079   :  { %2211 = dma.vmem_to_hbm [thread:$0]  %s2207_s8, 32, %s2209_s0, [#allocation6]  }
0x107a   :  { %2440 = dma.done.wait [#allocation6], 32  }
0x107b   :  { %2441 = vsyncadd [#allocation6], 4294967264 }
0x107c   :  { %2216 = vsyncpa [#allocation6], 1 }

</bundles_post_ra>
